<compile_context>
chip_gen: v7x
topology: tpu7x:2x2x1
jax: 0.10.0
libtpu: 0.0.40
codegen_flags: <defaults>
</compile_context>

<pallas_src>
import jax
import jax.numpy as jnp
from jax import lax
from jax.experimental import pallas as pl
from jax.experimental.pallas import tpu as pltpu

_NEG = -1e30  # finite "-inf" for max-pool padding (safe: * 0.0 stays finite on the MXU)


def pnet_pallas(x_nchw, params):
    """x_nchw: (N, 1, H, W) float32.  Returns (b, a) in NCHW like PyTorch:
       b: (N, 4, H', W'), a: (N, 2, H', W') with channel softmax applied to a."""
    (w1, b1, al1, w2, b2, al2, w3, b3, al3, w41, b41, w42, b42) = params
    N, Cin, H, W = x_nchw.shape
    assert Cin == 1, "PNet conv1 expects a single input channel"

    # Static shape bookkeeping ('valid' convs, maxpool (2,5)/(2,5) ceil_mode).
    H1, W1 = H - 2, W - 2                      # after conv1 3x3
    H2, W2 = -(-H1 // 2), -(-W1 // 5)          # after maxpool (ceil_mode=True)
    Wp = 5 * W2                                # W1 rounded up to a multiple of 5
    pad_w = Wp - W1
    H3, W3 = H2 - 2, W2 - 4                    # after conv2 (3,5)
    H4, W4 = H3 - 2, W3 - 4                    # after conv3 (3,5)
    if min(H1, W1, H3, W3, H4, W4) <= 0:
        raise ValueError("input spatial size too small for PNet")

    f32 = jnp.float32

    # ---- weight re-layouts (tiny, done once in the wrapper) -------------
    w1k = jnp.transpose(w1, (2, 3, 0, 1)).astype(f32)                 # (3,3,10,1)
    w2k = jnp.transpose(w2, (0, 2, 3, 1)).reshape(w2.shape[0], -1)    # (16, 150)
    w3k = jnp.transpose(w3, (0, 2, 3, 1)).reshape(w3.shape[0], -1)    # (32, 240)
    w41k = w41.reshape(w41.shape[0], -1).astype(f32)                  # (2, 32)
    w42k = w42.reshape(w42.shape[0], -1).astype(f32)                  # (4, 32)
    col = lambda v: v.reshape(-1, 1).astype(f32)
    b1k, al1k = col(b1), col(al1)
    b2k, al2k = col(b2), col(al2)
    b3k, al3k = col(b3), col(al3)
    b41k, b42k = col(b41), col(b42)
    # 0/1 matrix picking every 5th column of the sliding max (stride-5 pool).
    sel = (jnp.arange(Wp - 4)[:, None] == 5 * jnp.arange(W2)[None, :]).astype(f32)

    # Input as (N, H, 1, W): a FREE reshape since C == 1 (no transpose), and it
    # puts W on lanes / channels on sublanes inside the kernel.  Zero-pad W so
    # that conv1 output width is already Wp (pool pad handled by an iota mask).
    x_k = x_nchw.reshape(N, H, 1, W).astype(f32)
    if pad_w:
        x_k = jnp.pad(x_k, ((0, 0), (0, 0), (0, 0), (0, pad_w)))
    Wk = W + pad_w

    def kernel(x_ref, w1_ref, b1_ref, a1_ref, sel_ref,
               w2_ref, b2_ref, a2_ref, w3_ref, b3_ref, a3_ref,
               w41_ref, b41_ref, w42_ref, b42_ref,
               b_out_ref, a_out_ref):
        x = x_ref[0]                                        # (H, 1, Wk)

        # ---- conv1 3x3 (1 -> 10) + PReLU: 9 VPU broadcast-MACs.
        acc = None
        for kh in range(3):
            for kw in range(3):
                tap = w1_ref[kh, kw][None, :, :]            # (1, 10, 1)
                xs = x[kh:kh + H1, :, kw:kw + Wp]           # (H1, 1, Wp)
                t = tap * xs                                # (H1, 10, Wp)
                acc = t if acc is None else acc + t
        y1 = acc + b1_ref[...][None, :, :]
        y1 = jnp.where(y1 > 0, y1, a1_ref[...][None, :, :] * y1)
        if pad_w:                                           # ceil_mode pad -> -inf-ish
            lane = lax.broadcasted_iota(jnp.int32, y1.shape, 2)
            y1 = jnp.where(lane < W1, y1, _NEG)

        # ---- maxpool (2,5), stride (2,5), ceil_mode=True.
        p_rows = []
        for h2 in range(H2):
            r = y1[2 * h2]                                  # (10, Wp)
            if 2 * h2 + 1 < H1:                             # last H window may be partial
                r = jnp.maximum(r, y1[2 * h2 + 1])
            sl = r[:, 0:Wp - 4]                             # sliding max, window 5
            for k in range(1, 5):
                sl = jnp.maximum(sl, r[:, k:k + Wp - 4])
            p_rows.append(jnp.dot(sl, sel_ref[...],
                                  preferred_element_type=f32))      # (10, W2)

        # ---- conv2 (3,5) (10 -> 16) + PReLU: one im2col matmul per row.
        y2_rows = []
        for h3 in range(H3):
            patch = jnp.concatenate(
                [p_rows[h3 + kh][:, kw:kw + W3]
                 for kh in range(3) for kw in range(5)], axis=0)     # (150, W3)
            y = jnp.dot(w2_ref[...], patch, preferred_element_type=f32) + b2_ref[...]
            y2_rows.append(jnp.where(y > 0, y, a2_ref[...] * y))     # (16, W3)

        # ---- conv3 (3,5) (16 -> 32) + PReLU, then the two 1x1 heads.
        for h4 in range(H4):
            patch = jnp.concatenate(
                [y2_rows[h4 + kh][:, kw:kw + W4]
                 for kh in range(3) for kw in range(5)], axis=0)     # (240, W4)
            y = jnp.dot(w3_ref[...], patch, preferred_element_type=f32) + b3_ref[...]
            y = jnp.where(y > 0, y, a3_ref[...] * y)                 # (32, W4)

            a_log = jnp.dot(w41_ref[...], y, preferred_element_type=f32) + b41_ref[...]
            b_box = jnp.dot(w42_ref[...], y, preferred_element_type=f32) + b42_ref[...]
            m = jnp.max(a_log, axis=0, keepdims=True)                # channel softmax
            e = jnp.exp(a_log - m)
            a_sm = e / jnp.sum(e, axis=0, keepdims=True)

            b_out_ref[0, :, h4, :] = b_box                           # (4, W4)
            a_out_ref[0, :, h4, :] = a_sm                            # (2, W4)

    full = lambda a: pl.BlockSpec(a.shape, lambda n: (0,) * a.ndim)
    consts = (w1k, b1k, al1k, sel, w2k, b2k, al2k, w3k, b3k, al3k,
              w41k, b41k, w42k, b42k)

    b_out, a_out = pl.pallas_call(
        kernel,
        out_shape=(jax.ShapeDtypeStruct((N, 4, H4, W4), f32),
                   jax.ShapeDtypeStruct((N, 2, H4, W4), f32)),
        grid_spec=pltpu.PrefetchScalarGridSpec(
            num_scalar_prefetch=0,
            grid=(N,),
            in_specs=[pl.BlockSpec((1, H, 1, Wk), lambda n: (n, 0, 0, 0))]
                     + [full(c) for c in consts],
            out_specs=(pl.BlockSpec((1, 4, H4, W4), lambda n: (n, 0, 0, 0)),
                       pl.BlockSpec((1, 2, H4, W4), lambda n: (n, 0, 0, 0))),
        ),
        compiler_params=pltpu.CompilerParams(
            dimension_semantics=("parallel",)),
    )(x_k, *consts)
    return b_out, a_out


def _reference(x, params):
    """Independent reference with lax.conv / lax.reduce_window (NCHW/OIHW)."""
    w1, b1, al1, w2, b2, al2, w3, b3, al3, w41, b41, w42, b42 = params
    dn = ("NCHW", "OIHW", "NCHW")

    def conv(x, w, b):
        y = lax.conv_general_dilated(x, w, (1, 1), "VALID", dimension_numbers=dn)
        return y + b.reshape(1, -1, 1, 1)

    def prelu(x, a):
        return jnp.where(x > 0, x, a.reshape(1, -1, 1, 1) * x)

    y = prelu(conv(x, w1, b1), al1)
    H1, W1 = y.shape[2], y.shape[3]
    H2, W2 = -(-H1 // 2), -(-W1 // 5)
    y = lax.reduce_window(y, -jnp.inf, lax.max, (1, 1, 2, 5), (1, 1, 2, 5),
                          ((0, 0), (0, 0), (0, 2 * H2 - H1), (0, 5 * W2 - W1)))
    y = prelu(conv(y, w2, b2), al2)
    y = prelu(conv(y, w3, b3), al3)
    a = jax.nn.softmax(conv(y, w41, b41), axis=1)
    b = conv(y, w42, b42)
    return b, a


def make_params(key):
    ks = jax.random.split(key, 13)
    n = lambda k, shape, s=0.1: s * jax.random.normal(k, shape, jnp.float32)
    w1 = n(ks[0], (10, 1, 3, 3));  b1 = n(ks[1], (10,))
    al1 = 0.25 + n(ks[2], (10,), 0.05)
    w2 = n(ks[3], (16, 10, 3, 5)); b2 = n(ks[4], (16,))
    al2 = 0.25 + n(ks[5], (16,), 0.05)
    w3 = n(ks[6], (32, 16, 3, 5)); b3 = n(ks[7], (32,))
    al3 = 0.25 + n(ks[8], (32,), 0.05)
    w41 = n(ks[9], (2, 32, 1, 1)); b41 = n(ks[10], (2,))
    w42 = n(ks[11], (4, 32, 1, 1)); b42 = n(ks[12], (4,))
    return (w1, b1, al1, w2, b2, al2, w3, b3, al3, w41, b41, w42, b42)


if __name__ == "__main__":
    key = jax.random.PRNGKey(0)
    kx, kp = jax.random.split(key)

    # Near-minimal spatial size that yields a valid PNet output; H=13 / W=58
    # exercise BOTH ceil_mode paths of the max-pool (odd H1, W1 % 5 != 0).
    N, H, W = 2, 13, 58
    x = jax.random.normal(kx, (N, 1, H, W), jnp.float32)   # NCHW like PyTorch
    params = make_params(kp)

    b_out, a_out = pnet_pallas(x, params)
    b_out = jax.block_until_ready(b_out)
    a_out = jax.block_until_ready(a_out)

    b_ref, a_ref = _reference(x, params)
    assert b_out.shape == b_ref.shape and a_out.shape == a_ref.shape, (
        b_out.shape, a_out.shape)
    assert jnp.allclose(b_out, b_ref, atol=1e-3, rtol=1e-3), (
        float(jnp.max(jnp.abs(b_out - b_ref))))
    assert jnp.allclose(a_out, a_ref, atol=1e-3, rtol=1e-3), (
        float(jnp.max(jnp.abs(a_out - a_ref))))

    print("KERNEL_OK")
</pallas_src>

<mosaic_0001>
module attributes {stable_mosaic.version = 11 : i64} {
  func.func @kernel(%arg0: i32, %arg1: memref<1x13x1x62xf32, #tpu.memory_space<vmem>>, %arg2: memref<3x3x10x1xf32, #tpu.memory_space<vmem>>, %arg3: memref<10x1xf32, #tpu.memory_space<vmem>>, %arg4: memref<10x1xf32, #tpu.memory_space<vmem>>, %arg5: memref<56x12xf32, #tpu.memory_space<vmem>>, %arg6: memref<16x150xf32, #tpu.memory_space<vmem>>, %arg7: memref<16x1xf32, #tpu.memory_space<vmem>>, %arg8: memref<16x1xf32, #tpu.memory_space<vmem>>, %arg9: memref<32x240xf32, #tpu.memory_space<vmem>>, %arg10: memref<32x1xf32, #tpu.memory_space<vmem>>, %arg11: memref<32x1xf32, #tpu.memory_space<vmem>>, %arg12: memref<2x32xf32, #tpu.memory_space<vmem>>, %arg13: memref<2x1xf32, #tpu.memory_space<vmem>>, %arg14: memref<4x32xf32, #tpu.memory_space<vmem>>, %arg15: memref<4x1xf32, #tpu.memory_space<vmem>>, %arg16: memref<1x4x2x4xf32, #tpu.memory_space<vmem>>, %arg17: memref<1x2x2x4xf32, #tpu.memory_space<vmem>>) attributes {dimension_semantics = [#tpu.dimension_semantics<parallel>], iteration_bounds = array<i64: 2>, scalar_prefetch = 0 : i64, scratch_operands = 0 : i64, tpu.core_type = #tpu.core_type<tc>, window_params = [{transform_indices = @transform_0, window_bounds = array<i64: 1, 13, 1, 62>}, {pipeline_mode = #tpu.pipeline_mode<synchronous>, transform_indices = @transform_1, window_bounds = array<i64: 3, 3, 10, 1>}, {pipeline_mode = #tpu.pipeline_mode<synchronous>, transform_indices = @transform_2, window_bounds = array<i64: 10, 1>}, {pipeline_mode = #tpu.pipeline_mode<synchronous>, transform_indices = @transform_3, window_bounds = array<i64: 10, 1>}, {pipeline_mode = #tpu.pipeline_mode<synchronous>, transform_indices = @transform_4, window_bounds = array<i64: 56, 12>}, {pipeline_mode = #tpu.pipeline_mode<synchronous>, transform_indices = @transform_5, window_bounds = array<i64: 16, 150>}, {pipeline_mode = #tpu.pipeline_mode<synchronous>, transform_indices = @transform_6, window_bounds = array<i64: 16, 1>}, {pipeline_mode = #tpu.pipeline_mode<synchronous>, transform_indices = @transform_7, window_bounds = array<i64: 16, 1>}, {pipeline_mode = #tpu.pipeline_mode<synchronous>, transform_indices = @transform_8, window_bounds = array<i64: 32, 240>}, {pipeline_mode = #tpu.pipeline_mode<synchronous>, transform_indices = @transform_9, window_bounds = array<i64: 32, 1>}, {pipeline_mode = #tpu.pipeline_mode<synchronous>, transform_indices = @transform_10, window_bounds = array<i64: 32, 1>}, {pipeline_mode = #tpu.pipeline_mode<synchronous>, transform_indices = @transform_11, window_bounds = array<i64: 2, 32>}, {pipeline_mode = #tpu.pipeline_mode<synchronous>, transform_indices = @transform_12, window_bounds = array<i64: 2, 1>}, {pipeline_mode = #tpu.pipeline_mode<synchronous>, transform_indices = @transform_13, window_bounds = array<i64: 4, 32>}, {pipeline_mode = #tpu.pipeline_mode<synchronous>, transform_indices = @transform_14, window_bounds = array<i64: 4, 1>}, {transform_indices = @transform_15, window_bounds = array<i64: 1, 4, 2, 4>}, {transform_indices = @transform_16, window_bounds = array<i64: 1, 2, 2, 4>}]} {
    %c0 = arith.constant 0 : index
    %c0_0 = arith.constant 0 : index
    %c0_1 = arith.constant 0 : index
    %c0_2 = arith.constant 0 : index
    %0 = vector.load %arg1[%c0, %c0_0, %c0_1, %c0_2] : memref<1x13x1x62xf32, #tpu.memory_space<vmem>>, vector<1x13x1x62xf32>
    %1 = vector.shape_cast %0 : vector<1x13x1x62xf32> to vector<13x1x62xf32>
    %c0_3 = arith.constant 0 : index
    %c0_4 = arith.constant 0 : index
    %c0_5 = arith.constant 0 : index
    %c0_6 = arith.constant 0 : index
    %2 = vector.load %arg2[%c0_3, %c0_4, %c0_5, %c0_6] : memref<3x3x10x1xf32, #tpu.memory_space<vmem>>, vector<1x1x10x1xf32>
    %3 = vector.shape_cast %2 : vector<1x1x10x1xf32> to vector<10x1xf32>
    %4 = vector.shape_cast %3 : vector<10x1xf32> to vector<1x10x1xf32>
    %5 = vector.extract_strided_slice %1 {offsets = [0, 0, 0], sizes = [11, 1, 60], strides = [1, 1, 1]} : vector<13x1x62xf32> to vector<11x1x60xf32>
    %6 = vector.broadcast %4 : vector<1x10x1xf32> to vector<11x10x60xf32>
    %7 = vector.broadcast %5 : vector<11x1x60xf32> to vector<11x10x60xf32>
    %8 = arith.mulf %6, %7 : vector<11x10x60xf32>
    %c0_7 = arith.constant 0 : index
    %c1 = arith.constant 1 : index
    %c0_8 = arith.constant 0 : index
    %c0_9 = arith.constant 0 : index
    %9 = vector.load %arg2[%c0_7, %c1, %c0_8, %c0_9] : memref<3x3x10x1xf32, #tpu.memory_space<vmem>>, vector<1x1x10x1xf32>
    %10 = vector.shape_cast %9 : vector<1x1x10x1xf32> to vector<10x1xf32>
    %11 = vector.shape_cast %10 : vector<10x1xf32> to vector<1x10x1xf32>
    %12 = vector.extract_strided_slice %1 {offsets = [0, 0, 1], sizes = [11, 1, 60], strides = [1, 1, 1]} : vector<13x1x62xf32> to vector<11x1x60xf32>
    %13 = vector.broadcast %11 : vector<1x10x1xf32> to vector<11x10x60xf32>
    %14 = vector.broadcast %12 : vector<11x1x60xf32> to vector<11x10x60xf32>
    %15 = arith.mulf %13, %14 : vector<11x10x60xf32>
    %16 = arith.addf %8, %15 : vector<11x10x60xf32>
    %c0_10 = arith.constant 0 : index
    %c2 = arith.constant 2 : index
    %c0_11 = arith.constant 0 : index
    %c0_12 = arith.constant 0 : index
    %17 = vector.load %arg2[%c0_10, %c2, %c0_11, %c0_12] : memref<3x3x10x1xf32, #tpu.memory_space<vmem>>, vector<1x1x10x1xf32>
    %18 = vector.shape_cast %17 : vector<1x1x10x1xf32> to vector<10x1xf32>
    %19 = vector.shape_cast %18 : vector<10x1xf32> to vector<1x10x1xf32>
    %20 = vector.extract_strided_slice %1 {offsets = [0, 0, 2], sizes = [11, 1, 60], strides = [1, 1, 1]} : vector<13x1x62xf32> to vector<11x1x60xf32>
    %21 = vector.broadcast %19 : vector<1x10x1xf32> to vector<11x10x60xf32>
    %22 = vector.broadcast %20 : vector<11x1x60xf32> to vector<11x10x60xf32>
    %23 = arith.mulf %21, %22 : vector<11x10x60xf32>
    %24 = arith.addf %16, %23 : vector<11x10x60xf32>
    %c1_13 = arith.constant 1 : index
    %c0_14 = arith.constant 0 : index
    %c0_15 = arith.constant 0 : index
    %c0_16 = arith.constant 0 : index
    %25 = vector.load %arg2[%c1_13, %c0_14, %c0_15, %c0_16] : memref<3x3x10x1xf32, #tpu.memory_space<vmem>>, vector<1x1x10x1xf32>
    %26 = vector.shape_cast %25 : vector<1x1x10x1xf32> to vector<10x1xf32>
    %27 = vector.shape_cast %26 : vector<10x1xf32> to vector<1x10x1xf32>
    %28 = vector.extract_strided_slice %1 {offsets = [1, 0, 0], sizes = [11, 1, 60], strides = [1, 1, 1]} : vector<13x1x62xf32> to vector<11x1x60xf32>
    %29 = vector.broadcast %27 : vector<1x10x1xf32> to vector<11x10x60xf32>
    %30 = vector.broadcast %28 : vector<11x1x60xf32> to vector<11x10x60xf32>
    %31 = arith.mulf %29, %30 : vector<11x10x60xf32>
    %32 = arith.addf %24, %31 : vector<11x10x60xf32>
    %c1_17 = arith.constant 1 : index
    %c1_18 = arith.constant 1 : index
    %c0_19 = arith.constant 0 : index
    %c0_20 = arith.constant 0 : index
    %33 = vector.load %arg2[%c1_17, %c1_18, %c0_19, %c0_20] : memref<3x3x10x1xf32, #tpu.memory_space<vmem>>, vector<1x1x10x1xf32>
    %34 = vector.shape_cast %33 : vector<1x1x10x1xf32> to vector<10x1xf32>
    %35 = vector.shape_cast %34 : vector<10x1xf32> to vector<1x10x1xf32>
    %36 = vector.extract_strided_slice %1 {offsets = [1, 0, 1], sizes = [11, 1, 60], strides = [1, 1, 1]} : vector<13x1x62xf32> to vector<11x1x60xf32>
    %37 = vector.broadcast %35 : vector<1x10x1xf32> to vector<11x10x60xf32>
    %38 = vector.broadcast %36 : vector<11x1x60xf32> to vector<11x10x60xf32>
    %39 = arith.mulf %37, %38 : vector<11x10x60xf32>
    %40 = arith.addf %32, %39 : vector<11x10x60xf32>
    %c1_21 = arith.constant 1 : index
    %c2_22 = arith.constant 2 : index
    %c0_23 = arith.constant 0 : index
    %c0_24 = arith.constant 0 : index
    %41 = vector.load %arg2[%c1_21, %c2_22, %c0_23, %c0_24] : memref<3x3x10x1xf32, #tpu.memory_space<vmem>>, vector<1x1x10x1xf32>
    %42 = vector.shape_cast %41 : vector<1x1x10x1xf32> to vector<10x1xf32>
    %43 = vector.shape_cast %42 : vector<10x1xf32> to vector<1x10x1xf32>
    %44 = vector.extract_strided_slice %1 {offsets = [1, 0, 2], sizes = [11, 1, 60], strides = [1, 1, 1]} : vector<13x1x62xf32> to vector<11x1x60xf32>
    %45 = vector.broadcast %43 : vector<1x10x1xf32> to vector<11x10x60xf32>
    %46 = vector.broadcast %44 : vector<11x1x60xf32> to vector<11x10x60xf32>
    %47 = arith.mulf %45, %46 : vector<11x10x60xf32>
    %48 = arith.addf %40, %47 : vector<11x10x60xf32>
    %c2_25 = arith.constant 2 : index
    %c0_26 = arith.constant 0 : index
    %c0_27 = arith.constant 0 : index
    %c0_28 = arith.constant 0 : index
    %49 = vector.load %arg2[%c2_25, %c0_26, %c0_27, %c0_28] : memref<3x3x10x1xf32, #tpu.memory_space<vmem>>, vector<1x1x10x1xf32>
    %50 = vector.shape_cast %49 : vector<1x1x10x1xf32> to vector<10x1xf32>
    %51 = vector.shape_cast %50 : vector<10x1xf32> to vector<1x10x1xf32>
    %52 = vector.extract_strided_slice %1 {offsets = [2, 0, 0], sizes = [11, 1, 60], strides = [1, 1, 1]} : vector<13x1x62xf32> to vector<11x1x60xf32>
    %53 = vector.broadcast %51 : vector<1x10x1xf32> to vector<11x10x60xf32>
    %54 = vector.broadcast %52 : vector<11x1x60xf32> to vector<11x10x60xf32>
    %55 = arith.mulf %53, %54 : vector<11x10x60xf32>
    %56 = arith.addf %48, %55 : vector<11x10x60xf32>
    %c2_29 = arith.constant 2 : index
    %c1_30 = arith.constant 1 : index
    %c0_31 = arith.constant 0 : index
    %c0_32 = arith.constant 0 : index
    %57 = vector.load %arg2[%c2_29, %c1_30, %c0_31, %c0_32] : memref<3x3x10x1xf32, #tpu.memory_space<vmem>>, vector<1x1x10x1xf32>
    %58 = vector.shape_cast %57 : vector<1x1x10x1xf32> to vector<10x1xf32>
    %59 = vector.shape_cast %58 : vector<10x1xf32> to vector<1x10x1xf32>
    %60 = vector.extract_strided_slice %1 {offsets = [2, 0, 1], sizes = [11, 1, 60], strides = [1, 1, 1]} : vector<13x1x62xf32> to vector<11x1x60xf32>
    %61 = vector.broadcast %59 : vector<1x10x1xf32> to vector<11x10x60xf32>
    %62 = vector.broadcast %60 : vector<11x1x60xf32> to vector<11x10x60xf32>
    %63 = arith.mulf %61, %62 : vector<11x10x60xf32>
    %64 = arith.addf %56, %63 : vector<11x10x60xf32>
    %c2_33 = arith.constant 2 : index
    %c2_34 = arith.constant 2 : index
    %c0_35 = arith.constant 0 : index
    %c0_36 = arith.constant 0 : index
    %65 = vector.load %arg2[%c2_33, %c2_34, %c0_35, %c0_36] : memref<3x3x10x1xf32, #tpu.memory_space<vmem>>, vector<1x1x10x1xf32>
    %66 = vector.shape_cast %65 : vector<1x1x10x1xf32> to vector<10x1xf32>
    %67 = vector.shape_cast %66 : vector<10x1xf32> to vector<1x10x1xf32>
    %68 = vector.extract_strided_slice %1 {offsets = [2, 0, 2], sizes = [11, 1, 60], strides = [1, 1, 1]} : vector<13x1x62xf32> to vector<11x1x60xf32>
    %69 = vector.broadcast %67 : vector<1x10x1xf32> to vector<11x10x60xf32>
    %70 = vector.broadcast %68 : vector<11x1x60xf32> to vector<11x10x60xf32>
    %71 = arith.mulf %69, %70 : vector<11x10x60xf32>
    %72 = arith.addf %64, %71 : vector<11x10x60xf32>
    %c0_37 = arith.constant 0 : index
    %c0_38 = arith.constant 0 : index
    %73 = vector.load %arg3[%c0_37, %c0_38] : memref<10x1xf32, #tpu.memory_space<vmem>>, vector<10x1xf32>
    %74 = vector.shape_cast %73 : vector<10x1xf32> to vector<1x10x1xf32>
    %75 = vector.broadcast %74 : vector<1x10x1xf32> to vector<11x10x60xf32>
    %76 = arith.addf %72, %75 : vector<11x10x60xf32>
    %cst = arith.constant 0.000000e+00 : f32
    %77 = vector.broadcast %cst : f32 to vector<11x10x60xf32>
    %78 = arith.cmpf ogt, %76, %77 : vector<11x10x60xf32>
    %c0_39 = arith.constant 0 : index
    %c0_40 = arith.constant 0 : index
    %79 = vector.load %arg4[%c0_39, %c0_40] : memref<10x1xf32, #tpu.memory_space<vmem>>, vector<10x1xf32>
    %80 = vector.shape_cast %79 : vector<10x1xf32> to vector<1x10x1xf32>
    %81 = vector.broadcast %80 : vector<1x10x1xf32> to vector<11x10x60xf32>
    %82 = arith.mulf %81, %76 : vector<11x10x60xf32>
    %83 = arith.select %78, %76, %82 : vector<11x10x60xi1>, vector<11x10x60xf32>
    %84 = tpu.iota {dimensions = array<i32: 2>} : vector<11x10x60xi32>
    %c56_i32 = arith.constant 56 : i32
    %85 = vector.broadcast %c56_i32 : i32 to vector<11x10x60xi32>
    %86 = arith.cmpi slt, %84, %85 : vector<11x10x60xi32>
    %cst_41 = arith.constant -1.000000e+30 : f32
    %87 = vector.broadcast %cst_41 : f32 to vector<11x10x60xf32>
    %88 = arith.select %86, %83, %87 : vector<11x10x60xi1>, vector<11x10x60xf32>
    %89 = vector.extract_strided_slice %88 {offsets = [0, 0, 0], sizes = [1, 10, 60], strides = [1, 1, 1]} : vector<11x10x60xf32> to vector<1x10x60xf32>
    %90 = vector.shape_cast %89 : vector<1x10x60xf32> to vector<10x60xf32>
    %91 = vector.extract_strided_slice %88 {offsets = [1, 0, 0], sizes = [1, 10, 60], strides = [1, 1, 1]} : vector<11x10x60xf32> to vector<1x10x60xf32>
    %92 = vector.shape_cast %91 : vector<1x10x60xf32> to vector<10x60xf32>
    %93 = arith.maximumf %90, %92 : vector<10x60xf32>
    %94 = vector.extract_strided_slice %93 {offsets = [0, 0], sizes = [10, 56], strides = [1, 1]} : vector<10x60xf32> to vector<10x56xf32>
    %95 = vector.extract_strided_slice %93 {offsets = [0, 1], sizes = [10, 56], strides = [1, 1]} : vector<10x60xf32> to vector<10x56xf32>
    %96 = arith.maximumf %94, %95 : vector<10x56xf32>
    %97 = vector.extract_strided_slice %93 {offsets = [0, 2], sizes = [10, 56], strides = [1, 1]} : vector<10x60xf32> to vector<10x56xf32>
    %98 = arith.maximumf %96, %97 : vector<10x56xf32>
    %99 = vector.extract_strided_slice %93 {offsets = [0, 3], sizes = [10, 56], strides = [1, 1]} : vector<10x60xf32> to vector<10x56xf32>
    %100 = arith.maximumf %98, %99 : vector<10x56xf32>
    %101 = vector.extract_strided_slice %93 {offsets = [0, 4], sizes = [10, 56], strides = [1, 1]} : vector<10x60xf32> to vector<10x56xf32>
    %102 = arith.maximumf %100, %101 : vector<10x56xf32>
    %c0_42 = arith.constant 0 : index
    %c0_43 = arith.constant 0 : index
    %103 = vector.load %arg5[%c0_42, %c0_43] : memref<56x12xf32, #tpu.memory_space<vmem>>, vector<56x12xf32>
    %cst_44 = arith.constant dense<0.000000e+00> : vector<10x12xf32>
    %104 = tpu.matmul %102, %103, %cst_44 {dimension_numbers = #tpu.dot_dimension_numbers<[1], [0], [0], [1], [0, 0, 1, 1], [], []>} : vector<10x56xf32>, vector<56x12xf32>, vector<10x12xf32> -> vector<10x12xf32>
    %105 = vector.extract_strided_slice %88 {offsets = [2, 0, 0], sizes = [1, 10, 60], strides = [1, 1, 1]} : vector<11x10x60xf32> to vector<1x10x60xf32>
    %106 = vector.shape_cast %105 : vector<1x10x60xf32> to vector<10x60xf32>
    %107 = vector.extract_strided_slice %88 {offsets = [3, 0, 0], sizes = [1, 10, 60], strides = [1, 1, 1]} : vector<11x10x60xf32> to vector<1x10x60xf32>
    %108 = vector.shape_cast %107 : vector<1x10x60xf32> to vector<10x60xf32>
    %109 = arith.maximumf %106, %108 : vector<10x60xf32>
    %110 = vector.extract_strided_slice %109 {offsets = [0, 0], sizes = [10, 56], strides = [1, 1]} : vector<10x60xf32> to vector<10x56xf32>
    %111 = vector.extract_strided_slice %109 {offsets = [0, 1], sizes = [10, 56], strides = [1, 1]} : vector<10x60xf32> to vector<10x56xf32>
    %112 = arith.maximumf %110, %111 : vector<10x56xf32>
    %113 = vector.extract_strided_slice %109 {offsets = [0, 2], sizes = [10, 56], strides = [1, 1]} : vector<10x60xf32> to vector<10x56xf32>
    %114 = arith.maximumf %112, %113 : vector<10x56xf32>
    %115 = vector.extract_strided_slice %109 {offsets = [0, 3], sizes = [10, 56], strides = [1, 1]} : vector<10x60xf32> to vector<10x56xf32>
    %116 = arith.maximumf %114, %115 : vector<10x56xf32>
    %117 = vector.extract_strided_slice %109 {offsets = [0, 4], sizes = [10, 56], strides = [1, 1]} : vector<10x60xf32> to vector<10x56xf32>
    %118 = arith.maximumf %116, %117 : vector<10x56xf32>
    %c0_45 = arith.constant 0 : index
    %c0_46 = arith.constant 0 : index
    %119 = vector.load %arg5[%c0_45, %c0_46] : memref<56x12xf32, #tpu.memory_space<vmem>>, vector<56x12xf32>
    %cst_47 = arith.constant dense<0.000000e+00> : vector<10x12xf32>
    %120 = tpu.matmul %118, %119, %cst_47 {dimension_numbers = #tpu.dot_dimension_numbers<[1], [0], [0], [1], [0, 0, 1, 1], [], []>} : vector<10x56xf32>, vector<56x12xf32>, vector<10x12xf32> -> vector<10x12xf32>
    %121 = vector.extract_strided_slice %88 {offsets = [4, 0, 0], sizes = [1, 10, 60], strides = [1, 1, 1]} : vector<11x10x60xf32> to vector<1x10x60xf32>
    %122 = vector.shape_cast %121 : vector<1x10x60xf32> to vector<10x60xf32>
    %123 = vector.extract_strided_slice %88 {offsets = [5, 0, 0], sizes = [1, 10, 60], strides = [1, 1, 1]} : vector<11x10x60xf32> to vector<1x10x60xf32>
    %124 = vector.shape_cast %123 : vector<1x10x60xf32> to vector<10x60xf32>
    %125 = arith.maximumf %122, %124 : vector<10x60xf32>
    %126 = vector.extract_strided_slice %125 {offsets = [0, 0], sizes = [10, 56], strides = [1, 1]} : vector<10x60xf32> to vector<10x56xf32>
    %127 = vector.extract_strided_slice %125 {offsets = [0, 1], sizes = [10, 56], strides = [1, 1]} : vector<10x60xf32> to vector<10x56xf32>
    %128 = arith.maximumf %126, %127 : vector<10x56xf32>
    %129 = vector.extract_strided_slice %125 {offsets = [0, 2], sizes = [10, 56], strides = [1, 1]} : vector<10x60xf32> to vector<10x56xf32>
    %130 = arith.maximumf %128, %129 : vector<10x56xf32>
    %131 = vector.extract_strided_slice %125 {offsets = [0, 3], sizes = [10, 56], strides = [1, 1]} : vector<10x60xf32> to vector<10x56xf32>
    %132 = arith.maximumf %130, %131 : vector<10x56xf32>
    %133 = vector.extract_strided_slice %125 {offsets = [0, 4], sizes = [10, 56], strides = [1, 1]} : vector<10x60xf32> to vector<10x56xf32>
    %134 = arith.maximumf %132, %133 : vector<10x56xf32>
    %c0_48 = arith.constant 0 : index
    %c0_49 = arith.constant 0 : index
    %135 = vector.load %arg5[%c0_48, %c0_49] : memref<56x12xf32, #tpu.memory_space<vmem>>, vector<56x12xf32>
    %cst_50 = arith.constant dense<0.000000e+00> : vector<10x12xf32>
    %136 = tpu.matmul %134, %135, %cst_50 {dimension_numbers = #tpu.dot_dimension_numbers<[1], [0], [0], [1], [0, 0, 1, 1], [], []>} : vector<10x56xf32>, vector<56x12xf32>, vector<10x12xf32> -> vector<10x12xf32>
    %137 = vector.extract_strided_slice %88 {offsets = [6, 0, 0], sizes = [1, 10, 60], strides = [1, 1, 1]} : vector<11x10x60xf32> to vector<1x10x60xf32>
    %138 = vector.shape_cast %137 : vector<1x10x60xf32> to vector<10x60xf32>
    %139 = vector.extract_strided_slice %88 {offsets = [7, 0, 0], sizes = [1, 10, 60], strides = [1, 1, 1]} : vector<11x10x60xf32> to vector<1x10x60xf32>
    %140 = vector.shape_cast %139 : vector<1x10x60xf32> to vector<10x60xf32>
    %141 = arith.maximumf %138, %140 : vector<10x60xf32>
    %142 = vector.extract_strided_slice %141 {offsets = [0, 0], sizes = [10, 56], strides = [1, 1]} : vector<10x60xf32> to vector<10x56xf32>
    %143 = vector.extract_strided_slice %141 {offsets = [0, 1], sizes = [10, 56], strides = [1, 1]} : vector<10x60xf32> to vector<10x56xf32>
    %144 = arith.maximumf %142, %143 : vector<10x56xf32>
    %145 = vector.extract_strided_slice %141 {offsets = [0, 2], sizes = [10, 56], strides = [1, 1]} : vector<10x60xf32> to vector<10x56xf32>
    %146 = arith.maximumf %144, %145 : vector<10x56xf32>
    %147 = vector.extract_strided_slice %141 {offsets = [0, 3], sizes = [10, 56], strides = [1, 1]} : vector<10x60xf32> to vector<10x56xf32>
    %148 = arith.maximumf %146, %147 : vector<10x56xf32>
    %149 = vector.extract_strided_slice %141 {offsets = [0, 4], sizes = [10, 56], strides = [1, 1]} : vector<10x60xf32> to vector<10x56xf32>
    %150 = arith.maximumf %148, %149 : vector<10x56xf32>
    %c0_51 = arith.constant 0 : index
    %c0_52 = arith.constant 0 : index
    %151 = vector.load %arg5[%c0_51, %c0_52] : memref<56x12xf32, #tpu.memory_space<vmem>>, vector<56x12xf32>
    %cst_53 = arith.constant dense<0.000000e+00> : vector<10x12xf32>
    %152 = tpu.matmul %150, %151, %cst_53 {dimension_numbers = #tpu.dot_dimension_numbers<[1], [0], [0], [1], [0, 0, 1, 1], [], []>} : vector<10x56xf32>, vector<56x12xf32>, vector<10x12xf32> -> vector<10x12xf32>
    %153 = vector.extract_strided_slice %88 {offsets = [8, 0, 0], sizes = [1, 10, 60], strides = [1, 1, 1]} : vector<11x10x60xf32> to vector<1x10x60xf32>
    %154 = vector.shape_cast %153 : vector<1x10x60xf32> to vector<10x60xf32>
    %155 = vector.extract_strided_slice %88 {offsets = [9, 0, 0], sizes = [1, 10, 60], strides = [1, 1, 1]} : vector<11x10x60xf32> to vector<1x10x60xf32>
    %156 = vector.shape_cast %155 : vector<1x10x60xf32> to vector<10x60xf32>
    %157 = arith.maximumf %154, %156 : vector<10x60xf32>
    %158 = vector.extract_strided_slice %157 {offsets = [0, 0], sizes = [10, 56], strides = [1, 1]} : vector<10x60xf32> to vector<10x56xf32>
    %159 = vector.extract_strided_slice %157 {offsets = [0, 1], sizes = [10, 56], strides = [1, 1]} : vector<10x60xf32> to vector<10x56xf32>
    %160 = arith.maximumf %158, %159 : vector<10x56xf32>
    %161 = vector.extract_strided_slice %157 {offsets = [0, 2], sizes = [10, 56], strides = [1, 1]} : vector<10x60xf32> to vector<10x56xf32>
    %162 = arith.maximumf %160, %161 : vector<10x56xf32>
    %163 = vector.extract_strided_slice %157 {offsets = [0, 3], sizes = [10, 56], strides = [1, 1]} : vector<10x60xf32> to vector<10x56xf32>
    %164 = arith.maximumf %162, %163 : vector<10x56xf32>
    %165 = vector.extract_strided_slice %157 {offsets = [0, 4], sizes = [10, 56], strides = [1, 1]} : vector<10x60xf32> to vector<10x56xf32>
    %166 = arith.maximumf %164, %165 : vector<10x56xf32>
    %c0_54 = arith.constant 0 : index
    %c0_55 = arith.constant 0 : index
    %167 = vector.load %arg5[%c0_54, %c0_55] : memref<56x12xf32, #tpu.memory_space<vmem>>, vector<56x12xf32>
    %cst_56 = arith.constant dense<0.000000e+00> : vector<10x12xf32>
    %168 = tpu.matmul %166, %167, %cst_56 {dimension_numbers = #tpu.dot_dimension_numbers<[1], [0], [0], [1], [0, 0, 1, 1], [], []>} : vector<10x56xf32>, vector<56x12xf32>, vector<10x12xf32> -> vector<10x12xf32>
    %169 = vector.extract_strided_slice %88 {offsets = [10, 0, 0], sizes = [1, 10, 60], strides = [1, 1, 1]} : vector<11x10x60xf32> to vector<1x10x60xf32>
    %170 = vector.shape_cast %169 : vector<1x10x60xf32> to vector<10x60xf32>
    %171 = vector.extract_strided_slice %170 {offsets = [0, 0], sizes = [10, 56], strides = [1, 1]} : vector<10x60xf32> to vector<10x56xf32>
    %172 = vector.extract_strided_slice %170 {offsets = [0, 1], sizes = [10, 56], strides = [1, 1]} : vector<10x60xf32> to vector<10x56xf32>
    %173 = arith.maximumf %171, %172 : vector<10x56xf32>
    %174 = vector.extract_strided_slice %170 {offsets = [0, 2], sizes = [10, 56], strides = [1, 1]} : vector<10x60xf32> to vector<10x56xf32>
    %175 = arith.maximumf %173, %174 : vector<10x56xf32>
    %176 = vector.extract_strided_slice %170 {offsets = [0, 3], sizes = [10, 56], strides = [1, 1]} : vector<10x60xf32> to vector<10x56xf32>
    %177 = arith.maximumf %175, %176 : vector<10x56xf32>
    %178 = vector.extract_strided_slice %170 {offsets = [0, 4], sizes = [10, 56], strides = [1, 1]} : vector<10x60xf32> to vector<10x56xf32>
    %179 = arith.maximumf %177, %178 : vector<10x56xf32>
    %c0_57 = arith.constant 0 : index
    %c0_58 = arith.constant 0 : index
    %180 = vector.load %arg5[%c0_57, %c0_58] : memref<56x12xf32, #tpu.memory_space<vmem>>, vector<56x12xf32>
    %cst_59 = arith.constant dense<0.000000e+00> : vector<10x12xf32>
    %181 = tpu.matmul %179, %180, %cst_59 {dimension_numbers = #tpu.dot_dimension_numbers<[1], [0], [0], [1], [0, 0, 1, 1], [], []>} : vector<10x56xf32>, vector<56x12xf32>, vector<10x12xf32> -> vector<10x12xf32>
    %182 = vector.extract_strided_slice %104 {offsets = [0, 0], sizes = [10, 8], strides = [1, 1]} : vector<10x12xf32> to vector<10x8xf32>
    %183 = vector.extract_strided_slice %104 {offsets = [0, 1], sizes = [10, 8], strides = [1, 1]} : vector<10x12xf32> to vector<10x8xf32>
    %184 = vector.extract_strided_slice %104 {offsets = [0, 2], sizes = [10, 8], strides = [1, 1]} : vector<10x12xf32> to vector<10x8xf32>
    %185 = vector.extract_strided_slice %104 {offsets = [0, 3], sizes = [10, 8], strides = [1, 1]} : vector<10x12xf32> to vector<10x8xf32>
    %186 = vector.extract_strided_slice %104 {offsets = [0, 4], sizes = [10, 8], strides = [1, 1]} : vector<10x12xf32> to vector<10x8xf32>
    %187 = vector.extract_strided_slice %120 {offsets = [0, 0], sizes = [10, 8], strides = [1, 1]} : vector<10x12xf32> to vector<10x8xf32>
    %188 = vector.extract_strided_slice %120 {offsets = [0, 1], sizes = [10, 8], strides = [1, 1]} : vector<10x12xf32> to vector<10x8xf32>
    %189 = vector.extract_strided_slice %120 {offsets = [0, 2], sizes = [10, 8], strides = [1, 1]} : vector<10x12xf32> to vector<10x8xf32>
    %190 = vector.extract_strided_slice %120 {offsets = [0, 3], sizes = [10, 8], strides = [1, 1]} : vector<10x12xf32> to vector<10x8xf32>
    %191 = vector.extract_strided_slice %120 {offsets = [0, 4], sizes = [10, 8], strides = [1, 1]} : vector<10x12xf32> to vector<10x8xf32>
    %192 = vector.extract_strided_slice %136 {offsets = [0, 0], sizes = [10, 8], strides = [1, 1]} : vector<10x12xf32> to vector<10x8xf32>
    %193 = vector.extract_strided_slice %136 {offsets = [0, 1], sizes = [10, 8], strides = [1, 1]} : vector<10x12xf32> to vector<10x8xf32>
    %194 = vector.extract_strided_slice %136 {offsets = [0, 2], sizes = [10, 8], strides = [1, 1]} : vector<10x12xf32> to vector<10x8xf32>
    %195 = vector.extract_strided_slice %136 {offsets = [0, 3], sizes = [10, 8], strides = [1, 1]} : vector<10x12xf32> to vector<10x8xf32>
    %196 = vector.extract_strided_slice %136 {offsets = [0, 4], sizes = [10, 8], strides = [1, 1]} : vector<10x12xf32> to vector<10x8xf32>
    %197 = tpu.concatenate %182, %183, %184, %185, %186, %187, %188, %189, %190, %191, %192, %193, %194, %195, %196 in 0 : vector<10x8xf32>, vector<10x8xf32>, vector<10x8xf32>, vector<10x8xf32>, vector<10x8xf32>, vector<10x8xf32>, vector<10x8xf32>, vector<10x8xf32>, vector<10x8xf32>, vector<10x8xf32>, vector<10x8xf32>, vector<10x8xf32>, vector<10x8xf32>, vector<10x8xf32>, vector<10x8xf32> -> vector<150x8xf32>
    %c0_60 = arith.constant 0 : index
    %c0_61 = arith.constant 0 : index
    %198 = vector.load %arg6[%c0_60, %c0_61] : memref<16x150xf32, #tpu.memory_space<vmem>>, vector<16x150xf32>
    %cst_62 = arith.constant dense<0.000000e+00> : vector<16x8xf32>
    %199 = tpu.matmul %198, %197, %cst_62 {dimension_numbers = #tpu.dot_dimension_numbers<[1], [0], [0], [1], [0, 0, 1, 1], [], []>} : vector<16x150xf32>, vector<150x8xf32>, vector<16x8xf32> -> vector<16x8xf32>
    %c0_63 = arith.constant 0 : index
    %c0_64 = arith.constant 0 : index
    %200 = vector.load %arg7[%c0_63, %c0_64] : memref<16x1xf32, #tpu.memory_space<vmem>>, vector<16x1xf32>
    %201 = vector.broadcast %200 : vector<16x1xf32> to vector<16x8xf32>
    %202 = arith.addf %199, %201 : vector<16x8xf32>
    %cst_65 = arith.constant 0.000000e+00 : f32
    %203 = vector.broadcast %cst_65 : f32 to vector<16x8xf32>
    %204 = arith.cmpf ogt, %202, %203 : vector<16x8xf32>
    %c0_66 = arith.constant 0 : index
    %c0_67 = arith.constant 0 : index
    %205 = vector.load %arg8[%c0_66, %c0_67] : memref<16x1xf32, #tpu.memory_space<vmem>>, vector<16x1xf32>
    %206 = vector.broadcast %205 : vector<16x1xf32> to vector<16x8xf32>
    %207 = arith.mulf %206, %202 : vector<16x8xf32>
    %208 = arith.select %204, %202, %207 : vector<16x8xi1>, vector<16x8xf32>
    %209 = vector.extract_strided_slice %120 {offsets = [0, 0], sizes = [10, 8], strides = [1, 1]} : vector<10x12xf32> to vector<10x8xf32>
    %210 = vector.extract_strided_slice %120 {offsets = [0, 1], sizes = [10, 8], strides = [1, 1]} : vector<10x12xf32> to vector<10x8xf32>
    %211 = vector.extract_strided_slice %120 {offsets = [0, 2], sizes = [10, 8], strides = [1, 1]} : vector<10x12xf32> to vector<10x8xf32>
    %212 = vector.extract_strided_slice %120 {offsets = [0, 3], sizes = [10, 8], strides = [1, 1]} : vector<10x12xf32> to vector<10x8xf32>
    %213 = vector.extract_strided_slice %120 {offsets = [0, 4], sizes = [10, 8], strides = [1, 1]} : vector<10x12xf32> to vector<10x8xf32>
    %214 = vector.extract_strided_slice %136 {offsets = [0, 0], sizes = [10, 8], strides = [1, 1]} : vector<10x12xf32> to vector<10x8xf32>
    %215 = vector.extract_strided_slice %136 {offsets = [0, 1], sizes = [10, 8], strides = [1, 1]} : vector<10x12xf32> to vector<10x8xf32>
    %216 = vector.extract_strided_slice %136 {offsets = [0, 2], sizes = [10, 8], strides = [1, 1]} : vector<10x12xf32> to vector<10x8xf32>
    %217 = vector.extract_strided_slice %136 {offsets = [0, 3], sizes = [10, 8], strides = [1, 1]} : vector<10x12xf32> to vector<10x8xf32>
    %218 = vector.extract_strided_slice %136 {offsets = [0, 4], sizes = [10, 8], strides = [1, 1]} : vector<10x12xf32> to vector<10x8xf32>
    %219 = vector.extract_strided_slice %152 {offsets = [0, 0], sizes = [10, 8], strides = [1, 1]} : vector<10x12xf32> to vector<10x8xf32>
    %220 = vector.extract_strided_slice %152 {offsets = [0, 1], sizes = [10, 8], strides = [1, 1]} : vector<10x12xf32> to vector<10x8xf32>
    %221 = vector.extract_strided_slice %152 {offsets = [0, 2], sizes = [10, 8], strides = [1, 1]} : vector<10x12xf32> to vector<10x8xf32>
    %222 = vector.extract_strided_slice %152 {offsets = [0, 3], sizes = [10, 8], strides = [1, 1]} : vector<10x12xf32> to vector<10x8xf32>
    %223 = vector.extract_strided_slice %152 {offsets = [0, 4], sizes = [10, 8], strides = [1, 1]} : vector<10x12xf32> to vector<10x8xf32>
    %224 = tpu.concatenate %209, %210, %211, %212, %213, %214, %215, %216, %217, %218, %219, %220, %221, %222, %223 in 0 : vector<10x8xf32>, vector<10x8xf32>, vector<10x8xf32>, vector<10x8xf32>, vector<10x8xf32>, vector<10x8xf32>, vector<10x8xf32>, vector<10x8xf32>, vector<10x8xf32>, vector<10x8xf32>, vector<10x8xf32>, vector<10x8xf32>, vector<10x8xf32>, vector<10x8xf32>, vector<10x8xf32> -> vector<150x8xf32>
    %c0_68 = arith.constant 0 : index
    %c0_69 = arith.constant 0 : index
    %225 = vector.load %arg6[%c0_68, %c0_69] : memref<16x150xf32, #tpu.memory_space<vmem>>, vector<16x150xf32>
    %cst_70 = arith.constant dense<0.000000e+00> : vector<16x8xf32>
    %226 = tpu.matmul %225, %224, %cst_70 {dimension_numbers = #tpu.dot_dimension_numbers<[1], [0], [0], [1], [0, 0, 1, 1], [], []>} : vector<16x150xf32>, vector<150x8xf32>, vector<16x8xf32> -> vector<16x8xf32>
    %c0_71 = arith.constant 0 : index
    %c0_72 = arith.constant 0 : index
    %227 = vector.load %arg7[%c0_71, %c0_72] : memref<16x1xf32, #tpu.memory_space<vmem>>, vector<16x1xf32>
    %228 = vector.broadcast %227 : vector<16x1xf32> to vector<16x8xf32>
    %229 = arith.addf %226, %228 : vector<16x8xf32>
    %cst_73 = arith.constant 0.000000e+00 : f32
    %230 = vector.broadcast %cst_73 : f32 to vector<16x8xf32>
    %231 = arith.cmpf ogt, %229, %230 : vector<16x8xf32>
    %c0_74 = arith.constant 0 : index
    %c0_75 = arith.constant 0 : index
    %232 = vector.load %arg8[%c0_74, %c0_75] : memref<16x1xf32, #tpu.memory_space<vmem>>, vector<16x1xf32>
    %233 = vector.broadcast %232 : vector<16x1xf32> to vector<16x8xf32>
    %234 = arith.mulf %233, %229 : vector<16x8xf32>
    %235 = arith.select %231, %229, %234 : vector<16x8xi1>, vector<16x8xf32>
    %236 = vector.extract_strided_slice %136 {offsets = [0, 0], sizes = [10, 8], strides = [1, 1]} : vector<10x12xf32> to vector<10x8xf32>
    %237 = vector.extract_strided_slice %136 {offsets = [0, 1], sizes = [10, 8], strides = [1, 1]} : vector<10x12xf32> to vector<10x8xf32>
    %238 = vector.extract_strided_slice %136 {offsets = [0, 2], sizes = [10, 8], strides = [1, 1]} : vector<10x12xf32> to vector<10x8xf32>
    %239 = vector.extract_strided_slice %136 {offsets = [0, 3], sizes = [10, 8], strides = [1, 1]} : vector<10x12xf32> to vector<10x8xf32>
    %240 = vector.extract_strided_slice %136 {offsets = [0, 4], sizes = [10, 8], strides = [1, 1]} : vector<10x12xf32> to vector<10x8xf32>
    %241 = vector.extract_strided_slice %152 {offsets = [0, 0], sizes = [10, 8], strides = [1, 1]} : vector<10x12xf32> to vector<10x8xf32>
    %242 = vector.extract_strided_slice %152 {offsets = [0, 1], sizes = [10, 8], strides = [1, 1]} : vector<10x12xf32> to vector<10x8xf32>
    %243 = vector.extract_strided_slice %152 {offsets = [0, 2], sizes = [10, 8], strides = [1, 1]} : vector<10x12xf32> to vector<10x8xf32>
    %244 = vector.extract_strided_slice %152 {offsets = [0, 3], sizes = [10, 8], strides = [1, 1]} : vector<10x12xf32> to vector<10x8xf32>
    %245 = vector.extract_strided_slice %152 {offsets = [0, 4], sizes = [10, 8], strides = [1, 1]} : vector<10x12xf32> to vector<10x8xf32>
    %246 = vector.extract_strided_slice %168 {offsets = [0, 0], sizes = [10, 8], strides = [1, 1]} : vector<10x12xf32> to vector<10x8xf32>
    %247 = vector.extract_strided_slice %168 {offsets = [0, 1], sizes = [10, 8], strides = [1, 1]} : vector<10x12xf32> to vector<10x8xf32>
    %248 = vector.extract_strided_slice %168 {offsets = [0, 2], sizes = [10, 8], strides = [1, 1]} : vector<10x12xf32> to vector<10x8xf32>
    %249 = vector.extract_strided_slice %168 {offsets = [0, 3], sizes = [10, 8], strides = [1, 1]} : vector<10x12xf32> to vector<10x8xf32>
    %250 = vector.extract_strided_slice %168 {offsets = [0, 4], sizes = [10, 8], strides = [1, 1]} : vector<10x12xf32> to vector<10x8xf32>
    %251 = tpu.concatenate %236, %237, %238, %239, %240, %241, %242, %243, %244, %245, %246, %247, %248, %249, %250 in 0 : vector<10x8xf32>, vector<10x8xf32>, vector<10x8xf32>, vector<10x8xf32>, vector<10x8xf32>, vector<10x8xf32>, vector<10x8xf32>, vector<10x8xf32>, vector<10x8xf32>, vector<10x8xf32>, vector<10x8xf32>, vector<10x8xf32>, vector<10x8xf32>, vector<10x8xf32>, vector<10x8xf32> -> vector<150x8xf32>
    %c0_76 = arith.constant 0 : index
    %c0_77 = arith.constant 0 : index
    %252 = vector.load %arg6[%c0_76, %c0_77] : memref<16x150xf32, #tpu.memory_space<vmem>>, vector<16x150xf32>
    %cst_78 = arith.constant dense<0.000000e+00> : vector<16x8xf32>
    %253 = tpu.matmul %252, %251, %cst_78 {dimension_numbers = #tpu.dot_dimension_numbers<[1], [0], [0], [1], [0, 0, 1, 1], [], []>} : vector<16x150xf32>, vector<150x8xf32>, vector<16x8xf32> -> vector<16x8xf32>
    %c0_79 = arith.constant 0 : index
    %c0_80 = arith.constant 0 : index
    %254 = vector.load %arg7[%c0_79, %c0_80] : memref<16x1xf32, #tpu.memory_space<vmem>>, vector<16x1xf32>
    %255 = vector.broadcast %254 : vector<16x1xf32> to vector<16x8xf32>
    %256 = arith.addf %253, %255 : vector<16x8xf32>
    %cst_81 = arith.constant 0.000000e+00 : f32
    %257 = vector.broadcast %cst_81 : f32 to vector<16x8xf32>
    %258 = arith.cmpf ogt, %256, %257 : vector<16x8xf32>
    %c0_82 = arith.constant 0 : index
    %c0_83 = arith.constant 0 : index
    %259 = vector.load %arg8[%c0_82, %c0_83] : memref<16x1xf32, #tpu.memory_space<vmem>>, vector<16x1xf32>
    %260 = vector.broadcast %259 : vector<16x1xf32> to vector<16x8xf32>
    %261 = arith.mulf %260, %256 : vector<16x8xf32>
    %262 = arith.select %258, %256, %261 : vector<16x8xi1>, vector<16x8xf32>
    %263 = vector.extract_strided_slice %152 {offsets = [0, 0], sizes = [10, 8], strides = [1, 1]} : vector<10x12xf32> to vector<10x8xf32>
    %264 = vector.extract_strided_slice %152 {offsets = [0, 1], sizes = [10, 8], strides = [1, 1]} : vector<10x12xf32> to vector<10x8xf32>
    %265 = vector.extract_strided_slice %152 {offsets = [0, 2], sizes = [10, 8], strides = [1, 1]} : vector<10x12xf32> to vector<10x8xf32>
    %266 = vector.extract_strided_slice %152 {offsets = [0, 3], sizes = [10, 8], strides = [1, 1]} : vector<10x12xf32> to vector<10x8xf32>
    %267 = vector.extract_strided_slice %152 {offsets = [0, 4], sizes = [10, 8], strides = [1, 1]} : vector<10x12xf32> to vector<10x8xf32>
    %268 = vector.extract_strided_slice %168 {offsets = [0, 0], sizes = [10, 8], strides = [1, 1]} : vector<10x12xf32> to vector<10x8xf32>
    %269 = vector.extract_strided_slice %168 {offsets = [0, 1], sizes = [10, 8], strides = [1, 1]} : vector<10x12xf32> to vector<10x8xf32>
    %270 = vector.extract_strided_slice %168 {offsets = [0, 2], sizes = [10, 8], strides = [1, 1]} : vector<10x12xf32> to vector<10x8xf32>
    %271 = vector.extract_strided_slice %168 {offsets = [0, 3], sizes = [10, 8], strides = [1, 1]} : vector<10x12xf32> to vector<10x8xf32>
    %272 = vector.extract_strided_slice %168 {offsets = [0, 4], sizes = [10, 8], strides = [1, 1]} : vector<10x12xf32> to vector<10x8xf32>
    %273 = vector.extract_strided_slice %181 {offsets = [0, 0], sizes = [10, 8], strides = [1, 1]} : vector<10x12xf32> to vector<10x8xf32>
    %274 = vector.extract_strided_slice %181 {offsets = [0, 1], sizes = [10, 8], strides = [1, 1]} : vector<10x12xf32> to vector<10x8xf32>
    %275 = vector.extract_strided_slice %181 {offsets = [0, 2], sizes = [10, 8], strides = [1, 1]} : vector<10x12xf32> to vector<10x8xf32>
    %276 = vector.extract_strided_slice %181 {offsets = [0, 3], sizes = [10, 8], strides = [1, 1]} : vector<10x12xf32> to vector<10x8xf32>
    %277 = vector.extract_strided_slice %181 {offsets = [0, 4], sizes = [10, 8], strides = [1, 1]} : vector<10x12xf32> to vector<10x8xf32>
    %278 = tpu.concatenate %263, %264, %265, %266, %267, %268, %269, %270, %271, %272, %273, %274, %275, %276, %277 in 0 : vector<10x8xf32>, vector<10x8xf32>, vector<10x8xf32>, vector<10x8xf32>, vector<10x8xf32>, vector<10x8xf32>, vector<10x8xf32>, vector<10x8xf32>, vector<10x8xf32>, vector<10x8xf32>, vector<10x8xf32>, vector<10x8xf32>, vector<10x8xf32>, vector<10x8xf32>, vector<10x8xf32> -> vector<150x8xf32>
    %c0_84 = arith.constant 0 : index
    %c0_85 = arith.constant 0 : index
    %279 = vector.load %arg6[%c0_84, %c0_85] : memref<16x150xf32, #tpu.memory_space<vmem>>, vector<16x150xf32>
    %cst_86 = arith.constant dense<0.000000e+00> : vector<16x8xf32>
    %280 = tpu.matmul %279, %278, %cst_86 {dimension_numbers = #tpu.dot_dimension_numbers<[1], [0], [0], [1], [0, 0, 1, 1], [], []>} : vector<16x150xf32>, vector<150x8xf32>, vector<16x8xf32> -> vector<16x8xf32>
    %c0_87 = arith.constant 0 : index
    %c0_88 = arith.constant 0 : index
    %281 = vector.load %arg7[%c0_87, %c0_88] : memref<16x1xf32, #tpu.memory_space<vmem>>, vector<16x1xf32>
    %282 = vector.broadcast %281 : vector<16x1xf32> to vector<16x8xf32>
    %283 = arith.addf %280, %282 : vector<16x8xf32>
    %cst_89 = arith.constant 0.000000e+00 : f32
    %284 = vector.broadcast %cst_89 : f32 to vector<16x8xf32>
    %285 = arith.cmpf ogt, %283, %284 : vector<16x8xf32>
    %c0_90 = arith.constant 0 : index
    %c0_91 = arith.constant 0 : index
    %286 = vector.load %arg8[%c0_90, %c0_91] : memref<16x1xf32, #tpu.memory_space<vmem>>, vector<16x1xf32>
    %287 = vector.broadcast %286 : vector<16x1xf32> to vector<16x8xf32>
    %288 = arith.mulf %287, %283 : vector<16x8xf32>
    %289 = arith.select %285, %283, %288 : vector<16x8xi1>, vector<16x8xf32>
    %290 = vector.extract_strided_slice %208 {offsets = [0, 0], sizes = [16, 4], strides = [1, 1]} : vector<16x8xf32> to vector<16x4xf32>
    %291 = vector.extract_strided_slice %208 {offsets = [0, 1], sizes = [16, 4], strides = [1, 1]} : vector<16x8xf32> to vector<16x4xf32>
    %292 = vector.extract_strided_slice %208 {offsets = [0, 2], sizes = [16, 4], strides = [1, 1]} : vector<16x8xf32> to vector<16x4xf32>
    %293 = vector.extract_strided_slice %208 {offsets = [0, 3], sizes = [16, 4], strides = [1, 1]} : vector<16x8xf32> to vector<16x4xf32>
    %294 = vector.extract_strided_slice %208 {offsets = [0, 4], sizes = [16, 4], strides = [1, 1]} : vector<16x8xf32> to vector<16x4xf32>
    %295 = vector.extract_strided_slice %235 {offsets = [0, 0], sizes = [16, 4], strides = [1, 1]} : vector<16x8xf32> to vector<16x4xf32>
    %296 = vector.extract_strided_slice %235 {offsets = [0, 1], sizes = [16, 4], strides = [1, 1]} : vector<16x8xf32> to vector<16x4xf32>
    %297 = vector.extract_strided_slice %235 {offsets = [0, 2], sizes = [16, 4], strides = [1, 1]} : vector<16x8xf32> to vector<16x4xf32>
    %298 = vector.extract_strided_slice %235 {offsets = [0, 3], sizes = [16, 4], strides = [1, 1]} : vector<16x8xf32> to vector<16x4xf32>
    %299 = vector.extract_strided_slice %235 {offsets = [0, 4], sizes = [16, 4], strides = [1, 1]} : vector<16x8xf32> to vector<16x4xf32>
    %300 = vector.extract_strided_slice %262 {offsets = [0, 0], sizes = [16, 4], strides = [1, 1]} : vector<16x8xf32> to vector<16x4xf32>
    %301 = vector.extract_strided_slice %262 {offsets = [0, 1], sizes = [16, 4], strides = [1, 1]} : vector<16x8xf32> to vector<16x4xf32>
    %302 = vector.extract_strided_slice %262 {offsets = [0, 2], sizes = [16, 4], strides = [1, 1]} : vector<16x8xf32> to vector<16x4xf32>
    %303 = vector.extract_strided_slice %262 {offsets = [0, 3], sizes = [16, 4], strides = [1, 1]} : vector<16x8xf32> to vector<16x4xf32>
    %304 = vector.extract_strided_slice %262 {offsets = [0, 4], sizes = [16, 4], strides = [1, 1]} : vector<16x8xf32> to vector<16x4xf32>
    %305 = tpu.concatenate %290, %291, %292, %293, %294, %295, %296, %297, %298, %299, %300, %301, %302, %303, %304 in 0 : vector<16x4xf32>, vector<16x4xf32>, vector<16x4xf32>, vector<16x4xf32>, vector<16x4xf32>, vector<16x4xf32>, vector<16x4xf32>, vector<16x4xf32>, vector<16x4xf32>, vector<16x4xf32>, vector<16x4xf32>, vector<16x4xf32>, vector<16x4xf32>, vector<16x4xf32>, vector<16x4xf32> -> vector<240x4xf32>
    %c0_92 = arith.constant 0 : index
    %c0_93 = arith.constant 0 : index
    %306 = vector.load %arg9[%c0_92, %c0_93] : memref<32x240xf32, #tpu.memory_space<vmem>>, vector<32x240xf32>
    %cst_94 = arith.constant dense<0.000000e+00> : vector<32x4xf32>
    %307 = tpu.matmul %306, %305, %cst_94 {dimension_numbers = #tpu.dot_dimension_numbers<[1], [0], [0], [1], [0, 0, 1, 1], [], []>} : vector<32x240xf32>, vector<240x4xf32>, vector<32x4xf32> -> vector<32x4xf32>
    %c0_95 = arith.constant 0 : index
    %c0_96 = arith.constant 0 : index
    %308 = vector.load %arg10[%c0_95, %c0_96] : memref<32x1xf32, #tpu.memory_space<vmem>>, vector<32x1xf32>
    %309 = vector.broadcast %308 : vector<32x1xf32> to vector<32x4xf32>
    %310 = arith.addf %307, %309 : vector<32x4xf32>
    %cst_97 = arith.constant 0.000000e+00 : f32
    %311 = vector.broadcast %cst_97 : f32 to vector<32x4xf32>
    %312 = arith.cmpf ogt, %310, %311 : vector<32x4xf32>
    %c0_98 = arith.constant 0 : index
    %c0_99 = arith.constant 0 : index
    %313 = vector.load %arg11[%c0_98, %c0_99] : memref<32x1xf32, #tpu.memory_space<vmem>>, vector<32x1xf32>
    %314 = vector.broadcast %313 : vector<32x1xf32> to vector<32x4xf32>
    %315 = arith.mulf %314, %310 : vector<32x4xf32>
    %316 = arith.select %312, %310, %315 : vector<32x4xi1>, vector<32x4xf32>
    %c0_100 = arith.constant 0 : index
    %c0_101 = arith.constant 0 : index
    %317 = vector.load %arg12[%c0_100, %c0_101] : memref<2x32xf32, #tpu.memory_space<vmem>>, vector<2x32xf32>
    %cst_102 = arith.constant dense<0.000000e+00> : vector<2x4xf32>
    %318 = tpu.matmul %317, %316, %cst_102 {dimension_numbers = #tpu.dot_dimension_numbers<[1], [0], [0], [1], [0, 0, 1, 1], [], []>} : vector<2x32xf32>, vector<32x4xf32>, vector<2x4xf32> -> vector<2x4xf32>
    %c0_103 = arith.constant 0 : index
    %c0_104 = arith.constant 0 : index
    %319 = vector.load %arg13[%c0_103, %c0_104] : memref<2x1xf32, #tpu.memory_space<vmem>>, vector<2x1xf32>
    %320 = vector.broadcast %319 : vector<2x1xf32> to vector<2x4xf32>
    %321 = arith.addf %318, %320 : vector<2x4xf32>
    %c0_105 = arith.constant 0 : index
    %c0_106 = arith.constant 0 : index
    %322 = vector.load %arg14[%c0_105, %c0_106] : memref<4x32xf32, #tpu.memory_space<vmem>>, vector<4x32xf32>
    %cst_107 = arith.constant dense<0.000000e+00> : vector<4x4xf32>
    %323 = tpu.matmul %322, %316, %cst_107 {dimension_numbers = #tpu.dot_dimension_numbers<[1], [0], [0], [1], [0, 0, 1, 1], [], []>} : vector<4x32xf32>, vector<32x4xf32>, vector<4x4xf32> -> vector<4x4xf32>
    %c0_108 = arith.constant 0 : index
    %c0_109 = arith.constant 0 : index
    %324 = vector.load %arg15[%c0_108, %c0_109] : memref<4x1xf32, #tpu.memory_space<vmem>>, vector<4x1xf32>
    %325 = vector.broadcast %324 : vector<4x1xf32> to vector<4x4xf32>
    %326 = arith.addf %323, %325 : vector<4x4xf32>
    %cst_110 = arith.constant dense<0xFF800000> : vector<4xf32>
    %327 = vector.multi_reduction <maximumf>, %321, %cst_110 [0] : vector<2x4xf32> to vector<4xf32>
    %328 = vector.shape_cast %327 : vector<4xf32> to vector<1x4xf32>
    %329 = vector.broadcast %328 : vector<1x4xf32> to vector<2x4xf32>
    %330 = arith.subf %321, %329 : vector<2x4xf32>
    %331 = math.exp %330 : vector<2x4xf32>
    %cst_111 = arith.constant dense<0.000000e+00> : vector<4xf32>
    %332 = vector.multi_reduction <add>, %331, %cst_111 [0] : vector<2x4xf32> to vector<4xf32>
    %333 = vector.shape_cast %332 : vector<4xf32> to vector<1x4xf32>
    %334 = vector.broadcast %333 : vector<1x4xf32> to vector<2x4xf32>
    %335 = arith.divf %331, %334 : vector<2x4xf32>
    %c0_112 = arith.constant 0 : index
    %c0_113 = arith.constant 0 : index
    %c0_114 = arith.constant 0 : index
    %c0_115 = arith.constant 0 : index
    %336 = vector.load %arg16[%c0_112, %c0_113, %c0_114, %c0_115] : memref<1x4x2x4xf32, #tpu.memory_space<vmem>>, vector<1x4x1x4xf32>
    %337 = vector.shape_cast %336 : vector<1x4x1x4xf32> to vector<4x4xf32>
    %338 = vector.shape_cast %326 : vector<4x4xf32> to vector<1x4x1x4xf32>
    tpu.vector_store %arg16[%c0_112, %c0_113, %c0_114, %c0_115], %338 {strides = array<i32>} : memref<1x4x2x4xf32, #tpu.memory_space<vmem>>, vector<1x4x1x4xf32>,
    %c0_116 = arith.constant 0 : index
    %c0_117 = arith.constant 0 : index
    %c0_118 = arith.constant 0 : index
    %c0_119 = arith.constant 0 : index
    %339 = vector.load %arg17[%c0_116, %c0_117, %c0_118, %c0_119] : memref<1x2x2x4xf32, #tpu.memory_space<vmem>>, vector<1x2x1x4xf32>
    %340 = vector.shape_cast %339 : vector<1x2x1x4xf32> to vector<2x4xf32>
    %341 = vector.shape_cast %335 : vector<2x4xf32> to vector<1x2x1x4xf32>
    tpu.vector_store %arg17[%c0_116, %c0_117, %c0_118, %c0_119], %341 {strides = array<i32>} : memref<1x2x2x4xf32, #tpu.memory_space<vmem>>, vector<1x2x1x4xf32>,
    %342 = vector.extract_strided_slice %235 {offsets = [0, 0], sizes = [16, 4], strides = [1, 1]} : vector<16x8xf32> to vector<16x4xf32>
    %343 = vector.extract_strided_slice %235 {offsets = [0, 1], sizes = [16, 4], strides = [1, 1]} : vector<16x8xf32> to vector<16x4xf32>
    %344 = vector.extract_strided_slice %235 {offsets = [0, 2], sizes = [16, 4], strides = [1, 1]} : vector<16x8xf32> to vector<16x4xf32>
    %345 = vector.extract_strided_slice %235 {offsets = [0, 3], sizes = [16, 4], strides = [1, 1]} : vector<16x8xf32> to vector<16x4xf32>
    %346 = vector.extract_strided_slice %235 {offsets = [0, 4], sizes = [16, 4], strides = [1, 1]} : vector<16x8xf32> to vector<16x4xf32>
    %347 = vector.extract_strided_slice %262 {offsets = [0, 0], sizes = [16, 4], strides = [1, 1]} : vector<16x8xf32> to vector<16x4xf32>
    %348 = vector.extract_strided_slice %262 {offsets = [0, 1], sizes = [16, 4], strides = [1, 1]} : vector<16x8xf32> to vector<16x4xf32>
    %349 = vector.extract_strided_slice %262 {offsets = [0, 2], sizes = [16, 4], strides = [1, 1]} : vector<16x8xf32> to vector<16x4xf32>
    %350 = vector.extract_strided_slice %262 {offsets = [0, 3], sizes = [16, 4], strides = [1, 1]} : vector<16x8xf32> to vector<16x4xf32>
    %351 = vector.extract_strided_slice %262 {offsets = [0, 4], sizes = [16, 4], strides = [1, 1]} : vector<16x8xf32> to vector<16x4xf32>
    %352 = vector.extract_strided_slice %289 {offsets = [0, 0], sizes = [16, 4], strides = [1, 1]} : vector<16x8xf32> to vector<16x4xf32>
    %353 = vector.extract_strided_slice %289 {offsets = [0, 1], sizes = [16, 4], strides = [1, 1]} : vector<16x8xf32> to vector<16x4xf32>
    %354 = vector.extract_strided_slice %289 {offsets = [0, 2], sizes = [16, 4], strides = [1, 1]} : vector<16x8xf32> to vector<16x4xf32>
    %355 = vector.extract_strided_slice %289 {offsets = [0, 3], sizes = [16, 4], strides = [1, 1]} : vector<16x8xf32> to vector<16x4xf32>
    %356 = vector.extract_strided_slice %289 {offsets = [0, 4], sizes = [16, 4], strides = [1, 1]} : vector<16x8xf32> to vector<16x4xf32>
    %357 = tpu.concatenate %342, %343, %344, %345, %346, %347, %348, %349, %350, %351, %352, %353, %354, %355, %356 in 0 : vector<16x4xf32>, vector<16x4xf32>, vector<16x4xf32>, vector<16x4xf32>, vector<16x4xf32>, vector<16x4xf32>, vector<16x4xf32>, vector<16x4xf32>, vector<16x4xf32>, vector<16x4xf32>, vector<16x4xf32>, vector<16x4xf32>, vector<16x4xf32>, vector<16x4xf32>, vector<16x4xf32> -> vector<240x4xf32>
    %c0_120 = arith.constant 0 : index
    %c0_121 = arith.constant 0 : index
    %358 = vector.load %arg9[%c0_120, %c0_121] : memref<32x240xf32, #tpu.memory_space<vmem>>, vector<32x240xf32>
    %cst_122 = arith.constant dense<0.000000e+00> : vector<32x4xf32>
    %359 = tpu.matmul %358, %357, %cst_122 {dimension_numbers = #tpu.dot_dimension_numbers<[1], [0], [0], [1], [0, 0, 1, 1], [], []>} : vector<32x240xf32>, vector<240x4xf32>, vector<32x4xf32> -> vector<32x4xf32>
    %c0_123 = arith.constant 0 : index
    %c0_124 = arith.constant 0 : index
    %360 = vector.load %arg10[%c0_123, %c0_124] : memref<32x1xf32, #tpu.memory_space<vmem>>, vector<32x1xf32>
    %361 = vector.broadcast %360 : vector<32x1xf32> to vector<32x4xf32>
    %362 = arith.addf %359, %361 : vector<32x4xf32>
    %cst_125 = arith.constant 0.000000e+00 : f32
    %363 = vector.broadcast %cst_125 : f32 to vector<32x4xf32>
    %364 = arith.cmpf ogt, %362, %363 : vector<32x4xf32>
    %c0_126 = arith.constant 0 : index
    %c0_127 = arith.constant 0 : index
    %365 = vector.load %arg11[%c0_126, %c0_127] : memref<32x1xf32, #tpu.memory_space<vmem>>, vector<32x1xf32>
    %366 = vector.broadcast %365 : vector<32x1xf32> to vector<32x4xf32>
    %367 = arith.mulf %366, %362 : vector<32x4xf32>
    %368 = arith.select %364, %362, %367 : vector<32x4xi1>, vector<32x4xf32>
    %c0_128 = arith.constant 0 : index
    %c0_129 = arith.constant 0 : index
    %369 = vector.load %arg12[%c0_128, %c0_129] : memref<2x32xf32, #tpu.memory_space<vmem>>, vector<2x32xf32>
    %cst_130 = arith.constant dense<0.000000e+00> : vector<2x4xf32>
    %370 = tpu.matmul %369, %368, %cst_130 {dimension_numbers = #tpu.dot_dimension_numbers<[1], [0], [0], [1], [0, 0, 1, 1], [], []>} : vector<2x32xf32>, vector<32x4xf32>, vector<2x4xf32> -> vector<2x4xf32>
    %c0_131 = arith.constant 0 : index
    %c0_132 = arith.constant 0 : index
    %371 = vector.load %arg13[%c0_131, %c0_132] : memref<2x1xf32, #tpu.memory_space<vmem>>, vector<2x1xf32>
    %372 = vector.broadcast %371 : vector<2x1xf32> to vector<2x4xf32>
    %373 = arith.addf %370, %372 : vector<2x4xf32>
    %c0_133 = arith.constant 0 : index
    %c0_134 = arith.constant 0 : index
    %374 = vector.load %arg14[%c0_133, %c0_134] : memref<4x32xf32, #tpu.memory_space<vmem>>, vector<4x32xf32>
    %cst_135 = arith.constant dense<0.000000e+00> : vector<4x4xf32>
    %375 = tpu.matmul %374, %368, %cst_135 {dimension_numbers = #tpu.dot_dimension_numbers<[1], [0], [0], [1], [0, 0, 1, 1], [], []>} : vector<4x32xf32>, vector<32x4xf32>, vector<4x4xf32> -> vector<4x4xf32>
    %c0_136 = arith.constant 0 : index
    %c0_137 = arith.constant 0 : index
    %376 = vector.load %arg15[%c0_136, %c0_137] : memref<4x1xf32, #tpu.memory_space<vmem>>, vector<4x1xf32>
    %377 = vector.broadcast %376 : vector<4x1xf32> to vector<4x4xf32>
    %378 = arith.addf %375, %377 : vector<4x4xf32>
    %cst_138 = arith.constant dense<0xFF800000> : vector<4xf32>
    %379 = vector.multi_reduction <maximumf>, %373, %cst_138 [0] : vector<2x4xf32> to vector<4xf32>
    %380 = vector.shape_cast %379 : vector<4xf32> to vector<1x4xf32>
    %381 = vector.broadcast %380 : vector<1x4xf32> to vector<2x4xf32>
    %382 = arith.subf %373, %381 : vector<2x4xf32>
    %383 = math.exp %382 : vector<2x4xf32>
    %cst_139 = arith.constant dense<0.000000e+00> : vector<4xf32>
    %384 = vector.multi_reduction <add>, %383, %cst_139 [0] : vector<2x4xf32> to vector<4xf32>
    %385 = vector.shape_cast %384 : vector<4xf32> to vector<1x4xf32>
    %386 = vector.broadcast %385 : vector<1x4xf32> to vector<2x4xf32>
    %387 = arith.divf %383, %386 : vector<2x4xf32>
    %c0_140 = arith.constant 0 : index
    %c0_141 = arith.constant 0 : index
    %c1_142 = arith.constant 1 : index
    %c0_143 = arith.constant 0 : index
    %388 = vector.load %arg16[%c0_140, %c0_141, %c1_142, %c0_143] : memref<1x4x2x4xf32, #tpu.memory_space<vmem>>, vector<1x4x1x4xf32>
    %389 = vector.shape_cast %388 : vector<1x4x1x4xf32> to vector<4x4xf32>
    %390 = vector.shape_cast %378 : vector<4x4xf32> to vector<1x4x1x4xf32>
    tpu.vector_store %arg16[%c0_140, %c0_141, %c1_142, %c0_143], %390 {strides = array<i32>} : memref<1x4x2x4xf32, #tpu.memory_space<vmem>>, vector<1x4x1x4xf32>,
    %c0_144 = arith.constant 0 : index
    %c0_145 = arith.constant 0 : index
    %c1_146 = arith.constant 1 : index
    %c0_147 = arith.constant 0 : index
    %391 = vector.load %arg17[%c0_144, %c0_145, %c1_146, %c0_147] : memref<1x2x2x4xf32, #tpu.memory_space<vmem>>, vector<1x2x1x4xf32>
    %392 = vector.shape_cast %391 : vector<1x2x1x4xf32> to vector<2x4xf32>
    %393 = vector.shape_cast %387 : vector<2x4xf32> to vector<1x2x1x4xf32>
    tpu.vector_store %arg17[%c0_144, %c0_145, %c1_146, %c0_147], %393 {strides = array<i32>} : memref<1x2x2x4xf32, #tpu.memory_space<vmem>>, vector<1x2x1x4xf32>,
    return
  }
  func.func @transform_0(%arg0: i32) -> (i32, i32, i32, i32) {
    %c0_i32 = arith.constant 0 : i32
    %c0_i32_0 = arith.constant 0 : i32
    %c0_i32_1 = arith.constant 0 : i32
    %c0_i32_2 = arith.constant 0 : i32
    return %arg0, %c0_i32, %c0_i32_0, %c0_i32_1 : i32, i32, i32, i32
  }
  func.func @transform_1(%arg0: i32) -> (i32, i32, i32, i32) {
    %c0_i32 = arith.constant 0 : i32
    %c0_i32_0 = arith.constant 0 : i32
    %c0_i32_1 = arith.constant 0 : i32
    %c0_i32_2 = arith.constant 0 : i32
    %c0_i32_3 = arith.constant 0 : i32
    return %c0_i32, %c0_i32_0, %c0_i32_1, %c0_i32_2 : i32, i32, i32, i32
  }
  func.func @transform_2(%arg0: i32) -> (i32, i32) {
    %c0_i32 = arith.constant 0 : i32
    %c0_i32_0 = arith.constant 0 : i32
    %c0_i32_1 = arith.constant 0 : i32
    return %c0_i32, %c0_i32_0 : i32, i32
  }
  func.func @transform_3(%arg0: i32) -> (i32, i32) {
    %c0_i32 = arith.constant 0 : i32
    %c0_i32_0 = arith.constant 0 : i32
    %c0_i32_1 = arith.constant 0 : i32
    return %c0_i32, %c0_i32_0 : i32, i32
  }
  func.func @transform_4(%arg0: i32) -> (i32, i32) {
    %c0_i32 = arith.constant 0 : i32
    %c0_i32_0 = arith.constant 0 : i32
    %c0_i32_1 = arith.constant 0 : i32
    return %c0_i32, %c0_i32_0 : i32, i32
  }
  func.func @transform_5(%arg0: i32) -> (i32, i32) {
    %c0_i32 = arith.constant 0 : i32
    %c0_i32_0 = arith.constant 0 : i32
    %c0_i32_1 = arith.constant 0 : i32
    return %c0_i32, %c0_i32_0 : i32, i32
  }
  func.func @transform_6(%arg0: i32) -> (i32, i32) {
    %c0_i32 = arith.constant 0 : i32
    %c0_i32_0 = arith.constant 0 : i32
    %c0_i32_1 = arith.constant 0 : i32
    return %c0_i32, %c0_i32_0 : i32, i32
  }
  func.func @transform_7(%arg0: i32) -> (i32, i32) {
    %c0_i32 = arith.constant 0 : i32
    %c0_i32_0 = arith.constant 0 : i32
    %c0_i32_1 = arith.constant 0 : i32
    return %c0_i32, %c0_i32_0 : i32, i32
  }
  func.func @transform_8(%arg0: i32) -> (i32, i32) {
    %c0_i32 = arith.constant 0 : i32
    %c0_i32_0 = arith.constant 0 : i32
    %c0_i32_1 = arith.constant 0 : i32
    return %c0_i32, %c0_i32_0 : i32, i32
  }
  func.func @transform_9(%arg0: i32) -> (i32, i32) {
    %c0_i32 = arith.constant 0 : i32
    %c0_i32_0 = arith.constant 0 : i32
    %c0_i32_1 = arith.constant 0 : i32
    return %c0_i32, %c0_i32_0 : i32, i32
  }
  func.func @transform_10(%arg0: i32) -> (i32, i32) {
    %c0_i32 = arith.constant 0 : i32
    %c0_i32_0 = arith.constant 0 : i32
    %c0_i32_1 = arith.constant 0 : i32
    return %c0_i32, %c0_i32_0 : i32, i32
  }
  func.func @transform_11(%arg0: i32) -> (i32, i32) {
    %c0_i32 = arith.constant 0 : i32
    %c0_i32_0 = arith.constant 0 : i32
    %c0_i32_1 = arith.constant 0 : i32
    return %c0_i32, %c0_i32_0 : i32, i32
  }
  func.func @transform_12(%arg0: i32) -> (i32, i32) {
    %c0_i32 = arith.constant 0 : i32
    %c0_i32_0 = arith.constant 0 : i32
    %c0_i32_1 = arith.constant 0 : i32
    return %c0_i32, %c0_i32_0 : i32, i32
  }
  func.func @transform_13(%arg0: i32) -> (i32, i32) {
    %c0_i32 = arith.constant 0 : i32
    %c0_i32_0 = arith.constant 0 : i32
    %c0_i32_1 = arith.constant 0 : i32
    return %c0_i32, %c0_i32_0 : i32, i32
  }
  func.func @transform_14(%arg0: i32) -> (i32, i32) {
    %c0_i32 = arith.constant 0 : i32
    %c0_i32_0 = arith.constant 0 : i32
    %c0_i32_1 = arith.constant 0 : i32
    return %c0_i32, %c0_i32_0 : i32, i32
  }
  func.func @transform_15(%arg0: i32) -> (i32, i32, i32, i32) {
    %c0_i32 = arith.constant 0 : i32
    %c0_i32_0 = arith.constant 0 : i32
    %c0_i32_1 = arith.constant 0 : i32
    %c0_i32_2 = arith.constant 0 : i32
    return %arg0, %c0_i32, %c0_i32_0, %c0_i32_1 : i32, i32, i32, i32
  }
  func.func @transform_16(%arg0: i32) -> (i32, i32, i32, i32) {
    %c0_i32 = arith.constant 0 : i32
    %c0_i32_0 = arith.constant 0 : i32
    %c0_i32_1 = arith.constant 0 : i32
    %c0_i32_2 = arith.constant 0 : i32
    return %arg0, %c0_i32, %c0_i32_0, %c0_i32_1 : i32, i32, i32, i32
  }
}

</mosaic_0001>

<bundles_post_ra>
// kernel: tpu_custom_call.1
= control target key start
LH: loop header
LB: loop body
LE: loop exit
PB: predicated region body
PF: predicated region fallthrough
CT: control target
= control target key end

     0   :  { %s7396_s0 = inlined_call_operand.vmem [shape: f32[2,13,1,62], index: 0, kind: input, shape index: {}]   ;;  %s7397_s1 = inlined_call_operand.vmem [shape: f32[3,3,10,1], index: 1, kind: input, shape index: {}]   ;;  %s7398_s2 = inlined_call_operand.vmem [shape: f32[10,1], index: 2, kind: input, shape index: {}]   ;;  %s7399_s3 = inlined_call_operand.vmem [shape: f32[10,1], index: 3, kind: input, shape index: {}]   ;;  %s7400_s4 = inlined_call_operand.vmem [shape: f32[56,12], index: 4, kind: input, shape index: {}]   ;;  %s7401_s5 = inlined_call_operand.vmem [shape: f32[16,150], index: 5, kind: input, shape index: {}]   ;;  %s7402_s6 = inlined_call_operand.vmem [shape: f32[16,1], index: 6, kind: input, shape index: {}]   ;;  %s7403_s7 = inlined_call_operand.vmem [shape: f32[16,1], index: 7, kind: input, shape index: {}]   ;;  %s7404_s8 = inlined_call_operand.vmem [shape: f32[32,240], index: 8, kind: input, shape index: {}]   ;;  %s7405_s9 = inlined_call_operand.vmem [shape: f32[32,1], index: 9, kind: input, shape index: {}]   ;;  %s7406_s10 = inlined_call_operand.vmem [shape: f32[32,1], index: 10, kind: input, shape index: {}]   ;;  %s7407_s11 = inlined_call_operand.vmem [shape: f32[2,32], index: 11, kind: input, shape index: {}]   ;;  %s7408_s12 = inlined_call_operand.vmem [shape: f32[2,1], index: 12, kind: input, shape index: {}]   ;;  %s7409_s13 = inlined_call_operand.vmem [shape: f32[4,32], index: 13, kind: input, shape index: {}]   ;;  %s7410_s14 = inlined_call_operand.vmem [shape: f32[4,1], index: 14, kind: input, shape index: {}]   ;;  %s7411_s15 = inlined_call_operand.hbm [shape: f32[2,4,2,4], index: 15, kind: output, shape index: {0}]   ;;  %s7412_s16 = inlined_call_operand.hbm [shape: f32[2,2,2,4], index: 16, kind: output, shape index: {1}]  }
   0x1   :  { %7419 = sst [smem:[#allocation12_spill]] %s7396_s0 }
   0x2   :  { %7420 = sst [smem:[#allocation13_spill]] %s7397_s1 }
   0x3   :  { %7421 = sst [smem:[#allocation14_spill]] %s7398_s2 }
   0x4   :  { %22 = vsyncpa [#allocation3], 0 }
   0x5   :  { %24 = vsyncpa [#allocation3 + $0x1], 0 }
   0x6   :  { %25 = vsyncpa [#allocation5], 0 }
   0x7   :  { %27 = vsyncpa [#allocation5 + $0x1], 0  ;;  %s5469_s21 = smov 0   ;;  %s5471_s22 = smov 0  }
   0x8   :  { %s5473_s23 = smov 0   ;;  %s5475_s24 = smov 0  }
   0x9 LB: > { %7422 = sst [smem:[#allocation8_spill]] %s5365_s23  ;;  %s5490_s25 = sadd.s32 4294967295, %s5369_s24   ;;  %s5369_s24 = sphi %s5475_s24, %s7435_s24   ;;  %s5365_s23 = sphi %s5473_s23, %s7440_s23   ;;  %s5361_s22 = sphi %s5471_s22, %s7439_s22   ;;  %s5357_s21 = sphi %s5469_s21, %s7438_s21  }
   0xa   : > { %s4307_s26 = sadd.s32 4294967294, %s5369_s24   ;;  %s5494_s27 = sadd.s32 1, %s5369_s24  }
   0xb   : > { %7423 = sst [smem:[#allocation9_spill]] %s5494_s27  ;;  %s360_s28 = sadd.s32 1, %s5365_s23 }
   0xc   : > { %s357_s29 = ssub.s32 %s5369_s24, %s5494_s27  ;;  %p370_p0 = scmp.ne.s32.totalorder %s5365_s23, %s5361_s22 }
   0xd   : > { %p358_p1 = scmp.eq.s32.totalorder %s357_s29, 0  ;;  %p371_p2 = scmp.eq.s32.totalorder %s5490_s25, 1 }
   0xe   : > { %p376_p3 = scmp.ne.s32.totalorder %s5361_s22, %s5357_s21  ;;  %p377_p4 = scmp.eq.s32.totalorder %s4307_s26, 1 }
   0xf   : > { %s5505_s30 = scalar_select %p358_p1, %s5365_s23, %s360_s28  }
  0x10   : > { %p5507_p5 = por %p371_p2, %p370_p0  ;;  %p5511_p6 = por %p377_p4, %p376_p3 }
  0x11   : > { %7424 = sst [smem:[#allocation10_spill]] %s5505_s30  ;;  %p4310_p7 = scmp.ge.s32.totalorder %s5369_s24, 1 }
  0x12   : > { %s7426_s17 = scalar_select %p5511_p6, 1, 0 }
  0x13   : > { %p470_p8 = scmp.lt.s32.totalorder %s5369_s24, 3 }
  0x14   : > { %7427 = sst [smem:[#allocation11_spill]] %s7426_s17 }
  0x15   : > { %p471_p9 = pnand %p4310_p7, %p470_p8 }
  0x16   : > { %s7428_s1 = sld [smem:[#allocation13_spill]] (!%p471_p9)  ;;  %v5371_v2 = vmov (!%p471_p9), 0   ;;  %s7429_s2 = sld [smem:[#allocation14_spill]] (!%p471_p9)  ;;  %v1694_v21 = vld [vmem:[%s7399_s3 + $0x8] sm:$0x3] (!%p471_p9)  ;;  %v1693_v22 = vld [vmem:[%s7399_s3] sm:$0xff] (!%p471_p9) }
  0x17   : > { %474 = sbr.rel (%p471_p9) target bundleno = 2248 (0x8c8), region = 80  ;;  %4959 = vset.pattern.permute.xlu1 (!%p471_p9), %v5371_v2  ;;  %4958 = vset.pattern.permute.xlu0 (!%p471_p9), %v5371_v2  ;;  %p524_p10 = scmp.lt.s32.totalorder (!%p471_p9), %s5490_s25, 1 }
  0x18   : > { %s5372_s19 = smov (!%p471_p9), 127   ;;  %s7417_s23 = smov (!%p471_p9), 125  }
  0x19   : > { %s5375_s30 = smov (!%p471_p9), 124   ;;  %s4386_s27 = sshll.u32 (!%p471_p9), %s5490_s25, 7 }
  0x1a   : > { %s5380_s26 = smov (!%p471_p9), [#allocation2]  }
  0x1c   : > { %v4326_v0 = vld [vmem:[%s7428_s1 + $0x20] sm:$0xff] (!%p471_p9)  ;;  %v4324_v1 = vld [vmem:[%s7428_s1 + $0x10] sm:$0xff] (!%p471_p9)  ;;  %v4327_v3 = vld [vmem:[%s7428_s1 + $0x28] sm:$0x3] (!%p471_p9) }
  0x1d   : > { %791 = vperm.xlu1 (!%p471_p9), %4959, %v4326_v0   ;;  %646 = vperm.xlu0 (!%p471_p9), %4958, %v4324_v1   ;;  %v4325_v4 = vld [vmem:[%s7428_s1 + $0x18] sm:$0x3] (!%p471_p9)  ;;  %v4332_v5 = vld [vmem:[%s7428_s1 + $0x48] sm:$0x3] (!%p471_p9)  ;;  %v4331_v6 = vld [vmem:[%s7428_s1 + $0x40] sm:$0xff] (!%p471_p9) }
  0x1e   : > { %v4334_v7 = vld [vmem:[%s7428_s1 + $0x58] sm:$0x3]  ;;  %v4333_v8 = vld [vmem:[%s7428_s1 + $0x50] sm:$0xff]  ;;  %v4341_v11 = vld [vmem:[%s7428_s1 + $0x88] sm:$0x3]  ;;  %s525_s28 = scalar_select %p524_p10, %s5490_s25, 1 }
  0x1f   : > { %v4339_v9 = vld [vmem:[%s7428_s1 + $0x78] sm:$0x3]  ;;  %v4338_v10 = vld [vmem:[%s7428_s1 + $0x70] sm:$0xff]  ;;  %v4340_v12 = vld [vmem:[%s7428_s1 + $0x80] sm:$0xff] }
  0x20   : > { %v542_v13 = vld [vmem:[%s7428_s1 + $0x8] sm:$0x3]  ;;  %v541_v14 = vld [vmem:[%s7428_s1] sm:$0xff]  ;;  %v4329_v15 = vld [vmem:[%s7428_s1 + $0x38] sm:$0x3]  ;;  %s4902_s29 = smul.u32 13, %s525_s28 }
  0x21   : > { %796 = vperm.xlu1 %4959, %v4327_v3   ;;  %651 = vperm.xlu0 %4958, %v4325_v4   ;;  %v4328_v16 = vld [vmem:[%s7428_s1 + $0x30] sm:$0xff]  ;;  %v4336_v17 = vld [vmem:[%s7428_s1 + $0x68] sm:$0x3]  ;;  %v4335_v18 = vld [vmem:[%s7428_s1 + $0x60] sm:$0xff]  ;;  %s7430_s1 = sld [smem:[#allocation12_spill]] }
  0x22   : > { %v1638_v19 = vld [vmem:[%s7429_s2 + $0x8] sm:$0x3]  ;;  %v1637_v20 = vld [vmem:[%s7429_s2] sm:$0xff] }
  0x25   : > { %1004 = vperm.xlu1 %4959, %v4332_v5   ;;  %999 = vperm.xlu0 %4958, %v4331_v6  }
  0x27   : > { %s5588_s18 = scalar_lea.vmem %s7430_s1, %s4902_s29  ;;  %s5373_s1 = smov 126  }
  0x28   : > { %v5591_v23 = vld [vmem:[%s5588_s18 + $0x1] ss:$0 sm:$0xff]  ;;  %v5594_v24 = vld [vmem:[%s5588_s18] ss:$0 sm:$0xff]  ;;  %v5631_v38 = vld [vmem:[%s5588_s18 + $0x2] ss:$0 sm:$0xff]  ;;  %s7298_s29 = scalar_lea.hbm %s7411_s15, %s4386_s27 }
  0x29   : > { %1149 = vperm.xlu1 %4959, %v4334_v7   ;;  %1144 = vperm.xlu0 %4958, %v4333_v8   ;;  %v5662_v50 = vld [vmem:[%s5588_s18 + $0x3] ss:$0 sm:$0xff]  ;;  %v5723_v7 = vld [vmem:[%s5588_s18 + $0x4] ss:$0 sm:$0xff]  ;;  %s5279_s27 = sshll.u32 %s5380_s26, 4  ;;  %s5280_s27 = int_to_ptr.vmem [resolvable:$false] %s5279_s27 }
  0x2d   : > { %1357 = vperm.xlu1 %4959, %v4339_v9   ;;  %1352 = vperm.xlu0 %4958, %v4338_v10  }
  0x31   : > { %1502 = vperm.xlu1 %4959, %v4341_v11   ;;  %1497 = vperm.xlu0 %4958, %v4340_v12  }
  0x35   : > { %550 = vperm.xlu1 %4959, %v542_v13   ;;  %545 = vperm.xlu0 %4958, %v541_v14  }
  0x39   : > { %941 = vperm.xlu1 %4959, %v4329_v15   ;;  %936 = vperm.xlu0 %4958, %v4328_v16   ;;  %v5748_v16 = vld [vmem:[%s5588_s18 + $0x5] ss:$0 sm:$0xff] }
  0x3d   : > { %1294 = vperm.xlu1 %4959, %v4336_v17   ;;  %1289 = vperm.xlu0 %4958, %v4335_v18  }
  0x41   : > { %1646 = vperm.xlu1 %4959, %v1638_v19   ;;  %1641 = vperm.xlu0 %4958, %v1637_v20  }
  0x45   : > { %1702 = vperm.xlu1 %4959, %v1694_v21   ;;  %1697 = vperm.xlu0 %4958, %v1693_v22  }
  0x9c   : > { %v5596_v25 = vpop.permute.xlu0 %646  ;;  %v5610_v31 = vpop.permute.xlu1 %791 }
  0x9d   : > { %v656_v26 = vmul.f32 %v5591_v23, %v5596_v25  ;;  %v654_v27 = vmul.f32 %v5594_v24, %v5596_v25  ;;  %v799_v32 = vmul.f32 %v5594_v24, %v5610_v31  ;;  %v801_v33 = vmul.f32 %v5591_v23, %v5610_v31 }
  0x9e   : > { %v658_v51 = vmul.f32 %v5631_v38, %v5596_v25  ;;  %v660_v52 = vmul.f32 %v5662_v50, %v5596_v25  ;;  %v805_v61 = vmul.f32 %v5662_v50, %v5610_v31  ;;  %v803_v62 = vmul.f32 %v5631_v38, %v5610_v31 }
  0x9f   : > { %702 = vrot.lane.b32.xlu1 %v656_v26, %s5372_s19  ;;  %698 = vrot.lane.b32.xlu0 %v654_v27, %s5372_s19  ;;  %v664_v17 = vmul.f32 %v5748_v16, %v5596_v25  ;;  %v662_v18 = vmul.f32 %v5723_v7, %v5596_v25 }
  0xa0   : > { %v5604_v28 = vpop.permute.xlu0 %651  ;;  %v5620_v34 = vpop.permute.xlu1 %796 }
  0xa1   : > { %v657_v29 = vmul.f32 %v5591_v23, %v5604_v28  ;;  %v655_v30 = vmul.f32 %v5594_v24, %v5604_v28  ;;  %v802_v35 = vmul.f32 %v5591_v23, %v5620_v34  ;;  %v800_v36 = vmul.f32 %v5594_v24, %v5620_v34 }
  0xa2   : > { %v661_v56 = vmul.f32 %v5662_v50, %v5604_v28  ;;  %v659_v57 = vmul.f32 %v5631_v38, %v5604_v28  ;;  %v806_v2 = vmul.f32 %v5662_v50, %v5620_v34  ;;  %v804_v3 = vmul.f32 %v5631_v38, %v5620_v34 }
  0xa3   : > { %704 = vrot.lane.b32.xlu1 %v657_v29, %s5372_s19  ;;  %700 = vrot.lane.b32.xlu0 %v655_v30, %s5372_s19  ;;  %v665_v26 = vmul.f32 %v5748_v16, %v5604_v28  ;;  %v663_v27 = vmul.f32 %v5723_v7, %v5604_v28 }
  0xa4   : > { %v5626_v37 = vpop.permute.xlu0 %999  ;;  %v5637_v41 = vpop.permute.xlu1 %1004 }
  0xa5   : > { %v1009_v39 = vmul.f32 %v5631_v38, %v5626_v37  ;;  %v1007_v40 = vmul.f32 %v5591_v23, %v5626_v37  ;;  %v1010_v42 = vmul.f32 %v5631_v38, %v5637_v41  ;;  %v1008_v43 = vmul.f32 %v5591_v23, %v5637_v41 }
  0xa6   : > { %v1013_v8 = vmul.f32 %v5723_v7, %v5626_v37  ;;  %v1011_v9 = vmul.f32 %v5662_v50, %v5626_v37  ;;  %v1014_v10 = vmul.f32 %v5723_v7, %v5637_v41  ;;  %v1012_v11 = vmul.f32 %v5662_v50, %v5637_v41 }
  0xa7   : > { %843 = vrot.lane.b32.xlu1 %v799_v32, %s5373_s1  ;;  %847 = vrot.lane.b32.xlu0 %v801_v33, %s5373_s1 }
  0xa8   : > { %v5645_v44 = vpop.permute.xlu0 %1144  ;;  %v5653_v47 = vpop.permute.xlu1 %1149 }
  0xa9   : > { %v1154_v45 = vmul.f32 %v5631_v38, %v5645_v44  ;;  %v1152_v46 = vmul.f32 %v5591_v23, %v5645_v44  ;;  %v1155_v48 = vmul.f32 %v5631_v38, %v5653_v47  ;;  %v1153_v49 = vmul.f32 %v5591_v23, %v5653_v47 }
  0xaa   : > { %v1158_v12 = vmul.f32 %v5723_v7, %v5645_v44  ;;  %v1156_v13 = vmul.f32 %v5662_v50, %v5645_v44  ;;  %v1159_v14 = vmul.f32 %v5723_v7, %v5653_v47  ;;  %v1157_v15 = vmul.f32 %v5662_v50, %v5653_v47 }
  0xab   : > { %849 = vrot.lane.b32.xlu1 %v802_v35, %s5373_s1  ;;  %845 = vrot.lane.b32.xlu0 %v800_v36, %s5373_s1  ;;  %v809_v35 = vmul.f32 %v5748_v16, %v5610_v31  ;;  %v807_v36 = vmul.f32 %v5723_v7, %v5610_v31 }
  0xac   : > { %v5670_v53 = vpop.permute.xlu0 %1352  ;;  %v5684_v58 = vpop.permute.xlu1 %1357 }
  0xad   : > { %v1360_v54 = vmul.f32 %v5631_v38, %v5670_v53  ;;  %v1362_v55 = vmul.f32 %v5662_v50, %v5670_v53  ;;  %v1363_v59 = vmul.f32 %v5662_v50, %v5684_v58  ;;  %v1361_v60 = vmul.f32 %v5631_v38, %v5684_v58 }
  0xae   : > { %v1366_v19 = vmul.f32 %v5748_v16, %v5670_v53  ;;  %v1364_v20 = vmul.f32 %v5723_v7, %v5670_v53  ;;  %v1367_v29 = vmul.f32 %v5748_v16, %v5684_v58  ;;  %v1365_v30 = vmul.f32 %v5723_v7, %v5684_v58 }
  0xaf   : > { %1055 = vrot.lane.b32.xlu1 %v1009_v39, %s5372_s19  ;;  %1051 = vrot.lane.b32.xlu0 %v1007_v40, %s5372_s19 }
  0xb0   : > { %v5698_v63 = vpop.permute.xlu0 %1497  ;;  %v5712_v4 = vpop.permute.xlu1 %1502 }
  0xb1   : > { %v1507_v0 = vmul.f32 %v5662_v50, %v5698_v63  ;;  %v1505_v1 = vmul.f32 %v5631_v38, %v5698_v63  ;;  %v1508_v5 = vmul.f32 %v5662_v50, %v5712_v4  ;;  %v1506_v6 = vmul.f32 %v5631_v38, %v5712_v4 }
  0xb3   : > { %1057 = vrot.lane.b32.xlu1 %v1010_v42, %s5372_s19  ;;  %1053 = vrot.lane.b32.xlu0 %v1008_v43, %s5372_s19  ;;  %v1511_v42 = vmul.f32 %v5748_v16, %v5698_v63  ;;  %v1509_v43 = vmul.f32 %v5723_v7, %v5698_v63 }
  0xb4   : > { %v5764_v21 = vpop.permute.xlu1 %550  ;;  %v5766_v22 = vpop.permute.xlu0 %545 }
  0xb7   : > { %1200 = vrot.lane.b32.xlu1 %v1154_v45, %s5373_s1  ;;  %1196 = vrot.lane.b32.xlu0 %v1152_v46, %s5373_s1  ;;  %v810_v45 = vmul.f32 %v5748_v16, %v5620_v34  ;;  %v808_v46 = vmul.f32 %v5723_v7, %v5620_v34 }
  0xb8   : > { %v5778_v32 = vpop.permute.xlu1 %941  ;;  %v5780_v33 = vpop.permute.xlu0 %936 }
  0xbb   : > { %1202 = vrot.lane.b32.xlu1 %v1155_v48, %s5373_s1  ;;  %1198 = vrot.lane.b32.xlu0 %v1153_v49, %s5373_s1 }
  0xbc   : > { %v5790_v39 = vpop.permute.xlu1 %1294  ;;  %v5792_v40 = vpop.permute.xlu0 %1289 }
  0xbf   : > { %706 = vrot.lane.b32.xlu1 %v658_v51, %s5372_s19  ;;  %710 = vrot.lane.b32.xlu0 %v660_v52, %s5372_s19  ;;  %v1512_v51 = vmul.f32 %v5748_v16, %v5712_v4  ;;  %v1510_v52 = vmul.f32 %v5723_v7, %v5712_v4 }
  0xc0   : > { %v5804_v48 = vpop.permute.xlu1 %1646  ;;  %v5806_v49 = vpop.permute.xlu0 %1641 }
  0xc3   : > { %1404 = vrot.lane.b32.xlu1 %v1360_v54, %s5372_s19  ;;  %1408 = vrot.lane.b32.xlu0 %v1362_v55, %s5372_s19  ;;  %v5817_v54 = vld [vmem:[%s5588_s18 + $0x6] ss:$0 sm:$0xff] }
  0xc4   : > { %v5819_v55 = vpop.permute.xlu1 %1702 }
  0xc7   : > { %712 = vrot.lane.b32.xlu1 %v661_v56, %s5372_s19  ;;  %708 = vrot.lane.b32.xlu0 %v659_v57, %s5372_s19  ;;  %v5821_v56 = vpop.permute.xlu0 %1697  ;;  %v1017_v57 = vmul.f32 %v5817_v54, %v5626_v37 }
  0xcb   : > { %1410 = vrot.lane.b32.xlu1 %v1363_v59, %s5372_s19  ;;  %1406 = vrot.lane.b32.xlu0 %v1361_v60, %s5372_s19  ;;  %v1015_v59 = vmul.f32 %v5748_v16, %v5626_v37 }
  0xcf   : > { %855 = vrot.lane.b32.xlu1 %v805_v61, %s5373_s1  ;;  %851 = vrot.lane.b32.xlu0 %v803_v62, %s5373_s1  ;;  %v1018_v62 = vmul.f32 %v5817_v54, %v5637_v41 }
  0xd3   : > { %1553 = vrot.lane.b32.xlu1 %v1507_v0, %s5373_s1  ;;  %1549 = vrot.lane.b32.xlu0 %v1505_v1, %s5373_s1  ;;  %v1016_v0 = vmul.f32 %v5748_v16, %v5637_v41 }
  0xd7   : > { %857 = vrot.lane.b32.xlu1 %v806_v2, %s5373_s1  ;;  %853 = vrot.lane.b32.xlu0 %v804_v3, %s5373_s1  ;;  %v1162_v3 = vmul.f32 %v5817_v54, %v5645_v44 }
  0xdb   : > { %1555 = vrot.lane.b32.xlu1 %v1508_v5, %s5373_s1  ;;  %1551 = vrot.lane.b32.xlu0 %v1506_v6, %s5373_s1  ;;  %v1160_v5 = vmul.f32 %v5748_v16, %v5645_v44  ;;  %v621_v6 = vmul.f32 %v5591_v23, %v5766_v22 }
  0xdf   : > { %1063 = vrot.lane.b32.xlu1 %v1013_v8, %s5372_s19  ;;  %1059 = vrot.lane.b32.xlu0 %v1011_v9, %s5372_s19  ;;  %v619_v8 = vmul.f32 %v5594_v24, %v5766_v22 }
  0xe3   : > { %1065 = vrot.lane.b32.xlu1 %v1014_v10, %s5372_s19  ;;  %1061 = vrot.lane.b32.xlu0 %v1012_v11, %s5372_s19  ;;  %v622_v11 = vmul.f32 %v5591_v23, %v5764_v21 }
  0xe7   : > { %1208 = vrot.lane.b32.xlu1 %v1158_v12, %s5373_s1  ;;  %1204 = vrot.lane.b32.xlu0 %v1156_v13, %s5373_s1  ;;  %v620_v12 = vmul.f32 %v5594_v24, %v5764_v21 }
  0xeb   : > { %1210 = vrot.lane.b32.xlu1 %v1159_v14, %s5373_s1  ;;  %1206 = vrot.lane.b32.xlu0 %v1157_v15, %s5373_s1  ;;  %v1163_v15 = vmul.f32 %v5817_v54, %v5653_v47 }
  0xef   : > { %718 = vrot.lane.b32.xlu1 %v664_v17, %s5372_s19  ;;  %714 = vrot.lane.b32.xlu0 %v662_v18, %s5372_s19  ;;  %v1161_v17 = vmul.f32 %v5748_v16, %v5653_v47 }
  0xf3   : > { %1416 = vrot.lane.b32.xlu1 %v1366_v19, %s5372_s19  ;;  %1412 = vrot.lane.b32.xlu0 %v1364_v20, %s5372_s19  ;;  %v952_v20 = vmul.f32 %v5631_v38, %v5780_v33 }
  0xf7   : > { %720 = vrot.lane.b32.xlu1 %v665_v26, %s5372_s19  ;;  %716 = vrot.lane.b32.xlu0 %v663_v27, %s5372_s19  ;;  %v950_v26 = vmul.f32 %v5591_v23, %v5780_v33 }
  0xfb   : > { %1418 = vrot.lane.b32.xlu1 %v1367_v29, %s5372_s19  ;;  %1414 = vrot.lane.b32.xlu0 %v1365_v30, %s5372_s19  ;;  %v5860_v29 = vld [vmem:[%s5588_s18 + $0x7] ss:$0 sm:$0xff] }
  0xff   : > { %863 = vrot.lane.b32.xlu1 %v809_v35, %s5373_s1  ;;  %859 = vrot.lane.b32.xlu0 %v807_v36, %s5373_s1 }
 0x103   : > { %1561 = vrot.lane.b32.xlu1 %v1511_v42, %s5373_s1  ;;  %1557 = vrot.lane.b32.xlu0 %v1509_v43, %s5373_s1  ;;  %v1370_v43 = vmul.f32 %v5860_v29, %v5670_v53 }
 0x107   : > { %865 = vrot.lane.b32.xlu1 %v810_v45, %s5373_s1  ;;  %861 = vrot.lane.b32.xlu0 %v808_v46, %s5373_s1  ;;  %v1368_v45 = vmul.f32 %v5817_v54, %v5670_v53 }
 0x10b   : > { %1563 = vrot.lane.b32.xlu1 %v1512_v51, %s5373_s1  ;;  %1559 = vrot.lane.b32.xlu0 %v1510_v52, %s5373_s1  ;;  %v953_v52 = vmul.f32 %v5631_v38, %v5778_v32 }
 0x10f   : > { %1071 = vrot.lane.b32.xlu1 %v1017_v57, %s5372_s19  ;;  %1067 = vrot.lane.b32.xlu0 %v1015_v59, %s5372_s19  ;;  %v951_v57 = vmul.f32 %v5591_v23, %v5778_v32 }
 0x111   : > { %v703_v60 = vpop.permute.xlu1 %702  ;;  %v699_v61 = vpop.permute.xlu0 %698 }
 0x112   : > { %v766_v9 = vadd.f32 %v703_v60, %v621_v6  ;;  %v764_v10 = vadd.f32 %v699_v61, %v619_v8 }
 0x113   : > { %1073 = vrot.lane.b32.xlu1 %v1018_v62, %s5372_s19  ;;  %1069 = vrot.lane.b32.xlu0 %v1016_v0, %s5372_s19  ;;  %v1371_v0 = vmul.f32 %v5860_v29, %v5684_v58 }
 0x115   : > { %v705_v1 = vpop.permute.xlu1 %704  ;;  %v701_v2 = vpop.permute.xlu0 %700 }
 0x116   : > { %v767_v24 = vadd.f32 %v705_v1, %v622_v11  ;;  %v765_v27 = vadd.f32 %v701_v2, %v620_v12  ;;  %v1369_v1 = vmul.f32 %v5817_v54, %v5684_v58  ;;  %v1516_v11 = vmul.f32 %v5860_v29, %v5712_v4 }
 0x117   : > { %1216 = vrot.lane.b32.xlu1 %v1162_v3, %s5373_s1  ;;  %1212 = vrot.lane.b32.xlu0 %v1160_v5, %s5373_s1  ;;  %v1515_v3 = vmul.f32 %v5860_v29, %v5698_v63  ;;  %v1513_v5 = vmul.f32 %v5817_v54, %v5698_v63  ;;  %v1514_v12 = vmul.f32 %v5817_v54, %v5712_v4 }
 0x119   : > { %v844_v13 = vpop.permute.xlu1 %843  ;;  %v848_v14 = vpop.permute.xlu0 %847 }
 0x11a   : > { %v909_v18 = vadd.f32 %v844_v13, %v764_v10  ;;  %v911_v19 = vadd.f32 %v848_v14, %v766_v9 }
 0x11b   : > { %1218 = vrot.lane.b32.xlu1 %v1163_v15, %s5373_s1  ;;  %1214 = vrot.lane.b32.xlu0 %v1161_v17, %s5373_s1  ;;  %v1303_v15 = vmul.f32 %v5631_v38, %v5792_v40  ;;  %v1305_v17 = vmul.f32 %v5662_v50, %v5792_v40 }
 0x11c   : > { %v974_v30 = vadd.f32 %v952_v20, %v911_v19  ;;  %v972_v35 = vadd.f32 %v950_v26, %v909_v18 }
 0x11d   : > { %v850_v36 = vpop.permute.xlu1 %849  ;;  %v846_v42 = vpop.permute.xlu0 %845 }
 0x11e   : > { %v912_v46 = vadd.f32 %v850_v36, %v767_v24  ;;  %v910_v51 = vadd.f32 %v846_v42, %v765_v27 }
 0x11f   : > { %1424 = vrot.lane.b32.xlu1 %v1370_v43, %s5372_s19  ;;  %1420 = vrot.lane.b32.xlu0 %v1368_v45, %s5372_s19  ;;  %v1306_v43 = vmul.f32 %v5662_v50, %v5790_v39  ;;  %v1304_v45 = vmul.f32 %v5631_v38, %v5790_v39 }
 0x120   : > { %v975_v59 = vadd.f32 %v953_v52, %v912_v46  ;;  %v973_v60 = vadd.f32 %v951_v57, %v910_v51 }
 0x121   : > { %v1056_v61 = vpop.permute.xlu1 %1055  ;;  %v1052_v62 = vpop.permute.xlu0 %1051 }
 0x122   : > { %v1119_v6 = vadd.f32 %v1056_v61, %v974_v30  ;;  %v1117_v8 = vadd.f32 %v1052_v62, %v972_v35  ;;  %v668_v30 = vmul.f32 %v5860_v29, %v5596_v25  ;;  %v666_v35 = vmul.f32 %v5817_v54, %v5596_v25 }
 0x123   : > { %1426 = vrot.lane.b32.xlu1 %v1371_v0, %s5372_s19  ;;  %1422 = vrot.lane.b32.xlu0 %v1369_v1, %s5372_s19  ;;  %v813_v0 = vmul.f32 %v5860_v29, %v5610_v31  ;;  %v811_v1 = vmul.f32 %v5817_v54, %v5610_v31 }
 0x125   : > { %v1058_v2 = vpop.permute.xlu1 %1057  ;;  %v1054_v23 = vpop.permute.xlu0 %1053 }
 0x126   : > { %v1120_v18 = vadd.f32 %v1058_v2, %v975_v59  ;;  %v1118_v19 = vadd.f32 %v1054_v23, %v973_v60  ;;  %v669_v59 = vmul.f32 %v5860_v29, %v5604_v28  ;;  %v667_v60 = vmul.f32 %v5817_v54, %v5604_v28 }
 0x127   : > { %1569 = vrot.lane.b32.xlu1 %v1515_v3, %s5373_s1  ;;  %1565 = vrot.lane.b32.xlu0 %v1513_v5, %s5373_s1  ;;  %v814_v3 = vmul.f32 %v5860_v29, %v5620_v34  ;;  %v812_v5 = vmul.f32 %v5817_v54, %v5620_v34 }
 0x129   : > { %v1201_v9 = vpop.permute.xlu1 %1200  ;;  %v1197_v10 = vpop.permute.xlu0 %1196 }
 0x12a   : > { %v1264_v13 = vadd.f32 %v1201_v9, %v1119_v6  ;;  %v1262_v14 = vadd.f32 %v1197_v10, %v1117_v8  ;;  %v5927_v6 = vld [vmem:[%s5588_s18 + $0x8] ss:$0 sm:$0xff] }
 0x12b   : > { %1571 = vrot.lane.b32.xlu1 %v1516_v11, %s5373_s1  ;;  %1567 = vrot.lane.b32.xlu0 %v1514_v12, %s5373_s1  ;;  %v1021_v10 = vmul.f32 %v5927_v6, %v5626_v37  ;;  %v1019_v11 = vmul.f32 %v5860_v29, %v5626_v37  ;;  %v623_v12 = vmul.f32 %v5631_v38, %v5766_v22 }
 0x12c   : > { %v1325_v20 = vadd.f32 %v1303_v15, %v1262_v14  ;;  %v1327_v26 = vadd.f32 %v1305_v17, %v1264_v13  ;;  %v625_v13 = vmul.f32 %v5662_v50, %v5766_v22 }
 0x12d   : > { %v1203_v24 = vpop.permute.xlu1 %1202  ;;  %v1199_v27 = vpop.permute.xlu0 %1198 }
 0x12e   : > { %v1265_v36 = vadd.f32 %v1203_v24, %v1120_v18  ;;  %v1263_v42 = vadd.f32 %v1199_v27, %v1118_v19  ;;  %v1022_v19 = vmul.f32 %v5927_v6, %v5637_v41  ;;  %v1020_v24 = vmul.f32 %v5860_v29, %v5637_v41 }
 0x12f   : > { %726 = vrot.lane.b32.xlu1 %v668_v30, %s5372_s19  ;;  %722 = vrot.lane.b32.xlu0 %v666_v35, %s5372_s19  ;;  %v1749_v27 = vlaneseq }
 0x130   : > { %v5904_v46 = vadd.f32 %v1306_v43, %v1265_v36  ;;  %v5906_v51 = vadd.f32 %v1304_v45, %v1263_v42  ;;  %v956_v36 = vmul.f32 %v5723_v7, %v5780_v33  ;;  %v954_v42 = vmul.f32 %v5662_v50, %v5780_v33 }
 0x131   : > { %v707_v52 = vpop.permute.xlu1 %706  ;;  %v711_v57 = vpop.permute.xlu0 %710 }
 0x132   : > { %v768_v14 = vadd.f32 %v707_v52, %v623_v12  ;;  %v770_v15 = vadd.f32 %v711_v57, %v625_v13 }
 0x133   : > { %728 = vrot.lane.b32.xlu1 %v669_v59, %s5372_s19  ;;  %724 = vrot.lane.b32.xlu0 %v667_v60, %s5372_s19  ;;  %v5954_v59 = vand.u32 127, %v1749_v27 }
 0x135   : > { %v1405_v61 = vpop.permute.xlu1 %1404  ;;  %v1409_v62 = vpop.permute.xlu0 %1408  ;;  %vm1751_vm0 = vcmp.lt.s32.totalorder %v5954_v59, 56 }
 0x136   : > { %v1470_v43 = vadd.f32 %v1405_v61, %v1325_v20  ;;  %v1472_v45 = vadd.f32 %v1409_v62, %v1327_v26  ;;  %v1167_v20 = vmul.f32 %v5927_v6, %v5653_v47  ;;  %v626_v26 = vmul.f32 %v5662_v50, %v5764_v21 }
 0x137   : > { %871 = vrot.lane.b32.xlu1 %v813_v0, %s5373_s1  ;;  %867 = vrot.lane.b32.xlu0 %v811_v1, %s5373_s1  ;;  %v1166_v1 = vmul.f32 %v5927_v6, %v5645_v44  ;;  %v624_v61 = vmul.f32 %v5631_v38, %v5764_v21  ;;  %v1165_v62 = vmul.f32 %v5860_v29, %v5653_v47 }
 0x139   : > { %v713_v2 = vpop.permute.xlu1 %712  ;;  %v709_v23 = vpop.permute.xlu0 %708 }
 0x13a   : > { %v771_v38 = vadd.f32 %v713_v2, %v626_v26  ;;  %v955_v2 = vmul.f32 %v5662_v50, %v5778_v32 }
 0x13b   : > { %873 = vrot.lane.b32.xlu1 %v814_v3, %s5373_s1  ;;  %869 = vrot.lane.b32.xlu0 %v812_v5, %s5373_s1  ;;  %v1164_v3 = vmul.f32 %v5860_v29, %v5645_v44 }
 0x13d   : > { %v1411_v8 = vpop.permute.xlu1 %1410  ;;  %v1407_v9 = vpop.permute.xlu0 %1406 }
 0x13f   : > { %1079 = vrot.lane.b32.xlu1 %v1021_v10, %s5372_s19  ;;  %1075 = vrot.lane.b32.xlu0 %v1019_v11, %s5372_s19  ;;  %v5971_v11 = vld [vmem:[%s5588_s18 + $0x9] ss:$0 sm:$0xff] }
 0x141   : > { %v856_v17 = vpop.permute.xlu1 %855  ;;  %v852_v18 = vpop.permute.xlu0 %851 }
 0x142   : > { %v915_v30 = vadd.f32 %v856_v17, %v770_v15  ;;  %v913_v35 = vadd.f32 %v852_v18, %v768_v14  ;;  %v1374_v14 = vmul.f32 %v5971_v11, %v5670_v53  ;;  %v1372_v15 = vmul.f32 %v5927_v6, %v5670_v53 }
 0x143   : > { %1081 = vrot.lane.b32.xlu1 %v1022_v19, %s5372_s19  ;;  %1077 = vrot.lane.b32.xlu0 %v1020_v24, %s5372_s19  ;;  %v769_v17 = vadd.f32 %v709_v23, %v624_v61  ;;  %v957_v24 = vmul.f32 %v5723_v7, %v5778_v32  ;;  %v1473_v23 = vadd.f32 %v1411_v8, %v5904_v46 }
 0x144   : > { %v5949_v52 = vadd.f32 %v956_v36, %v915_v30  ;;  %v5951_v57 = vadd.f32 %v954_v42, %v913_v35 }
 0x145   : > { %v1554_v60 = vpop.permute.xlu1 %1553  ;;  %v1550_v0 = vpop.permute.xlu0 %1549 }
 0x146   : > { %v1617_v5 = vadd.f32 %v1554_v60, %v1472_v45  ;;  %v1615_v10 = vadd.f32 %v1550_v0, %v1470_v43  ;;  %v1471_v43 = vadd.f32 %v1407_v9, %v5906_v51 }
 0x147   : > { %1224 = vrot.lane.b32.xlu1 %v1166_v1, %s5373_s1  ;;  %1220 = vrot.lane.b32.xlu0 %v1164_v3, %s5373_s1 }
 0x148   : > { %v1651_v12 = vadd.f32 %v5806_v49, %v1617_v5  ;;  %v1649_v13 = vadd.f32 %v5806_v49, %v1615_v10 }
 0x149   : > { %v858_v18 = vpop.permute.xlu1 %857  ;;  %v854_v19 = vpop.permute.xlu0 %853 }
 0x14a   : > { %vm1673_vm1 = vcmp.gt.f32.partialorder %v1651_v12, 0.0  ;;  %v1707_v30 = vmul.f32 %v5821_v56, %v1651_v12  ;;  %vm1671_vm2 = vcmp.gt.f32.partialorder %v1649_v13, 0.0  ;;  %v1705_v35 = vmul.f32 %v5821_v56, %v1649_v13 }
 0x14b   : > { %v916_v36 = vadd.f32 %v858_v18, %v771_v38  ;;  %v914_v42 = vadd.f32 %v854_v19, %v769_v17  ;;  %1226 = vrot.lane.b32.xlu1 %v1167_v20, %s5373_s1  ;;  %1222 = vrot.lane.b32.xlu0 %v1165_v62, %s5373_s1  ;;  %v1375_v62 = vmul.f32 %v5971_v11, %v5684_v58 }
 0x14c   : > { %v1729_v45 = vsel %vm1673_vm1, %v1651_v12, %v1707_v30  ;;  %v1727_v60 = vsel %vm1671_vm2, %v1649_v13, %v1705_v35  ;;  %v1373_v12 = vmul.f32 %v5927_v6, %v5684_v58  ;;  %v1519_v30 = vmul.f32 %v5971_v11, %v5698_v63 }
 0x14d   : > { %v1754_v0 = vsel %vm1751_vm0, %v1729_v45, -1e+30  ;;  %v1752_v1 = vsel %vm1751_vm0, %v1727_v60, -1e+30  ;;  %v1556_v3 = vpop.permute.xlu1 %1555  ;;  %v1552_v5 = vpop.permute.xlu0 %1551  ;;  %v979_v10 = vadd.f32 %v957_v24, %v916_v36  ;;  %v977_v20 = vadd.f32 %v955_v2, %v914_v42 }
 0x14e   : > { %v5994_v26 = vmax.f32 %v1752_v1, %v1754_v0  ;;  %v1618_v61 = vadd.f32 %v1556_v3, %v1473_v23  ;;  %v1616_v50 = vadd.f32 %v1552_v5, %v1471_v43  ;;  %v1517_v35 = vmul.f32 %v5927_v6, %v5698_v63 }
 0x14f   : > { %1432 = vrot.lane.b32.xlu1 %v1374_v14, %s5372_s19  ;;  %1428 = vrot.lane.b32.xlu0 %v1372_v15, %s5372_s19  ;;  %v1520_v45 = vmul.f32 %v5971_v11, %v5712_v4  ;;  %v1518_v60 = vmul.f32 %v5927_v6, %v5712_v4  ;;  %v1309_v3 = vmul.f32 %v5748_v16, %v5792_v40 }
 0x150   : > { %v1652_v46 = vadd.f32 %v5804_v48, %v1618_v61  ;;  %v1650_v51 = vadd.f32 %v5804_v48, %v1616_v50  ;;  %v1307_v5 = vmul.f32 %v5723_v7, %v5792_v40 }
 0x151   : > { %v1064_v8 = vpop.permute.xlu1 %1063  ;;  %v1060_v9 = vpop.permute.xlu0 %1059 }
 0x152   : > { %vm1674_vm3 = vcmp.gt.f32.partialorder %v1652_v46, 0.0  ;;  %v1708_v13 = vmul.f32 %v5819_v55, %v1652_v46  ;;  %vm1672_vm4 = vcmp.gt.f32.partialorder %v1650_v51, 0.0  ;;  %v1706_v14 = vmul.f32 %v5819_v55, %v1650_v51 }
 0x153   : > { %1434 = vrot.lane.b32.xlu1 %v1375_v62, %s5372_s19  ;;  %1430 = vrot.lane.b32.xlu0 %v1373_v12, %s5372_s19  ;;  %v1123_v42 = vadd.f32 %v1064_v8, %v5949_v52  ;;  %v1121_v2 = vadd.f32 %v1060_v9, %v5951_v57  ;;  %v672_v8 = vmul.f32 %v5971_v11, %v5596_v25 }
 0x154   : > { %v1730_v15 = vsel %vm1674_vm3, %v1652_v46, %v1708_v13  ;;  %v1728_v38 = vsel %vm1672_vm4, %v1650_v51, %v1706_v14  ;;  %v670_v9 = vmul.f32 %v5927_v6, %v5596_v25  ;;  %v1310_v13 = vmul.f32 %v5748_v16, %v5790_v39 }
 0x155   : > { %v1755_v17 = vsel %vm1751_vm0, %v1730_v15, -1e+30  ;;  %v1753_v18 = vsel %vm1751_vm0, %v1728_v38, -1e+30  ;;  %v1066_v19 = vpop.permute.xlu1 %1065  ;;  %v1062_v24 = vpop.permute.xlu0 %1061  ;;  %v1308_v14 = vmul.f32 %v5723_v7, %v5790_v39 }
 0x156   : > { %v6016_v36 = vmax.f32 %v1753_v18, %v1755_v17  ;;  %v1124_v52 = vadd.f32 %v1066_v19, %v979_v10  ;;  %v1122_v57 = vadd.f32 %v1062_v24, %v977_v20  ;;  %v673_v17 = vmul.f32 %v5971_v11, %v5604_v28 }
 0x157   : > { %1577 = vrot.lane.b32.xlu1 %v1519_v30, %s5373_s1  ;;  %1573 = vrot.lane.b32.xlu0 %v1517_v35, %s5373_s1  ;;  %v671_v18 = vmul.f32 %v5927_v6, %v5604_v28  ;;  %v817_v30 = vmul.f32 %v5971_v11, %v5610_v31  ;;  %v815_v35 = vmul.f32 %v5927_v6, %v5610_v31 }
 0x159   : > { %v1209_v23 = vpop.permute.xlu1 %1208  ;;  %v1205_v43 = vpop.permute.xlu0 %1204 }
 0x15a   : > { %v1268_v0 = vadd.f32 %v1209_v23, %v1123_v42  ;;  %v1266_v1 = vadd.f32 %v1205_v43, %v1121_v2  ;;  %v818_v23 = vmul.f32 %v5971_v11, %v5620_v34  ;;  %v816_v43 = vmul.f32 %v5927_v6, %v5620_v34 }
 0x15b   : > { %1579 = vrot.lane.b32.xlu1 %v1520_v45, %s5373_s1  ;;  %1575 = vrot.lane.b32.xlu0 %v1518_v60, %s5373_s1  ;;  %v6065_v45 = vld [vmem:[%s5588_s18 + $0xa] ss:$0 sm:$0xff] }
 0x15c   : > { %v1331_v61 = vadd.f32 %v1309_v3, %v1268_v0  ;;  %v1329_v50 = vadd.f32 %v1307_v5, %v1266_v1  ;;  %v1025_v1 = vmul.f32 %v6065_v45, %v5626_v37  ;;  %v1023_v3 = vmul.f32 %v5971_v11, %v5626_v37 }
 0x15d   : > { %v1211_v46 = vpop.permute.xlu1 %1210  ;;  %v1207_v51 = vpop.permute.xlu0 %1206  ;;  %v629_v5 = vmul.f32 %v5748_v16, %v5766_v22 }
 0x15e   : > { %v1269_v62 = vadd.f32 %v1211_v46, %v1124_v52  ;;  %v1267_v12 = vadd.f32 %v1207_v51, %v1122_v57  ;;  %v627_v52 = vmul.f32 %v5723_v7, %v5766_v22 }
 0x15f   : > { %734 = vrot.lane.b32.xlu1 %v672_v8, %s5372_s19  ;;  %730 = vrot.lane.b32.xlu0 %v670_v9, %s5372_s19  ;;  %v1026_v9 = vmul.f32 %v6065_v45, %v5637_v41 }
 0x160   : > { %v6042_v10 = vadd.f32 %v1310_v13, %v1269_v62  ;;  %v6044_v20 = vadd.f32 %v1308_v14, %v1267_v12  ;;  %v1024_v62 = vmul.f32 %v5971_v11, %v5637_v41  ;;  %v960_v14 = vmul.f32 %v5817_v54, %v5780_v33 }
 0x161   : > { %v719_v15 = vpop.permute.xlu1 %718  ;;  %v715_v38 = vpop.permute.xlu0 %714 }
 0x162   : > { %v774_v57 = vadd.f32 %v719_v15, %v629_v5  ;;  %v772_v46 = vadd.f32 %v715_v38, %v627_v52  ;;  %v630_v52 = vmul.f32 %v5748_v16, %v5764_v21 }
 0x163   : > { %736 = vrot.lane.b32.xlu1 %v673_v17, %s5372_s19  ;;  %732 = vrot.lane.b32.xlu0 %v671_v18, %s5372_s19  ;;  %v958_v17 = vmul.f32 %v5748_v16, %v5780_v33 }
 0x165   : > { %v1417_v19 = vpop.permute.xlu1 %1416  ;;  %v1413_v24 = vpop.permute.xlu0 %1412 }
 0x166   : > { %v1476_v15 = vadd.f32 %v1417_v19, %v1331_v61  ;;  %v1474_v38 = vadd.f32 %v1413_v24, %v1329_v50  ;;  %v628_v61 = vmul.f32 %v5723_v7, %v5764_v21  ;;  %v1171_v50 = vmul.f32 %v6065_v45, %v5653_v47  ;;  %v6104_v19 = vld [vmem:[%s5588_s18 + $0xb] ss:$0 sm:$0xff] }
 0x167   : > { %879 = vrot.lane.b32.xlu1 %v817_v30, %s5373_s1  ;;  %875 = vrot.lane.b32.xlu0 %v815_v35, %s5373_s1 }
 0x169   : > { %v721_v42 = vpop.permute.xlu1 %720  ;;  %v717_v2 = vpop.permute.xlu0 %716 }
 0x16a   : > { %v775_v7 = vadd.f32 %v721_v42, %v630_v52  ;;  %v959_v42 = vmul.f32 %v5748_v16, %v5778_v32 }
 0x16b   : > { %881 = vrot.lane.b32.xlu1 %v818_v23, %s5373_s1  ;;  %877 = vrot.lane.b32.xlu0 %v816_v43, %s5373_s1  ;;  %v1170_v43 = vmul.f32 %v6065_v45, %v5645_v44 }
 0x16d   : > { %v1419_v60 = vpop.permute.xlu1 %1418  ;;  %v1415_v0 = vpop.permute.xlu0 %1414 }
 0x16f   : > { %1087 = vrot.lane.b32.xlu1 %v1025_v1, %s5372_s19  ;;  %1083 = vrot.lane.b32.xlu0 %v1023_v3, %s5372_s19  ;;  %v1168_v1 = vmul.f32 %v5971_v11, %v5645_v44 }
 0x171   : > { %v864_v51 = vpop.permute.xlu1 %863  ;;  %v860_v8 = vpop.permute.xlu0 %859 }
 0x172   : > { %v919_v12 = vadd.f32 %v864_v51, %v774_v57  ;;  %v917_v13 = vadd.f32 %v860_v8, %v772_v46  ;;  %v1169_v46 = vmul.f32 %v5971_v11, %v5653_v47  ;;  %v1378_v51 = vmul.f32 %v6104_v19, %v5670_v53 }
 0x173   : > { %1089 = vrot.lane.b32.xlu1 %v1026_v9, %s5372_s19  ;;  %1085 = vrot.lane.b32.xlu0 %v1024_v62, %s5372_s19  ;;  %v773_v8 = vadd.f32 %v717_v2, %v628_v61  ;;  %v1477_v2 = vadd.f32 %v1419_v60, %v6042_v10 }
 0x174   : > { %v6087_v18 = vadd.f32 %v960_v14, %v919_v12  ;;  %v6089_v30 = vadd.f32 %v958_v17, %v917_v13  ;;  %v1376_v12 = vmul.f32 %v6065_v45, %v5670_v53  ;;  %v961_v13 = vmul.f32 %v5817_v54, %v5778_v32 }
 0x175   : > { %v1562_v35 = vpop.permute.xlu1 %1561  ;;  %v1558_v23 = vpop.permute.xlu0 %1557 }
 0x176   : > { %v1621_v3 = vadd.f32 %v1562_v35, %v1476_v15  ;;  %v1619_v5 = vadd.f32 %v1558_v23, %v1474_v38  ;;  %v1475_v35 = vadd.f32 %v1415_v0, %v6044_v20 }
 0x177   : > { %1232 = vrot.lane.b32.xlu1 %v1170_v43, %s5373_s1  ;;  %1228 = vrot.lane.b32.xlu0 %v1168_v1, %s5373_s1 }
 0x178   : > { %v1655_v24 = vadd.f32 %v5806_v49, %v1621_v3  ;;  %v1653_v57 = vadd.f32 %v5806_v49, %v1619_v5 }
 0x179   : > { %v866_v9 = vpop.permute.xlu1 %865  ;;  %v862_v62 = vpop.permute.xlu0 %861 }
 0x17a   : > { %vm1677_vm5 = vcmp.gt.f32.partialorder %v1655_v24, 0.0  ;;  %v1711_v14 = vmul.f32 %v5821_v56, %v1655_v24  ;;  %vm1675_vm6 = vcmp.gt.f32.partialorder %v1653_v57, 0.0  ;;  %v1709_v17 = vmul.f32 %v5821_v56, %v1653_v57 }
 0x17b   : > { %v920_v15 = vadd.f32 %v866_v9, %v775_v7  ;;  %v918_v38 = vadd.f32 %v862_v62, %v773_v8  ;;  %1234 = vrot.lane.b32.xlu1 %v1171_v50, %s5373_s1  ;;  %1230 = vrot.lane.b32.xlu0 %v1169_v46, %s5373_s1 }
 0x17c   : > { %v1733_v23 = vsel %vm1677_vm5, %v1655_v24, %v1711_v14  ;;  %v1731_v43 = vsel %vm1675_vm6, %v1653_v57, %v1709_v17  ;;  %v1379_v24 = vmul.f32 %v6104_v19, %v5684_v58  ;;  %v1377_v57 = vmul.f32 %v6065_v45, %v5684_v58 }
 0x17d   : > { %v1758_v1 = vsel %vm1751_vm0, %v1733_v23, -1e+30  ;;  %v1756_v3 = vsel %vm1751_vm0, %v1731_v43, -1e+30  ;;  %v1564_v5 = vpop.permute.xlu1 %1563  ;;  %v1560_v52 = vpop.permute.xlu0 %1559  ;;  %v983_v61 = vadd.f32 %v961_v13, %v920_v15  ;;  %v981_v50 = vadd.f32 %v959_v42, %v918_v38 }
 0x17e   : > { %v6128_v46 = vmax.f32 %v1756_v3, %v1758_v1  ;;  %v1622_v7 = vadd.f32 %v1564_v5, %v1477_v2  ;;  %v1620_v16 = vadd.f32 %v1560_v52, %v1475_v35  ;;  %v1523_v15 = vmul.f32 %v6104_v19, %v5698_v63  ;;  %v1810_v2 = vld [vmem:[%s7400_s4] sm:$0xff]  ;;  %v1811_v35 = vld [vmem:[%s7400_s4 + $0x8] sm:$0xff]  ;;  %v1812_v3 = vld [vmem:[%s7400_s4 + $0x10] sm:$0xff] }
 0x17f   : > { %1440 = vrot.lane.b32.xlu1 %v1378_v51, %s5372_s19  ;;  %1436 = vrot.lane.b32.xlu0 %v1376_v12, %s5372_s19  ;;  %v1521_v38 = vmul.f32 %v6065_v45, %v5698_v63  ;;  %v6162_v1 = vpack.c.bf16 %v1811_v35, %v1810_v2  ;;  %v1813_v5 = vld [vmem:[%s7400_s4 + $0x18] sm:$0xff]  ;;  %vm1817_vm6 = vcmask 457728  }
 0x180   : > { %v1656_v10 = vadd.f32 %v5804_v48, %v1622_v7  ;;  %v1654_v20 = vadd.f32 %v5804_v48, %v1620_v16  ;;  %v1524_v16 = vmul.f32 %v6104_v19, %v5712_v4 }
 0x181   : > { %v1072_v60 = vpop.permute.xlu1 %1071  ;;  %v1068_v0 = vpop.permute.xlu0 %1067  ;;  %4609 = vmatprep.subr.bf16.mxu0 %v6162_v1  ;;  %4621 = vmatprep.subr.bf16.mxu1 %v6162_v1 }
 0x182   : > { %vm1678_vm7 = vcmp.gt.f32.partialorder %v1656_v10, 0.0  ;;  %v1712_v8 = vmul.f32 %v5819_v55, %v1656_v10  ;;  %vm1676_vm8 = vcmp.gt.f32.partialorder %v1654_v20, 0.0  ;;  %v1710_v51 = vmul.f32 %v5819_v55, %v1654_v20  ;;  %4611 = vmatpush3.bf16.msra.mxu0 %v6162_v1  ;;  %4623 = vmatpush3.bf16.msra.mxu1 %v6162_v1 }
 0x183   : > { %1442 = vrot.lane.b32.xlu1 %v1379_v24, %s5372_s19  ;;  %1438 = vrot.lane.b32.xlu0 %v1377_v57, %s5372_s19  ;;  %v1127_v23 = vadd.f32 %v1072_v60, %v6087_v18  ;;  %v1125_v43 = vadd.f32 %v1068_v0, %v6089_v30  ;;  %v1522_v18 = vmul.f32 %v6065_v45, %v5712_v4  ;;  %v1814_v24 = vld [vmem:[%s7400_s4 + $0x20] sm:$0xff]  ;;  %v1815_v57 = vld [vmem:[%s7400_s4 + $0x28] sm:$0xff] }
 0x184   : > { %v1734_v9 = vsel %vm1678_vm7, %v1656_v10, %v1712_v8  ;;  %v1732_v62 = vsel %vm1676_vm8, %v1654_v20, %v1710_v51  ;;  %v1313_v30 = vmul.f32 %v5860_v29, %v5792_v40  ;;  %v6176_v10 = vpack.c.bf16 %v1813_v5, %v1812_v3 }
 0x185   : > { %v1759_v12 = vsel %vm1751_vm0, %v1734_v9, -1e+30  ;;  %v1757_v13 = vsel %vm1751_vm0, %v1732_v62, -1e+30  ;;  %v1074_v14 = vpop.permute.xlu1 %1073  ;;  %v1070_v17 = vpop.permute.xlu0 %1069  ;;  %v1311_v0 = vmul.f32 %v5817_v54, %v5792_v40 }
 0x186   : > { %v6150_v42 = vmax.f32 %v1757_v13, %v1759_v12  ;;  %v1128_v8 = vadd.f32 %v1074_v14, %v983_v61  ;;  %v1126_v51 = vadd.f32 %v1070_v17, %v981_v50  ;;  %4613 = vmatprep.subr.bf16.mxu0 %v6176_v10  ;;  %4625 = vmatprep.subr.bf16.mxu1 %v6176_v10 }
 0x187   : > { %1585 = vrot.lane.b32.xlu1 %v1523_v15, %s5373_s1  ;;  %1581 = vrot.lane.b32.xlu0 %v1521_v38, %s5373_s1  ;;  %v6193_v15 = vpack.c.bf16 %v1815_v57, %v1814_v24  ;;  %v1314_v38 = vmul.f32 %v5860_v29, %v5790_v39  ;;  %v1312_v50 = vmul.f32 %v5817_v54, %v5790_v39 }
 0x188   : > { %4615 = vmatpush3.bf16.msra.mxu0 %v6176_v10  ;;  %4627 = vmatpush3.bf16.msra.mxu1 %v6176_v10 }
 0x189   : > { %v1217_v52 = vpop.permute.xlu1 %1216  ;;  %v1213_v7 = vpop.permute.xlu0 %1212  ;;  %4617 = vmatprep.subr.bf16.mxu0 %v6193_v15  ;;  %4629 = vmatprep.subr.bf16.mxu1 %v6193_v15 }
 0x18a   : > { %v1272_v20 = vadd.f32 %v1217_v52, %v1127_v23  ;;  %v1270_v60 = vadd.f32 %v1213_v7, %v1125_v43  ;;  %v6211_v43 = vld [vmem:[%s7400_s4 + $0x30] sm:$0xff] }
 0x18b   : > { %1587 = vrot.lane.b32.xlu1 %v1524_v16, %s5373_s1  ;;  %1583 = vrot.lane.b32.xlu0 %v1522_v18, %s5373_s1 }
 0x18c   : > { %v1335_v9 = vadd.f32 %v1313_v30, %v1272_v20  ;;  %v1333_v62 = vadd.f32 %v1311_v0, %v1270_v60  ;;  %4619 = vmatpush3.bf16.msra.mxu0 %v6193_v15  ;;  %4631 = vmatpush3.bf16.msra.mxu1 %v6193_v15 }
 0x18d   : > { %v1219_v12 = vpop.permute.xlu1 %1218  ;;  %v1215_v13 = vpop.permute.xlu0 %1214  ;;  %4474 = vmatprep.subr.mxu0 %v6211_v43  ;;  %4491 = vmatprep.subr.mxu1 %v6211_v43 }
 0x18e   : > { %v1273_v61 = vadd.f32 %v1219_v12, %v1128_v8  ;;  %v1271_v14 = vadd.f32 %v1215_v13, %v1126_v51 }
 0x18f   : > { %1780 = vrot.lane.b32.xlu1 %v6016_v36, %s5372_s19  ;;  %1778 = vrot.lane.b32.xlu0 %v5994_v26, %s5372_s19 }
 0x190   : > { %v1336_v17 = vadd.f32 %v1314_v38, %v1273_v61  ;;  %v1334_v2 = vadd.f32 %v1312_v50, %v1271_v14  ;;  %4475 = vmatpush3.msra.mxu0 %v6211_v43  ;;  %4492 = vmatpush3.msra.mxu1 %v6211_v43 }
 0x191   : > { %v1425_v35 = vpop.permute.xlu1 %1424  ;;  %v1421_v23 = vpop.permute.xlu0 %1420  ;;  %4633 = vmatprep.subr.bf16.mxu0 %v6162_v1  ;;  %4645 = vmatprep.subr.bf16.mxu1 %v6162_v1 }
 0x192   : > { %v1480_v52 = vadd.f32 %v1425_v35, %v1335_v9  ;;  %v1478_v7 = vadd.f32 %v1421_v23, %v1333_v62 }
 0x193   : > { %1788 = vrot.lane.b32.xlu1 %v6016_v36, %s5373_s1  ;;  %1786 = vrot.lane.b32.xlu0 %v5994_v26, %s5373_s1 }
 0x195   : > { %v1427_v3 = vpop.permute.xlu1 %1426  ;;  %v1423_v5 = vpop.permute.xlu0 %1422 }
 0x196   : > { %v1481_v24 = vadd.f32 %v1427_v3, %v1336_v17  ;;  %v1479_v57 = vadd.f32 %v1423_v5, %v1334_v2 }
 0x197   : > { %1796 = vrot.lane.b32.xlu1 %v6016_v36, %s7417_s23  ;;  %1794 = vrot.lane.b32.xlu0 %v5994_v26, %s7417_s23 }
 0x199   : > { %v1570_v16 = vpop.permute.xlu1 %1569  ;;  %v1566_v18 = vpop.permute.xlu0 %1565 }
 0x19a   : > { %v1625_v30 = vadd.f32 %v1570_v16, %v1480_v52  ;;  %v1623_v20 = vadd.f32 %v1566_v18, %v1478_v7 }
 0x19b   : > { %1804 = vrot.lane.b32.xlu1 %v6016_v36, %s5375_s30  ;;  %1802 = vrot.lane.b32.xlu0 %v5994_v26, %s5375_s30 }
 0x19c   : > { %v1659_v60 = vadd.f32 %v5806_v49, %v1625_v30  ;;  %v1657_v0 = vadd.f32 %v5806_v49, %v1623_v20 }
 0x19d   : > { %v1572_v8 = vpop.permute.xlu1 %1571  ;;  %v1568_v51 = vpop.permute.xlu0 %1567 }
 0x19e   : > { %vm1681_vm9 = vcmp.gt.f32.partialorder %v1659_v60, 0.0  ;;  %v1715_v9 = vmul.f32 %v5821_v56, %v1659_v60  ;;  %vm1679_vm10 = vcmp.gt.f32.partialorder %v1657_v0, 0.0  ;;  %v1713_v62 = vmul.f32 %v5821_v56, %v1657_v0 }
 0x19f   : > { %v1626_v12 = vadd.f32 %v1572_v8, %v1481_v24  ;;  %v1624_v13 = vadd.f32 %v1568_v51, %v1479_v57  ;;  %1905 = vrot.lane.b32.xlu1 %v6150_v42, %s5372_s19  ;;  %1903 = vrot.lane.b32.xlu0 %v6128_v46, %s5372_s19  ;;  %v631_v24 = vmul.f32 %v5817_v54, %v5766_v22 }
 0x1a0   : > { %v1737_v61 = vsel %vm1681_vm9, %v1659_v60, %v1715_v9  ;;  %v1735_v14 = vsel %vm1679_vm10, %v1657_v0, %v1713_v62  ;;  %v633_v0 = vmul.f32 %v5860_v29, %v5766_v22  ;;  %v634_v9 = vmul.f32 %v5860_v29, %v5764_v21 }
 0x1a1   : > { %v1762_v38 = vsel %vm1751_vm0, %v1737_v61, -1e+30  ;;  %v1760_v50 = vsel %vm1751_vm0, %v1735_v14, -1e+30  ;;  %v1660_v17 = vadd.f32 %v5804_v48, %v1626_v12  ;;  %v1658_v2 = vadd.f32 %v5804_v48, %v1624_v13  ;;  %v727_v35 = vpop.permute.xlu1 %726  ;;  %v723_v23 = vpop.permute.xlu0 %722 }
 0x1a2   : > { %v6247_v3 = vmax.f32 %v1760_v50, %v1762_v38  ;;  %v778_v8 = vadd.f32 %v727_v35, %v633_v0  ;;  %v776_v51 = vadd.f32 %v723_v23, %v631_v24  ;;  %v632_v62 = vmul.f32 %v5817_v54, %v5764_v21 }
 0x1a3   : > { %vm1682_vm11 = vcmp.gt.f32.partialorder %v1660_v17, 0.0  ;;  %v1716_v5 = vmul.f32 %v5819_v55, %v1660_v17  ;;  %vm1680_vm12 = vcmp.gt.f32.partialorder %v1658_v2, 0.0  ;;  %v1714_v52 = vmul.f32 %v5819_v55, %v1658_v2  ;;  %1913 = vrot.lane.b32.xlu1 %v6150_v42, %s5373_s1  ;;  %1911 = vrot.lane.b32.xlu0 %v6128_v46, %s5373_s1 }
 0x1a4   : > { %v964_v38 = vmul.f32 %v5927_v6, %v5780_v33  ;;  %v962_v50 = vmul.f32 %v5860_v29, %v5780_v33  ;;  %vm2494_vm9 = vcmask 1043456   ;;  %vm2504_vm10 = vcmask 1045504  }
 0x1a5   : > { %v1738_v7 = vsel %vm1682_vm11, %v1660_v17, %v1716_v5  ;;  %v1736_v16 = vsel %vm1680_vm12, %v1658_v2, %v1714_v52  ;;  %v729_v18 = vpop.permute.xlu1 %728  ;;  %v725_v30 = vpop.permute.xlu0 %724  ;;  %vm2620_vm11 = vcmask 179200  }
 0x1a6   : > { %v1763_v20 = vsel %vm1751_vm0, %v1738_v7, -1e+30  ;;  %v1761_v60 = vsel %vm1751_vm0, %v1736_v16, -1e+30  ;;  %v779_v17 = vadd.f32 %v729_v18, %v634_v9  ;;  %v777_v2 = vadd.f32 %v725_v30, %v632_v62 }
 0x1a7   : > { %v6263_v57 = vmax.f32 %v1761_v60, %v1763_v20  ;;  %1921 = vrot.lane.b32.xlu1 %v6150_v42, %s7417_s23  ;;  %1919 = vrot.lane.b32.xlu0 %v6128_v46, %s7417_s23  ;;  %v965_v16 = vmul.f32 %v5927_v6, %v5778_v32  ;;  %v963_v20 = vmul.f32 %v5860_v29, %v5778_v32 }
 0x1a9   : > { %v872_v12 = vpop.permute.xlu1 %871  ;;  %v868_v13 = vpop.permute.xlu0 %867 }
 0x1aa   : > { %v923_v61 = vadd.f32 %v872_v12, %v778_v8  ;;  %v921_v14 = vadd.f32 %v868_v13, %v776_v51 }
 0x1ab   : > { %1929 = vrot.lane.b32.xlu1 %v6150_v42, %s5375_s30  ;;  %1927 = vrot.lane.b32.xlu0 %v6128_v46, %s5375_s30 }
 0x1ac   : > { %v986_v35 = vadd.f32 %v964_v38, %v923_v61  ;;  %v984_v54 = vadd.f32 %v962_v50, %v921_v14  ;;  %v1317_v61 = vmul.f32 %v5971_v11, %v5792_v40  ;;  %v1315_v14 = vmul.f32 %v5927_v6, %v5792_v40 }
 0x1ad   : > { %v874_v23 = vpop.permute.xlu1 %873  ;;  %v870_v5 = vpop.permute.xlu0 %869 }
 0x1ae   : > { %v924_v52 = vadd.f32 %v874_v23, %v779_v17  ;;  %v922_v7 = vadd.f32 %v870_v5, %v777_v2 }
 0x1af   : > { %2022 = vrot.lane.b32.xlu1 %v6263_v57, %s5372_s19  ;;  %2020 = vrot.lane.b32.xlu0 %v6247_v3, %s5372_s19 }
 0x1b0   : > { %v987_v18 = vadd.f32 %v965_v16, %v924_v52  ;;  %v985_v30 = vadd.f32 %v963_v20, %v922_v7  ;;  %v1318_v52 = vmul.f32 %v5971_v11, %v5790_v39  ;;  %v1316_v7 = vmul.f32 %v5927_v6, %v5790_v39 }
 0x1b1   : > { %v1080_v60 = vpop.permute.xlu1 %1079  ;;  %v1076_v0 = vpop.permute.xlu0 %1075 }
 0x1b2   : > { %v1131_v29 = vadd.f32 %v1080_v60, %v986_v35  ;;  %v1129_v51 = vadd.f32 %v1076_v0, %v984_v54 }
 0x1b3   : > { %2030 = vrot.lane.b32.xlu1 %v6263_v57, %s5373_s1  ;;  %2028 = vrot.lane.b32.xlu0 %v6247_v3, %s5373_s1 }
 0x1b5   : > { %v1082_v24 = vpop.permute.xlu1 %1081  ;;  %v1078_v8 = vpop.permute.xlu0 %1077 }
 0x1b6   : > { %v1132_v38 = vadd.f32 %v1082_v24, %v987_v18  ;;  %v1130_v50 = vadd.f32 %v1078_v8, %v985_v30 }
 0x1b7   : > { %2038 = vrot.lane.b32.xlu1 %v6263_v57, %s7417_s23  ;;  %2036 = vrot.lane.b32.xlu0 %v6247_v3, %s7417_s23 }
 0x1b9   : > { %v1225_v9 = vpop.permute.xlu1 %1224  ;;  %v1221_v62 = vpop.permute.xlu0 %1220 }
 0x1ba   : > { %v1276_v12 = vadd.f32 %v1225_v9, %v1131_v29  ;;  %v1274_v13 = vadd.f32 %v1221_v62, %v1129_v51 }
 0x1bb   : > { %2046 = vrot.lane.b32.xlu1 %v6263_v57, %s5375_s30  ;;  %2044 = vrot.lane.b32.xlu0 %v6247_v3, %s5375_s30 }
 0x1bc   : > { %v1339_v17 = vadd.f32 %v1317_v61, %v1276_v12  ;;  %v1337_v2 = vadd.f32 %v1315_v14, %v1274_v13 }
 0x1bd   : > { %v1227_v35 = vpop.permute.xlu1 %1226  ;;  %v1223_v54 = vpop.permute.xlu0 %1222 }
 0x1be   : > { %v1277_v23 = vadd.f32 %v1227_v35, %v1132_v38  ;;  %v1275_v5 = vadd.f32 %v1223_v54, %v1130_v50 }
 0x1c0   : > { %v1340_v16 = vadd.f32 %v1318_v52, %v1277_v23  ;;  %v1338_v20 = vadd.f32 %v1316_v7, %v1275_v5 }
 0x1c1   : > { %v1433_v60 = vpop.permute.xlu1 %1432  ;;  %v1429_v0 = vpop.permute.xlu0 %1428 }
 0x1c2   : > { %v1484_v18 = vadd.f32 %v1433_v60, %v1339_v17  ;;  %v1482_v30 = vadd.f32 %v1429_v0, %v1337_v2 }
 0x1c5   : > { %v1435_v29 = vpop.permute.xlu1 %1434  ;;  %v1431_v51 = vpop.permute.xlu0 %1430 }
 0x1c6   : > { %v1485_v61 = vadd.f32 %v1435_v29, %v1340_v16  ;;  %v1483_v14 = vadd.f32 %v1431_v51, %v1338_v20 }
 0x1c9   : > { %v1578_v24 = vpop.permute.xlu1 %1577  ;;  %v1574_v8 = vpop.permute.xlu0 %1573 }
 0x1ca   : > { %v1629_v9 = vadd.f32 %v1578_v24, %v1484_v18  ;;  %v1627_v62 = vadd.f32 %v1574_v8, %v1482_v30 }
 0x1cc   : > { %v1663_v12 = vadd.f32 %v5806_v49, %v1629_v9  ;;  %v1661_v13 = vadd.f32 %v5806_v49, %v1627_v62 }
 0x1cd   : > { %v1580_v38 = vpop.permute.xlu1 %1579  ;;  %v1576_v50 = vpop.permute.xlu0 %1575 }
 0x1ce   : > { %vm1685_vm13 = vcmp.gt.f32.partialorder %v1663_v12, 0.0  ;;  %v1719_v35 = vmul.f32 %v5821_v56, %v1663_v12  ;;  %vm1683_vm14 = vcmp.gt.f32.partialorder %v1661_v13, 0.0  ;;  %v1717_v54 = vmul.f32 %v5821_v56, %v1661_v13 }
 0x1cf   : > { %v1630_v17 = vadd.f32 %v1580_v38, %v1485_v61  ;;  %v1628_v2 = vadd.f32 %v1576_v50, %v1483_v14  ;;  %v635_v61 = vmul.f32 %v5927_v6, %v5766_v22 }
 0x1d0   : > { %v1741_v23 = vsel %vm1685_vm13, %v1663_v12, %v1719_v35  ;;  %v1739_v5 = vsel %vm1683_vm14, %v1661_v13, %v1717_v54  ;;  %v637_v13 = vmul.f32 %v5971_v11, %v5766_v22  ;;  %v638_v35 = vmul.f32 %v5971_v11, %v5764_v21 }
 0x1d1   : > { %v1766_v52 = vsel %vm1751_vm0, %v1741_v23, -1e+30  ;;  %v1764_v7 = vsel %vm1751_vm0, %v1739_v5, -1e+30  ;;  %v1664_v16 = vadd.f32 %v5804_v48, %v1630_v17  ;;  %v1662_v20 = vadd.f32 %v5804_v48, %v1628_v2  ;;  %v735_v60 = vpop.permute.xlu1 %734  ;;  %v731_v0 = vpop.permute.xlu0 %730 }
 0x1d2   : > { %v6319_v29 = vmax.f32 %v1764_v7, %v1766_v52  ;;  %v782_v38 = vadd.f32 %v735_v60, %v637_v13  ;;  %v780_v50 = vadd.f32 %v731_v0, %v635_v61  ;;  %v636_v54 = vmul.f32 %v5927_v6, %v5764_v21 }
 0x1d3   : > { %vm1686_vm15 = vcmp.gt.f32.partialorder %v1664_v16, 0.0  ;;  %v1720_v51 = vmul.f32 %v5819_v55, %v1664_v16  ;;  %vm1684_vm1 = vcmp.gt.f32.partialorder %v1662_v20, 0.0  ;;  %v1718_v18 = vmul.f32 %v5819_v55, %v1662_v20 }
 0x1d4   : > { %2137 = vrot.lane.b32.xlu0 %v6319_v29, %s5372_s19  ;;  %v968_v52 = vmul.f32 %v6065_v45, %v5780_v33  ;;  %v966_v7 = vmul.f32 %v5971_v11, %v5780_v33 }
 0x1d5   : > { %v1742_v30 = vsel %vm1686_vm15, %v1664_v16, %v1720_v51  ;;  %v1740_v24 = vsel %vm1684_vm1, %v1662_v20, %v1718_v18  ;;  %v737_v8 = vpop.permute.xlu1 %736  ;;  %v733_v9 = vpop.permute.xlu0 %732 }
 0x1d6   : > { %v1767_v62 = vsel %vm1751_vm0, %v1742_v30, -1e+30  ;;  %v1765_v12 = vsel %vm1751_vm0, %v1740_v24, -1e+30  ;;  %v783_v16 = vadd.f32 %v737_v8, %v638_v35  ;;  %v781_v20 = vadd.f32 %v733_v9, %v636_v54 }
 0x1d7   : > { %v6333_v14 = vmax.f32 %v1765_v12, %v1767_v62  ;;  %v969_v24 = vmul.f32 %v6065_v45, %v5778_v32  ;;  %v967_v62 = vmul.f32 %v5971_v11, %v5778_v32 }
 0x1d8   : > { %2145 = vrot.lane.b32.xlu0 %v6319_v29, %s5373_s1 }
 0x1d9   : > { %2139 = vrot.lane.b32.xlu1 %v6333_v14, %s5372_s19  ;;  %v880_v17 = vpop.permute.xlu1 %879  ;;  %v876_v2 = vpop.permute.xlu0 %875 }
 0x1da   : > { %v927_v23 = vadd.f32 %v880_v17, %v782_v38  ;;  %v925_v5 = vadd.f32 %v876_v2, %v780_v50 }
 0x1dc   : > { %2153 = vrot.lane.b32.xlu0 %v6319_v29, %s7417_s23  ;;  %v990_v60 = vadd.f32 %v968_v52, %v927_v23  ;;  %v988_v6 = vadd.f32 %v966_v7, %v925_v5  ;;  %v1321_v23 = vmul.f32 %v6104_v19, %v5792_v40  ;;  %v1319_v5 = vmul.f32 %v6065_v45, %v5792_v40 }
 0x1dd   : > { %2147 = vrot.lane.b32.xlu1 %v6333_v14, %s5373_s1  ;;  %v882_v0 = vpop.permute.xlu1 %881  ;;  %v878_v51 = vpop.permute.xlu0 %877 }
 0x1de   : > { %v928_v18 = vadd.f32 %v882_v0, %v783_v16  ;;  %v926_v30 = vadd.f32 %v878_v51, %v781_v20 }
 0x1e0   : > { %2161 = vrot.lane.b32.xlu0 %v6319_v29, %s5375_s30  ;;  %v991_v8 = vadd.f32 %v969_v24, %v928_v18  ;;  %v989_v9 = vadd.f32 %v967_v62, %v926_v30 }
 0x1e1   : > { %2155 = vrot.lane.b32.xlu1 %v6333_v14, %s7417_s23  ;;  %v1088_v12 = vpop.permute.xlu1 %1087  ;;  %v1084_v13 = vpop.permute.xlu0 %1083 }
 0x1e2   : > { %v1135_v50 = vadd.f32 %v1088_v12, %v990_v60  ;;  %v1133_v35 = vadd.f32 %v1084_v13, %v988_v6  ;;  %v1322_v60 = vmul.f32 %v6104_v19, %v5790_v39  ;;  %v1320_v6 = vmul.f32 %v6065_v45, %v5790_v39 }
 0x1e5   : > { %2163 = vrot.lane.b32.xlu1 %v6333_v14, %s5375_s30  ;;  %v1090_v61 = vpop.permute.xlu1 %1089  ;;  %v1086_v38 = vpop.permute.xlu0 %1085 }
 0x1e6   : > { %v1136_v52 = vadd.f32 %v1090_v61, %v991_v8  ;;  %v1134_v7 = vadd.f32 %v1086_v38, %v989_v9 }
 0x1e9   : > { %v1233_v54 = vpop.permute.xlu1 %1232  ;;  %v1229_v17 = vpop.permute.xlu0 %1228 }
 0x1ea   : > { %v1280_v11 = vadd.f32 %v1233_v54, %v1135_v50  ;;  %v1278_v2 = vadd.f32 %v1229_v17, %v1133_v35 }
 0x1ec   : > { %v1343_v16 = vadd.f32 %v1321_v23, %v1280_v11  ;;  %v1341_v20 = vadd.f32 %v1319_v5, %v1278_v2 }
 0x1ed   : > { %v1235_v0 = vpop.permute.xlu1 %1234  ;;  %v1231_v51 = vpop.permute.xlu0 %1230 }
 0x1ee   : > { %v1281_v18 = vadd.f32 %v1235_v0, %v1136_v52  ;;  %v1279_v30 = vadd.f32 %v1231_v51, %v1134_v7 }
 0x1f0   : > { %v1344_v24 = vadd.f32 %v1322_v60, %v1281_v18  ;;  %v1342_v62 = vadd.f32 %v1320_v6, %v1279_v30 }
 0x1f1   : > { %v1441_v12 = vpop.permute.xlu1 %1440  ;;  %v1437_v13 = vpop.permute.xlu0 %1436 }
 0x1f2   : > { %v1488_v8 = vadd.f32 %v1441_v12, %v1343_v16  ;;  %v1486_v9 = vadd.f32 %v1437_v13, %v1341_v20 }
 0x1f5   : > { %v1443_v50 = vpop.permute.xlu1 %1442  ;;  %v1439_v35 = vpop.permute.xlu0 %1438 }
 0x1f6   : > { %v1489_v23 = vadd.f32 %v1443_v50, %v1344_v24  ;;  %v1487_v5 = vadd.f32 %v1439_v35, %v1342_v62 }
 0x1f9   : > { %v1586_v61 = vpop.permute.xlu1 %1585  ;;  %v1582_v38 = vpop.permute.xlu0 %1581 }
 0x1fa   : > { %v1633_v54 = vadd.f32 %v1586_v61, %v1488_v8  ;;  %v1631_v17 = vadd.f32 %v1582_v38, %v1486_v9 }
 0x1fc   : > { %v1667_v11 = vadd.f32 %v5806_v49, %v1633_v54  ;;  %v1665_v2 = vadd.f32 %v5806_v49, %v1631_v17 }
 0x1fd   : > { %v1588_v52 = vpop.permute.xlu1 %1587  ;;  %v1584_v7 = vpop.permute.xlu0 %1583 }
 0x1fe   : > { %vm1689_vm2 = vcmp.gt.f32.partialorder %v1667_v11, 0.0  ;;  %v1723_v0 = vmul.f32 %v5821_v56, %v1667_v11  ;;  %vm1687_vm3 = vcmp.gt.f32.partialorder %v1665_v2, 0.0  ;;  %v1721_v51 = vmul.f32 %v5821_v56, %v1665_v2 }
 0x1ff   : > { %v1634_v16 = vadd.f32 %v1588_v52, %v1489_v23  ;;  %v1632_v20 = vadd.f32 %v1584_v7, %v1487_v5 }
 0x200   : > { %v1745_v18 = vsel %vm1689_vm2, %v1667_v11, %v1723_v0  ;;  %v1743_v30 = vsel %vm1687_vm3, %v1665_v2, %v1721_v51  ;;  %vm3372_vm3 = vcmask 916480  }
 0x201   : > { %v1770_v60 = vsel %vm1751_vm0, %v1745_v18, -1e+30  ;;  %v1768_v6 = vsel %vm1751_vm0, %v1743_v30, -1e+30  ;;  %v1668_v24 = vadd.f32 %v5804_v48, %v1634_v16  ;;  %v1666_v62 = vadd.f32 %v5804_v48, %v1632_v20  ;;  %v1781_v12 = vpop.permute.xlu1 %1780  ;;  %v1779_v13 = vpop.permute.xlu0 %1778 }
 0x202   : > { %v6379_v50 = vmax.f32 %v1768_v6, %v1770_v60  ;;  %v1785_v23 = vmax.f32 %v6016_v36, %v1781_v12  ;;  %v1784_v5 = vmax.f32 %v5994_v26, %v1779_v13  ;;  %v819_v13 = vmul.f32 %v6065_v45, %v5610_v31 }
 0x203   : > { %vm1690_vm4 = vcmp.gt.f32.partialorder %v1668_v24, 0.0  ;;  %v1724_v35 = vmul.f32 %v5819_v55, %v1668_v24  ;;  %vm1688_vm5 = vcmp.gt.f32.partialorder %v1666_v62, 0.0  ;;  %v1722_v8 = vmul.f32 %v5819_v55, %v1666_v62 }
 0x204   : > { %2254 = vrot.lane.b32.xlu0 %v6379_v50, %s5372_s19  ;;  %v1027_v31 = vmul.f32 %v6104_v19, %v5626_v37 }
 0x205   : > { %v1746_v9 = vsel %vm1690_vm4, %v1668_v24, %v1724_v35  ;;  %v1744_v61 = vsel %vm1688_vm5, %v1666_v62, %v1722_v8  ;;  %v1789_v38 = vpop.permute.xlu1 %1788  ;;  %v1787_v54 = vpop.permute.xlu0 %1786  ;;  %v674_v24 = vmul.f32 %v6065_v45, %v5596_v25  ;;  %v675_v35 = vmul.f32 %v6065_v45, %v5604_v28 }
 0x206   : > { %v1771_v17 = vsel %vm1751_vm0, %v1746_v9, -1e+30  ;;  %v1769_v11 = vsel %vm1751_vm0, %v1744_v61, -1e+30  ;;  %v1793_v0 = vmax.f32 %v1785_v23, %v1789_v38  ;;  %v1792_v51 = vmax.f32 %v1784_v5, %v1787_v54 }
 0x207   : > { %v6389_v2 = vmax.f32 %v1769_v11, %v1771_v17  ;;  %v820_v28 = vmul.f32 %v6065_v45, %v5620_v34  ;;  %v1172_v5 = vmul.f32 %v6104_v19, %v5645_v44  ;;  %v1028_v34 = vmul.f32 %v6104_v19, %v5637_v41  ;;  %v6438_v45 = vld [vmem:[%s5588_s18 + $0xc] ss:$0 sm:$0xff] }
 0x208   : > { %2262 = vrot.lane.b32.xlu0 %v6379_v50, %s5373_s1  ;;  %v1173_v41 = vmul.f32 %v6104_v19, %v5653_v47  ;;  %vm5378_vm4 = vmmov 0  }
 0x209   : > { %2256 = vrot.lane.b32.xlu1 %v6389_v2, %s5372_s19  ;;  %v1797_v52 = vpop.permute.xlu1 %1796  ;;  %v1795_v7 = vpop.permute.xlu0 %1794 }
 0x20a   : > { %v1801_v16 = vmax.f32 %v1793_v0, %v1797_v52  ;;  %v1800_v20 = vmax.f32 %v1792_v51, %v1795_v7  ;;  %v1380_v7 = vmul.f32 %v6438_v45, %v5670_v53  ;;  %v1381_v53 = vmul.f32 %v6438_v45, %v5684_v58 }
 0x20c   : > { %2270 = vrot.lane.b32.xlu0 %v6379_v50, %s7417_s23 }
 0x20d   : > { %2264 = vrot.lane.b32.xlu1 %v6389_v2, %s5373_s1  ;;  %v1805_v36 = vpop.permute.xlu1 %1804  ;;  %v1803_v26 = vpop.permute.xlu0 %1802 }
 0x20e   : > { %v1809_v18 = vmax.f32 %v1801_v16, %v1805_v36  ;;  %v1808_v30 = vmax.f32 %v1800_v20, %v1803_v26  ;;  %v1525_v16 = vmul.f32 %v6438_v45, %v5698_v63  ;;  %v1526_v63 = vmul.f32 %v6438_v45, %v5712_v4 }
 0x210   : > { %2278 = vrot.lane.b32.xlu0 %v6379_v50, %s5375_s30  ;;  %4476 = vmatprep.mubr.msk.f32.mxu0 %vm1817_vm6, %v1808_v30 }
 0x211   : > { %2272 = vrot.lane.b32.xlu1 %v6389_v2, %s7417_s23  ;;  %v1906_v60 = vpop.permute.xlu1 %1905  ;;  %4477 = vmatmul.mubr.msk.f32.vlgmr.msra.gmra.mrb[0].mxu0 %vm1817_vm6, %v1809_v18  ;;  %v1904_v6 = vpop.permute.xlu0 %1903 }
 0x212   : > { %4635 = vmatpush3.bf16.msra.mxu0 %v6162_v1  ;;  %v1910_v25 = vmax.f32 %v6150_v42, %v1906_v60  ;;  %v1909_v8 = vmax.f32 %v6128_v46, %v1904_v6 }
 0x213   : > { %4637 = vmatprep.subr.bf16.mxu0 %v6176_v10 }
 0x214   : > { %738 = vrot.lane.b32.xlu0 %v674_v24, %s5372_s19 }
 0x215   : > { %2280 = vrot.lane.b32.xlu1 %v6389_v2, %s5375_s30  ;;  %v1914_v62 = vpop.permute.xlu1 %1913  ;;  %v1912_v12 = vpop.permute.xlu0 %1911 }
 0x216   : > { %4639 = vmatpush3.bf16.msra.mxu0 %v6176_v10  ;;  %v1918_v38 = vmax.f32 %v1910_v25, %v1914_v62  ;;  %v1917_v54 = vmax.f32 %v1909_v8, %v1912_v12 }
 0x217   : > { %4641 = vmatprep.subr.bf16.mxu0 %v6193_v15 }
 0x218   : > { %883 = vrot.lane.b32.xlu0 %v819_v13, %s5373_s1 }
 0x219   : > { %740 = vrot.lane.b32.xlu1 %v675_v35, %s5372_s19  ;;  %v1922_v9 = vpop.permute.xlu1 %1921  ;;  %v1920_v61 = vpop.permute.xlu0 %1919 }
 0x21a   : > { %4643 = vmatpush3.bf16.msra.mxu0 %v6193_v15  ;;  %v1926_v46 = vmax.f32 %v1918_v38, %v1922_v9  ;;  %v1925_v42 = vmax.f32 %v1917_v54, %v1920_v61 }
 0x21b   : > { %4508 = vmatprep.subr.mxu0 %v6211_v43 }
 0x21c   : > { %1091 = vrot.lane.b32.xlu0 %v1027_v31, %s5372_s19 }
 0x21d   : > { %885 = vrot.lane.b32.xlu1 %v820_v28, %s5373_s1  ;;  %v1930_v17 = vpop.permute.xlu1 %1929  ;;  %v1928_v11 = vpop.permute.xlu0 %1927 }
 0x21e   : > { %v1934_v23 = vmax.f32 %v1926_v46, %v1930_v17  ;;  %v1933_v37 = vmax.f32 %v1925_v42, %v1928_v11  ;;  %4509 = vmatpush3.msra.mxu0 %v6211_v43 }
 0x21f   : > { %4657 = vmatprep.subr.bf16.mxu0 %v6162_v1 }
 0x220   : > { %1236 = vrot.lane.b32.xlu0 %v1172_v5, %s5373_s1  ;;  %4493 = vmatprep.mubr.msk.f32.mxu1 %vm1817_vm6, %v1933_v37 }
 0x221   : > { %1093 = vrot.lane.b32.xlu1 %v1028_v34, %s5372_s19  ;;  %v2023_v52 = vpop.permute.xlu1 %2022  ;;  %4494 = vmatmul.mubr.msk.f32.vlgmr.msra.gmra.mrb[0].mxu1 %vm1817_vm6, %v1934_v23  ;;  %v2021_v44 = vpop.permute.xlu0 %2020 }
 0x222   : > { %4647 = vmatpush3.bf16.msra.mxu1 %v6162_v1  ;;  %v2027_v47 = vmax.f32 %v6263_v57, %v2023_v52  ;;  %v2026_v19 = vmax.f32 %v6247_v3, %v2021_v44 }
 0x223   : > { %4649 = vmatprep.subr.bf16.mxu1 %v6176_v10 }
 0x224   : > { %1444 = vrot.lane.b32.xlu0 %v1380_v7, %s5372_s19 }
 0x225   : > { %1238 = vrot.lane.b32.xlu1 %v1173_v41, %s5373_s1  ;;  %v2031_v0 = vpop.permute.xlu1 %2030  ;;  %v2029_v51 = vpop.permute.xlu0 %2028 }
 0x226   : > { %4651 = vmatpush3.bf16.msra.mxu1 %v6176_v10  ;;  %v2035_v26 = vmax.f32 %v2027_v47, %v2031_v0  ;;  %v2034_v18 = vmax.f32 %v2026_v19, %v2029_v51  ;;  %v5273_v0 = vld [vmem:[%s5588_s18 + $0xa] ss:$0 sm:$0xff]  ;;  %v5274_v19 = vld [vmem:[%s5588_s18 + $0xb] ss:$0 sm:$0xff] }
 0x227   : > { %4653 = vmatprep.subr.bf16.mxu1 %v6193_v15  ;;  %v639_v51 = vmul.f32 %v5273_v0, %v5766_v22 }
 0x228   : > { %1589 = vrot.lane.b32.xlu0 %v1525_v16, %s5373_s1 }
 0x229   : > { %1446 = vrot.lane.b32.xlu1 %v1381_v53, %s5372_s19  ;;  %v2039_v20 = vpop.permute.xlu1 %2038  ;;  %v2037_v36 = vpop.permute.xlu0 %2036 }
 0x22a   : > { %4655 = vmatpush3.bf16.msra.mxu1 %v6193_v15  ;;  %v2043_v58 = vmax.f32 %v2035_v26, %v2039_v20  ;;  %v2042_v30 = vmax.f32 %v2034_v18, %v2037_v36  ;;  %v970_v20 = vmul.f32 %v5274_v19, %v5780_v33  ;;  %v640_v36 = vmul.f32 %v5273_v0, %v5764_v21 }
 0x22b   : > { %4525 = vmatprep.subr.mxu1 %v6211_v43 }
 0x22d   : > { %1591 = vrot.lane.b32.xlu1 %v1526_v63, %s5373_s1  ;;  %v2047_v3 = vpop.permute.xlu1 %2046  ;;  %v2045_v57 = vpop.permute.xlu0 %2044 }
 0x22e   : > { %v2051_v60 = vmax.f32 %v2043_v58, %v2047_v3  ;;  %v2050_v6 = vmax.f32 %v2042_v30, %v2045_v57  ;;  %4526 = vmatpush3.msra.mxu1 %v6211_v43  ;;  %v971_v3 = vmul.f32 %v5274_v19, %v5778_v32 }
 0x22f   : > { %4669 = vmatprep.subr.bf16.mxu1 %v6162_v1 }
 0x230   : > { %4510 = vmatprep.mubr.msk.f32.mxu0 %vm1817_vm6, %v2050_v6 }
 0x231   : > { %4511 = vmatmul.mubr.msk.f32.vlgmr.msra.gmra.mrb[2].mxu0 %vm1817_vm6, %v2051_v60 }
 0x232   : > { %4659 = vmatpush3.bf16.msra.mxu0 %v6162_v1 }
 0x233   : > { %4661 = vmatprep.subr.bf16.mxu0 %v6176_v10 }
 0x236   : > { %4663 = vmatpush3.bf16.msra.mxu0 %v6176_v10 }
 0x237   : > { %4665 = vmatprep.subr.bf16.mxu0 %v6193_v15 }
 0x23a   : > { %4667 = vmatpush3.bf16.msra.mxu0 %v6193_v15 }
 0x23b   : > { %4542 = vmatprep.subr.mxu0 %v6211_v43 }
 0x23e   : > { %4543 = vmatpush3.msra.mxu0 %v6211_v43 }
 0x246   : > { %v2138_v4 = vpop.permute.xlu0 %2137 }
 0x247   : > { %v2143_v12 = vmax.f32 %v6319_v29, %v2138_v4 }
 0x24a   : > { %v2146_v24 = vpop.permute.xlu0 %2145 }
 0x24b   : > { %v2140_v62 = vpop.permute.xlu1 %2139  ;;  %v2151_v35 = vmax.f32 %v2143_v12, %v2146_v24  ;;  %v1323_v24 = vmul.f32 %v6438_v45, %v5792_v40 }
 0x24c   : > { %v2144_v9 = vmax.f32 %v6333_v14, %v2140_v62 }
 0x24e   : > { %v2154_v13 = vpop.permute.xlu0 %2153 }
 0x24f   : > { %v2148_v25 = vpop.permute.xlu1 %2147  ;;  %v2159_v8 = vmax.f32 %v2151_v35, %v2154_v13  ;;  %v1324_v35 = vmul.f32 %v6438_v45, %v5790_v39 }
 0x250   : > { %v2152_v31 = vmax.f32 %v2144_v9, %v2148_v25 }
 0x252   : > { %v2162_v61 = vpop.permute.xlu0 %2161 }
 0x253   : > { %v2156_v38 = vpop.permute.xlu1 %2155  ;;  %v2167_v54 = vmax.f32 %v2159_v8, %v2162_v61 }
 0x254   : > { %v2160_v28 = vmax.f32 %v2152_v31, %v2156_v38 }
 0x255   : > { %4527 = vmatprep.mubr.msk.f32.mxu1 %vm1817_vm6, %v2167_v54 }
 0x257   : > { %v2164_v46 = vpop.permute.xlu1 %2163 }
 0x258   : > { %v2168_v42 = vmax.f32 %v2160_v28, %v2164_v46 }
 0x25a   : > { %4528 = vmatmul.mubr.msk.f32.vlgmr.msra.gmra.mrb[2].mxu1 %vm1817_vm6, %v2168_v42 }
 0x25b   : > { %4671 = vmatpush3.bf16.msra.mxu1 %v6162_v1 }
 0x25c   : > { %4673 = vmatprep.subr.bf16.mxu1 %v6176_v10 }
 0x25f   : > { %4675 = vmatpush3.bf16.msra.mxu1 %v6176_v10 }
 0x260   : > { %4677 = vmatprep.subr.bf16.mxu1 %v6193_v15 }
 0x263   : > { %4679 = vmatpush3.bf16.msra.mxu1 %v6193_v15 }
 0x264   : > { %4559 = vmatprep.subr.mxu1 %v6211_v43 }
 0x267   : > { %4560 = vmatpush3.msra.mxu1 %v6211_v43 }
 0x276   : > { %v2255_v29 = vpop.permute.xlu0 %2254 }
 0x277   : > { %v2260_v11 = vmax.f32 %v6379_v50, %v2255_v29 }
 0x27a   : > { %v2263_v14 = vpop.permute.xlu0 %2262 }
 0x27b   : > { %v2257_v17 = vpop.permute.xlu1 %2256  ;;  %v2268_v1 = vmax.f32 %v2260_v11, %v2263_v14 }
 0x27c   : > { %v2261_v10 = vmax.f32 %v6389_v2, %v2257_v17 }
 0x27e   : > { %v2271_v23 = vpop.permute.xlu0 %2270 }
 0x27f   : > { %v2265_v5 = vpop.permute.xlu1 %2264  ;;  %v2276_v37 = vmax.f32 %v2268_v1, %v2271_v23 }
 0x280   : > { %v2269_v44 = vmax.f32 %v2261_v10, %v2265_v5 }
 0x282   : > { %v2279_v34 = vpop.permute.xlu0 %2278 }
 0x283   : > { %v2273_v52 = vpop.permute.xlu1 %2272  ;;  %v2284_v15 = vmax.f32 %v2276_v37, %v2279_v34 }
 0x284   : > { %v2277_v43 = vmax.f32 %v2269_v44, %v2273_v52 }
 0x285   : > { %4544 = vmatprep.mubr.msk.f32.mxu0 %vm1817_vm6, %v2284_v15 }
 0x286   : > { %v739_v7 = vpop.permute.xlu0 %738 }
 0x287   : > { %v2281_v41 = vpop.permute.xlu1 %2280  ;;  %v784_v16 = vadd.f32 %v739_v7, %v639_v51 }
 0x288   : > { %v2285_v50 = vmax.f32 %v2277_v43, %v2281_v41 }
 0x28a   : > { %4545 = vmatmul.mubr.msk.f32.vlgmr.msra.gmra.mrb[4].mxu0 %vm1817_vm6, %v2285_v50  ;;  %v884_v53 = vpop.permute.xlu0 %883 }
 0x28b   : > { %v741_v47 = vpop.permute.xlu1 %740  ;;  %v929_v2 = vadd.f32 %v884_v53, %v784_v16 }
 0x28c   : > { %v785_v18 = vadd.f32 %v741_v47, %v640_v36 }
 0x28d   : > { %v992_v26 = vadd.f32 %v970_v20, %v929_v2 }
 0x28e   : > { %v1092_v63 = vpop.permute.xlu0 %1091 }
 0x28f   : > { %v886_v58 = vpop.permute.xlu1 %885  ;;  %v1137_v22 = vadd.f32 %v1092_v63, %v992_v26 }
 0x290   : > { %v930_v30 = vadd.f32 %v886_v58, %v785_v18 }
 0x292   : > { %v993_v57 = vadd.f32 %v971_v3, %v930_v30  ;;  %v1237_v60 = vpop.permute.xlu0 %1236 }
 0x293   : > { %v1094_v6 = vpop.permute.xlu1 %1093  ;;  %v1282_v4 = vadd.f32 %v1237_v60, %v1137_v22 }
 0x294   : > { %v1138_v12 = vadd.f32 %v1094_v6, %v993_v57 }
 0x295   : > { %v1345_v62 = vadd.f32 %v1323_v24, %v1282_v4 }
 0x296   : > { %v1445_v33 = vpop.permute.xlu0 %1444 }
 0x297   : > { %v1239_v13 = vpop.permute.xlu1 %1238  ;;  %v1490_v25 = vadd.f32 %v1445_v33, %v1345_v62 }
 0x298   : > { %v1283_v21 = vadd.f32 %v1239_v13, %v1138_v12 }
 0x29a   : > { %v1346_v8 = vadd.f32 %v1324_v35, %v1283_v21  ;;  %v1590_v9 = vpop.permute.xlu0 %1589 }
 0x29b   : > { %v1447_v32 = vpop.permute.xlu1 %1446  ;;  %v1635_v61 = vadd.f32 %v1590_v9, %v1490_v25 }
 0x29c   : > { %v1491_v54 = vadd.f32 %v1447_v32, %v1346_v8 }
 0x29d   : > { %v1669_v38 = vadd.f32 %v5806_v49, %v1635_v61 }
 0x29f   : > { %vm1691_vm7 = vcmp.gt.f32.partialorder %v1669_v38, 0.0  ;;  %v1725_v31 = vmul.f32 %v5821_v56, %v1669_v38  ;;  %v1592_v40 = vpop.permute.xlu1 %1591 }
 0x2a0   : > { %v1636_v28 = vadd.f32 %v1592_v40, %v1491_v54 }
 0x2a1   : > { %v1747_v46 = vsel %vm1691_vm7, %v1669_v38, %v1725_v31 }
 0x2a2   : > { %v1670_v42 = vadd.f32 %v5804_v48, %v1636_v28  ;;  %v6509_v29 = vsel %vm1751_vm0, %v1747_v46, -1e+30  ;;  %v5376_v48 = vmov 0.0|0.0  }
 0x2a3   : > { %2369 = vrot.lane.b32.xlu1 %v6509_v29, %s5372_s19  ;;  %4680 = vmatprep.subr.bf16.mxu0 %v5376_v48 }
 0x2a4   : > { %vm1692_vm8 = vcmp.gt.f32.partialorder %v1670_v42, 0.0  ;;  %v1726_v39 = vmul.f32 %v5819_v55, %v1670_v42  ;;  %4707 = vmatprep.subr.bf16.mxu1 %v5376_v48 }
 0x2a6   : > { %v1748_v49 = vsel %vm1692_vm8, %v1670_v42, %v1726_v39 }
 0x2a7   : > { %v6516_v45 = vsel %vm1751_vm0, %v1748_v49, -1e+30  ;;  %2377 = vrot.lane.b32.xlu1 %v6509_v29, %s5373_s1  ;;  %vm2484_vm0 = vcmask 1041408  }
 0x2a8   : > { %2371 = vrot.lane.b32.xlu0 %v6516_v45, %s5372_s19 }
 0x2ab   : > { %2379 = vrot.lane.b32.xlu1 %v6516_v45, %s5373_s1 }
 0x2ac   : > { %2385 = vrot.lane.b32.xlu0 %v6509_v29, %s7417_s23 }
 0x2af   : > { %2387 = vrot.lane.b32.xlu1 %v6516_v45, %s7417_s23 }
 0x2b0   : > { %2393 = vrot.lane.b32.xlu0 %v6509_v29, %s5375_s30 }
 0x2e4   : > { %v6532_v55 = vpop.f32.mrb[0].mxu0 }
 0x2e5   : > { %v2486_v56 = vrot.slane %v6532_v55, 6  ;;  %v2496_v59 = vrot.slane %v6532_v55, 4  ;;  %v2506_v14 = vrot.slane %v6532_v55, 2  ;;  %v6537_v17 = vpop.f32.mrb[1].mxu0 }
 0x2e6   : > { %v2485_v11 = vrot.slane %v6537_v17, 6  ;;  %v2495_v23 = vrot.slane %v6537_v17, 4  ;;  %v2505_v1 = vrot.slane %v6537_v17, 2  ;;  %v4960_v5 = vpack.i.bf16 %v6532_v55, %v6537_v17 }
 0x2e8   : > { %4961 = vrot.lane.b32.xlu1 %v4960_v5, %s5375_s30  ;;  %v2487_v37 = vsel %vm2484_vm0, %v2485_v11, %v2486_v56  ;;  %v2497_v10 = vsel %vm2494_vm9, %v2495_v23, %v2496_v59  ;;  %v2507_v34 = vsel %vm2504_vm10, %v2505_v1, %v2506_v14 }
 0x2e9   : > { %v4965_v52 = vpack.i.bf16 %v2487_v37, %v2485_v11  ;;  %v4970_v15 = vpack.i.bf16 %v2497_v10, %v2495_v23  ;;  %v4980_v44 = vpack.i.bf16 %v2507_v34, %v2505_v1  ;;  %v6653_v37 = vld [vmem:[%s7401_s5 + $0x8] sm:$0xff] }
 0x2ea   : > { %4355 = vmatprep.mubr.msk.f32.mxu0 %vm2620_vm11, %v6653_v37 }
 0x2eb   : > { %4966 = vrot.lane.b32.xlu0 %v4965_v52, %s5372_s19 }
 0x2ec   : > { %4971 = vrot.lane.b32.xlu1 %v4970_v15, %s5373_s1 }
 0x2ef   : > { %2395 = vrot.lane.b32.xlu0 %v6516_v45, %s5375_s30 }
 0x2f3   : > { %4981 = vrot.lane.b32.xlu0 %v4980_v44, %s7417_s23 }
 0x2f4   : > { %v6553_v43 = vpop.f32.mrb[0].mxu1 }
 0x2f5   : > { %v2528_v7 = vrot.slane %v6553_v43, 4  ;;  %v2537_v41 = vrot.slane %v6553_v43, 2  ;;  %v6557_v0 = vpop.f32.mrb[1].mxu1  ;;  %v2523_v20 = vrot.slane %v6553_v43, 6 }
 0x2f6   : > { %v2527_v51 = vrot.slane %v6557_v0, 4  ;;  %v2536_v50 = vrot.slane %v6557_v0, 2  ;;  %v4975_v16 = vpack.i.bf16 %v6557_v0, %v6553_v43  ;;  %v6568_v36 = vrot.slane %v6557_v0, 6 }
 0x2f8   : > { %4976 = vrot.lane.b32.xlu1 %v4975_v16, %s7417_s23  ;;  %v2529_v53 = vsel %vm2494_vm9, %v2527_v51, %v2528_v7  ;;  %v2538_v47 = vsel %vm2504_vm10, %v2536_v50, %v2537_v41  ;;  %v6574_v26 = vsel %vm2484_vm0, %v6568_v36, %v2523_v20 }
 0x2f9   : > { %v4985_v2 = vpack.i.bf16 %v2529_v53, %v2527_v51  ;;  %v5005_v19 = vpack.i.bf16 %v2538_v47, %v2536_v50  ;;  %v4995_v18 = vpack.i.bf16 %v6574_v26, %v6568_v36 }
 0x2fb   : > { %4986 = vrot.lane.b32.xlu0 %v4985_v2, %s5372_s19 }
 0x2fc   : > { %5006 = vrot.lane.b32.xlu1 %v5005_v19, %s7417_s23 }
 0x2ff   : > { %4991 = vrot.lane.b32.xlu0 %v5005_v19, %s5373_s1 }
 0x303   : > { %4996 = vrot.lane.b32.xlu0 %v4995_v18, %s5375_s30 }
 0x304   : > { %v6580_v63 = vpop.f32.mrb[2].mxu0 }
 0x305   : > { %v6582_v58 = vpop.f32.mrb[3].mxu0  ;;  %v2565_v30 = vrot.slane %v6580_v63, 2  ;;  %v2580_v35 = vrot.slane %v6580_v63, 6  ;;  %v2560_v9 = vrot.slane %v6580_v63, 4 }
 0x306   : > { %v2564_v3 = vrot.slane %v6582_v58, 2  ;;  %v5010_v22 = vpack.i.bf16 %v6580_v63, %v6582_v58  ;;  %v5035_v57 = vpack.i.bf16 %v6582_v58, %v6580_v63  ;;  %v6592_v60 = vrot.slane %v6582_v58, 4 }
 0x307   : > { %5001 = vrot.lane.b32.xlu0 %v4985_v2, %s5373_s1  ;;  %v6602_v12 = vrot.slane %v6582_v58, 6 }
 0x308   : > { %v5015_v6 = vpack.i.bf16 %v2564_v3, %v6568_v36  ;;  %v2566_v4 = vsel %vm2504_vm10, %v2564_v3, %v2565_v30  ;;  %v5020_v62 = vpack.i.bf16 %v6592_v60, %v6557_v0  ;;  %v6622_v28 = vsel %vm2494_vm9, %v6592_v60, %v2560_v9 }
 0x309   : > { %v5055_v24 = vpack.i.bf16 %v2566_v4, %v2564_v3  ;;  %v5025_v33 = vpack.i.bf16 %v2566_v4, %v6574_v26  ;;  %v5030_v13 = vpack.i.bf16 %v6602_v12, %v6553_v43  ;;  %v6615_v61 = vsel %vm2484_vm0, %v6602_v12, %v2580_v35 }
 0x30a   : > { %5016 = vrot.lane.b32.xlu1 %v5015_v6, %s5372_s19  ;;  %v5060_v31 = vpack.i.bf16 %v6582_v58, %v6615_v61  ;;  %v5045_v34 = vpack.i.bf16 %v6615_v61, %v6602_v12 }
 0x30b   : > { %5011 = vrot.lane.b32.xlu0 %v5010_v22, %s5373_s1 }
 0x30e   : > { %5021 = vrot.lane.b32.xlu1 %v5020_v62, %s5375_s30 }
 0x312   : > { %5026 = vrot.lane.b32.xlu1 %v5025_v33, %s5372_s19 }
 0x315   : > { %v2370_v21 = vpop.permute.xlu1 %2369 }
 0x316   : > { %5031 = vrot.lane.b32.xlu1 %v5030_v13, %s5375_s30  ;;  %v2375_v32 = vmax.f32 %v6509_v29, %v2370_v21  ;;  %v5070_v29 = vpack.i.bf16 %v6622_v28, %v6592_v60 }
 0x319   : > { %v2378_v8 = vpop.permute.xlu1 %2377 }
 0x31a   : > { %v2372_v25 = vpop.permute.xlu0 %2371  ;;  %5036 = vrot.lane.b32.xlu1 %v5035_v57, %s7417_s23  ;;  %v2383_v54 = vmax.f32 %v2375_v32, %v2378_v8 }
 0x31b   : > { %v2376_v20 = vmax.f32 %v6516_v45, %v2372_v25 }
 0x31d   : > { %v2380_v47 = vpop.permute.xlu1 %2379 }
 0x31e   : > { %v2386_v38 = vpop.permute.xlu0 %2385  ;;  %5056 = vrot.lane.b32.xlu1 %v5055_v24, %s5373_s1  ;;  %v2384_v3 = vmax.f32 %v2376_v20, %v2380_v47  ;;  %v2609_v20 = vld [vmem:[%s7402_s6 + $0x8] sm:$0xff] }
 0x31f   : > { %v2391_v40 = vmax.f32 %v2383_v54, %v2386_v38 }
 0x321   : > { %v2388_v2 = vpop.permute.xlu1 %2387 }
 0x322   : > { %v2394_v46 = vpop.permute.xlu0 %2393  ;;  %5061 = vrot.lane.b32.xlu1 %v5060_v31, %s5375_s30  ;;  %v2392_v33 = vmax.f32 %v2384_v3, %v2388_v2 }
 0x323   : > { %v2399_v42 = vmax.f32 %v2391_v40, %v2394_v46 }
 0x325   : > { %4561 = vmatprep.mubr.msk.f32.mxu1 %vm1817_vm6, %v2399_v42 }
 0x326   : > { %5071 = vrot.lane.b32.xlu1 %v5070_v29, %s5373_s1 }
 0x32d   : > { %v6629_v39 = vpop.f32.mrb[2].mxu1 }
 0x32e   : > { %v6631_v49 = vpop.f32.mrb[3].mxu1  ;;  %v2780_v11 = vrot.slane %v6629_v39, 2  ;;  %v2795_v44 = vrot.slane %v6629_v39, 6  ;;  %v2775_v41 = vrot.slane %v6629_v39, 4 }
 0x32f   : > { %v6634_v56 = vrot.slane %v6631_v49, 4  ;;  %v5075_v59 = vpack.i.bf16 %v6629_v39, %v6631_v49  ;;  %v6639_v14 = vrot.slane %v6631_v49, 2  ;;  %v5105_v23 = vpack.i.bf16 %v6631_v49, %v6629_v39 }
 0x330   : > { %v6676_v7 = vrot.slane %v6631_v49, 6 }
 0x331   : > { %5076 = vrot.lane.b32.xlu1 %v5075_v59, %s5373_s1  ;;  %v5040_v1 = vpack.i.bf16 %v6639_v14, %v6602_v12  ;;  %v5080_v5 = vpack.i.bf16 %v6580_v63, %v6634_v56  ;;  %v6657_v10 = vsel %vm2504_vm10, %v6639_v14, %v2780_v11  ;;  %v6691_v16 = vsel %vm2494_vm9, %v6634_v56, %v2775_v41  ;;  %v2608_v59 = vld [vmem:[%s7402_s6] sm:$0xff] }
 0x332   : > { %v5100_v52 = vpack.i.bf16 %v6657_v10, %v6639_v14  ;;  %v5065_v15 = vpack.i.bf16 %v6657_v10, %v6615_v61  ;;  %v6682_v51 = vsel %vm2484_vm0, %v6676_v7, %v2795_v44  ;;  %v6697_v53 = vpack.i.bf16 %v6691_v16, %v6634_v56  ;;  %v2706_v44 = vld [vmem:[%s7403_s7] sm:$0xff] }
 0x333   : > { %5041 = vrot.lane.b32.xlu0 %v5040_v1, %s5372_s19  ;;  %v6687_v50 = vpack.i.bf16 %v6682_v51, %v6676_v7 }
 0x335   : > { %5081 = vrot.lane.b32.xlu1 %v5080_v5, %s5375_s30 }
 0x337   : > { %5046 = vrot.lane.b32.xlu0 %v5045_v34, %s7417_s23 }
 0x339   : > { %5101 = vrot.lane.b32.xlu1 %v5100_v52, %s5373_s1 }
 0x33b   : > { %5051 = vrot.lane.b32.xlu0 %v5070_v29, %s5372_s19 }
 0x33d   : > { %5106 = vrot.lane.b32.xlu1 %v5105_v23, %s7417_s23 }
 0x33f   : > { %2590 = vrot.lane.b32.xlu0 %v6622_v28, %s5375_s30 }
 0x343   : > { %5066 = vrot.lane.b32.xlu0 %v5065_v15, %s5372_s19 }
 0x347   : > { %5086 = vrot.lane.b32.xlu0 %v5055_v24, %s7417_s23 }
 0x34b   : > { %5091 = vrot.lane.b32.xlu0 %v6687_v50, %s7417_s23 }
 0x34f   : > { %5096 = vrot.lane.b32.xlu0 %v6697_v53, %s5372_s19 }
 0x353   : > { %2805 = vrot.lane.b32.xlu0 %v6691_v16, %s5375_s30 }
 0x357   : > { %5111 = vrot.lane.b32.xlu0 %v6687_v50, %s5375_s30 }
 0x35a   : > { %v4962_v19 = vpop.permute.xlu1 %4961 }
 0x35b   : > { %v4963_v52 = vunpack.i.l.bf16 %v4962_v19  ;;  %v4964_v41 = vunpack.i.h.bf16 %v4962_v19 }
 0x35d   : > { %v6706_v18 = vpop.f32.mrb[4].mxu0  ;;  %v4967_v30 = vpop.permute.xlu0 %4966  ;;  %v2596_v3 = vsel %vm2484_vm0, %v4964_v41, %v6568_v36 }
 0x35e   : > { %v2960_v22 = vrot.slane %v6706_v18, 2  ;;  %v6709_v57 = vpop.f32.mrb[5].mxu0  ;;  %v4968_v6 = vunpack.i.l.bf16 %v4967_v30  ;;  %v2975_v4 = vrot.slane %v6706_v18, 6  ;;  %v4972_v35 = vpop.permute.xlu1 %4971  ;;  %v4969_v54 = vunpack.i.h.bf16 %v4967_v30 }
 0x35f   : > { %v2959_v24 = vrot.slane %v6709_v57, 2  ;;  %v6714_v62 = vrot.slane %v6709_v57, 6  ;;  %v5120_v13 = vpack.i.bf16 %v6706_v18, %v6709_v57  ;;  %v4973_v31 = vunpack.i.l.bf16 %v4972_v35 }
 0x360   : > { %v2593_v45 = vsel %vm2484_vm0, %v6532_v55, %v4968_v6  ;;  %v5200_v55 = vpack.i.bf16 %v6709_v57, %v6706_v18  ;;  %v4974_v46 = vunpack.i.h.bf16 %v4972_v35  ;;  %v2955_v11 = vrot.slane %v6706_v18, 4 }
 0x361   : > { %v4681_v21 = vpack.c.bf16 %v2593_v45, %v6537_v17  ;;  %v2396_v25 = vpop.permute.xlu0 %2395  ;;  %v2961_v8 = vsel %vm2504_vm10, %v2959_v24, %v2960_v22  ;;  %5121 = vrot.lane.b32.xlu0 %v5120_v13, %s5373_s1  ;;  %v6727_v38 = vsel %vm2484_vm0, %v6714_v62, %v2975_v4  ;;  %v6734_v17 = vrot.slane %v6709_v57, 4  ;;  %v2707_v4 = vld [vmem:[%s7403_s7 + $0x8] sm:$0xff] }
 0x362   : > { %v2400_v9 = vmax.f32 %v2392_v33, %v2396_v25  ;;  %v6723_v32 = vpack.i.bf16 %v2961_v8, %v2959_v24  ;;  %v6744_v29 = vpack.i.bf16 %v6727_v38, %v6714_v62  ;;  %v2594_v23 = vsel %vm2494_vm9, %v4969_v54, %v4973_v31 }
 0x363   : > { %4682 = vmatpush1.bf16.msra.mxu0 %v4681_v21  ;;  %v6756_v15 = vsel %vm2494_vm9, %v6734_v17, %v2955_v11 }
 0x364   : > { %5116 = vrot.lane.b32.xlu1 %v6723_v32, %s5372_s19  ;;  %4562 = vmatmul.mubr.msk.f32.vlgmr.msra.gmra.mrb[4].mxu1 %vm1817_vm6, %v2400_v9 }
 0x365   : > { %v4982_v40 = vpop.permute.xlu0 %4981  ;;  %4683 = vmatprep.subr.bf16.mxu0 %v5376_v48  ;;  %4358 = vmatprep.mubr.msk.f32.mxu1 %vm2620_vm11, %v6653_v37 }
 0x366   : > { %2983 = vrot.lane.b32.xlu0 %v6734_v17, %s5375_s30  ;;  %v4983_v42 = vunpack.i.l.bf16 %v4982_v40  ;;  %v4984_v5 = vunpack.i.h.bf16 %v4982_v40 }
 0x368   : > { %v2595_v1 = vsel %vm2504_vm10, %v4974_v46, %v4983_v42  ;;  %5126 = vrot.lane.b32.xlu1 %v6744_v29, %s7417_s23  ;;  %v4687_v47 = vpack.c.bf16 %v4963_v52, %v4984_v5 }
 0x369   : > { %v4684_v34 = vpack.c.bf16 %v2595_v1, %v2594_v23 }
 0x36a   : > { %2612 = vperm.xlu0 %4958, %v2608_v59   ;;  %v4977_v24 = vpop.permute.xlu1 %4976 }
 0x36b   : > { %4685 = vmatpush1.bf16.msra.mxu0 %v4684_v34  ;;  %v4978_v35 = vunpack.i.l.bf16 %v4977_v24  ;;  %v4979_v8 = vunpack.i.h.bf16 %v4977_v24 }
 0x36c   : > { %2985 = vrot.lane.b32.xlu1 %v6756_v15, %s5375_s30  ;;  %4686 = vmatprep.subr.bf16.mxu0 %v5376_v48 }
 0x36d   : > { %v4987_v2 = vpop.permute.xlu0 %4986 }
 0x36e   : > { %2710 = vperm.xlu0 %4958, %v2706_v44   ;;  %v4988_v30 = vunpack.i.l.bf16 %v4987_v2  ;;  %v4989_v33 = vunpack.i.h.bf16 %v4987_v2  ;;  %v5007_v9 = vpop.permute.xlu1 %5006 }
 0x36f   : > { %4688 = vmatpush1.bf16.msra.mxu0 %v4687_v47  ;;  %v5008_v2 = vunpack.i.l.bf16 %v5007_v9 }
 0x370   : > { %v2597_v19 = vsel %vm2494_vm9, %v6574_v26, %v4988_v30  ;;  %2617 = vperm.xlu1 %4959, %v2609_v20   ;;  %4689 = vmatprep.subr.bf16.mxu0 %v5376_v48 }
 0x371   : > { %v4690_v22 = vpack.c.bf16 %v2597_v19, %v2596_v3  ;;  %v4992_v6 = vpop.permute.xlu0 %4991 }
 0x372   : > { %v4994_v45 = vunpack.i.h.bf16 %v4992_v6  ;;  %v4993_v13 = vunpack.i.l.bf16 %v4992_v6 }
 0x373   : > { %4691 = vmatpush1.bf16.msra.mxu0 %v4690_v22 }
 0x374   : > { %v2598_v21 = vsel %vm2504_vm10, %v4989_v33, %v4993_v13  ;;  %2715 = vperm.xlu1 %4959, %v2707_v4   ;;  %4692 = vmatprep.subr.bf16.mxu0 %v5376_v48  ;;  %v5009_v4 = vunpack.i.h.bf16 %v5007_v9 }
 0x375   : > { %v4693_v36 = vpack.c.bf16 %v4994_v45, %v2598_v21  ;;  %v4997_v26 = vpop.permute.xlu0 %4996 }
 0x376   : > { %v4998_v25 = vunpack.i.l.bf16 %v4997_v26  ;;  %v4999_v40 = vunpack.i.h.bf16 %v4997_v26 }
 0x377   : > { %4694 = vmatpush1.bf16.msra.mxu0 %v4693_v36 }
 0x378   : > { %v2599_v54 = vsel %vm2484_vm0, %v4978_v35, %v4998_v25  ;;  %4695 = vmatprep.subr.bf16.mxu0 %v5376_v48  ;;  %v2600_v23 = vsel %vm2494_vm9, %v4999_v40, %v6592_v60 }
 0x379   : > { %v4696_v31 = vpack.c.bf16 %v2599_v54, %v4979_v8  ;;  %v5002_v46 = vpop.permute.xlu0 %5001 }
 0x37a   : > { %v5004_v47 = vunpack.i.h.bf16 %v5002_v46  ;;  %v5003_v20 = vunpack.i.l.bf16 %v5002_v46 }
 0x37b   : > { %4697 = vmatpush1.bf16.msra.mxu0 %v4696_v31 }
 0x37c   : > { %v5017_v42 = vpop.permute.xlu1 %5016  ;;  %4698 = vmatprep.subr.bf16.mxu0 %v5376_v48 }
 0x37d   : > { %v5019_v59 = vunpack.i.h.bf16 %v5017_v42  ;;  %v5018_v11 = vunpack.i.l.bf16 %v5017_v42  ;;  %v5012_v41 = vpop.permute.xlu0 %5011 }
 0x37e   : > { %v5013_v30 = vunpack.i.l.bf16 %v5012_v41  ;;  %v5014_v8 = vunpack.i.h.bf16 %v5012_v41 }
 0x37f   : > { %v2601_v1 = vsel %vm2504_vm10, %v6622_v28, %v5019_v59  ;;  %v2808_v5 = vsel %vm2484_vm0, %v6553_v43, %v5018_v11  ;;  %v2810_v43 = vsel %vm2504_vm10, %v5004_v47, %v5008_v2  ;;  %v6809_v2 = vld [vmem:[%s7401_s5] sm:$0xff] }
 0x380   : > { %v4699_v34 = vpack.c.bf16 %v2601_v1, %v2600_v23  ;;  %v4708_v52 = vpack.c.bf16 %v2808_v5, %v6557_v0  ;;  %v5022_v44 = vpop.permute.xlu1 %5021 }
 0x381   : > { %v5023_v22 = vunpack.i.l.bf16 %v5022_v44  ;;  %v5024_v9 = vunpack.i.h.bf16 %v5022_v44 }
 0x382   : > { %4700 = vmatpush1.bf16.msra.mxu0 %v4699_v34  ;;  %4709 = vmatpush1.bf16.msra.mxu1 %v4708_v52  ;;  %v5377_v52 = vmov 0.0  }
 0x383   : > { %4701 = vmatprep.subr.bf16.mxu0 %v5376_v48  ;;  %4710 = vmatprep.subr.bf16.mxu1 %v5376_v48  ;;  %v4714_v24 = vpack.c.bf16 %v5023_v22, %v5009_v4 }
 0x384   : > { %v5027_v60 = vpop.permute.xlu1 %5026 }
 0x385   : > { %v5029_v28 = vunpack.i.h.bf16 %v5027_v60  ;;  %v5028_v3 = vunpack.i.l.bf16 %v5027_v60 }
 0x387   : > { %v4702_v19 = vpack.c.bf16 %v5013_v30, %v5029_v28  ;;  %v2809_v0 = vsel %vm2494_vm9, %v5028_v3, %v5003_v20 }
 0x388   : > { %v4711_v6 = vpack.c.bf16 %v2810_v43, %v2809_v0  ;;  %v5032_v33 = vpop.permute.xlu1 %5031  ;;  %v6824_v0 = vld [vmem:[%s7401_s5 + $0x10] sm:$0xff] }
 0x389   : > { %4703 = vmatpush1.bf16.msra.mxu0 %v4702_v19  ;;  %v5033_v46 = vunpack.i.l.bf16 %v5032_v33 }
 0x38a   : > { %4712 = vmatpush1.bf16.msra.mxu1 %v4711_v6  ;;  %4704 = vmatprep.subr.bf16.mxu0 %v5376_v48 }
 0x38b   : > { %4713 = vmatprep.subr.bf16.mxu1 %v5376_v48 }
 0x38c   : > { %v5037_v45 = vpop.permute.xlu1 %5036 }
 0x38d   : > { %v5038_v60 = vunpack.i.l.bf16 %v5037_v45  ;;  %v5039_v28 = vunpack.i.h.bf16 %v5037_v45 }
 0x38e   : > { %4715 = vmatpush1.bf16.msra.mxu1 %v4714_v24 }
 0x38f   : > { %4716 = vmatprep.subr.bf16.mxu1 %v5376_v48 }
 0x390   : > { %v5057_v13 = vpop.permute.xlu1 %5056 }
 0x391   : > { %v5059_v30 = vunpack.i.h.bf16 %v5057_v13 }
 0x394   : > { %v6797_v40 = vpop.permute.xlu1 %5061 }
 0x395   : > { %v5063_v4 = vunpack.i.l.bf16 %v6797_v40 }
 0x398   : > { %v5072_v44 = vpop.permute.xlu1 %5071 }
 0x3a3   : > { %v5077_v3 = vpop.permute.xlu1 %5076 }
 0x3a5   : > { %v5042_v21 = vpop.permute.xlu0 %5041 }
 0x3a6   : > { %v5043_v36 = vunpack.i.l.bf16 %v5042_v21  ;;  %v5044_v6 = vunpack.i.h.bf16 %v5042_v21  ;;  %v5073_v21 = vunpack.i.l.bf16 %v5072_v44 }
 0x3a8   : > { %v2988_v26 = vsel %vm2484_vm0, %v6580_v63, %v5043_v36  ;;  %v2811_v63 = vsel %vm2484_vm0, %v5033_v46, %v6602_v12  ;;  %v6816_v12 = vld [vmem:[%s7401_s5 + $0x18] sm:$0xff]  ;;  %v2816_v36 = vsel %vm2504_vm10, %v6691_v16, %v5044_v6  ;;  %v5064_v16 = vunpack.i.h.bf16 %v6797_v40 }
 0x3a9   : > { %v4735_v35 = vpack.c.bf16 %v2988_v26, %v6582_v58  ;;  %v5047_v25 = vpop.permute.xlu0 %5046  ;;  %v5058_v58 = vunpack.i.l.bf16 %v5057_v13  ;;  %v5074_v13 = vunpack.i.h.bf16 %v5072_v44 }
 0x3aa   : > { %v5049_v54 = vunpack.i.h.bf16 %v5047_v25  ;;  %v5048_v31 = vunpack.i.l.bf16 %v5047_v25  ;;  %v2815_v25 = vsel %vm2494_vm9, %v5063_v4, %v6634_v56 }
 0x3ac   : > { %v2603_v42 = vsel %vm2494_vm9, %v5049_v54, %v5024_v9  ;;  %v2602_v59 = vsel %vm2484_vm0, %v5014_v8, %v5048_v31  ;;  %v4726_v54 = vpack.c.bf16 %v2816_v36, %v2815_v25 }
 0x3ad   : > { %v4705_v11 = vpack.c.bf16 %v2603_v42, %v2602_v59  ;;  %v5052_v23 = vpop.permute.xlu0 %5051 }
 0x3ae   : > { %v5054_v1 = vunpack.i.h.bf16 %v5052_v23  ;;  %v5053_v5 = vunpack.i.l.bf16 %v5052_v23 }
 0x3af   : > { %4706 = vmatpush1.bf16.msra.mxu0 %v4705_v11 }
 0x3b0   : > { %v2812_v34 = vsel %vm2494_vm9, %v6615_v61, %v5053_v5  ;;  %2665 = vmatprep.subr.mxu0 %v5377_v52  ;;  %v2813_v20 = vsel %vm2504_vm10, %v5054_v1, %v5058_v58  ;;  %v5034_v61 = vunpack.i.h.bf16 %v5032_v33  ;;  %v5078_v1 = vunpack.i.l.bf16 %v5077_v3 }
 0x3b1   : > { %v4717_v41 = vpack.c.bf16 %v2812_v34, %v2811_v63  ;;  %v2591_v47 = vpop.permute.xlu0 %2590  ;;  %v4720_v43 = vpack.c.bf16 %v5059_v30, %v2813_v20  ;;  %v5079_v5 = vunpack.i.h.bf16 %v5077_v3 }
 0x3b2   : > { %v2814_v22 = vsel %vm2484_vm0, %v5038_v60, %v5034_v61 }
 0x3b3   : > { %4354 = vmatpush1.msk.msra.mxu0 %vm2504_vm10, %v2591_v47  ;;  %4718 = vmatpush1.bf16.msra.mxu1 %v4717_v41  ;;  %v4723_v33 = vpack.c.bf16 %v2814_v22, %v5039_v28 }
 0x3b4   : > { %2694 = vmatmul.mubr.f32.vlgmr.msra.gmra.mrb[6].mxu0 %v6809_v2  ;;  %4734 = vmatprep.subr.bf16.mxu0 %v5376_v48 }
 0x3b5   : > { %v5067_v19 = vpop.permute.xlu0 %5066  ;;  %4736 = vmatpush1.bf16.msra.mxu0 %v4735_v35  ;;  %4719 = vmatprep.subr.bf16.mxu1 %v5376_v48  ;;  %v5082_v35 = vpop.permute.xlu1 %5081 }
 0x3b6   : > { %4356 = vmatprep.mubr.msk.f32.mxu0 %vm2620_vm11, %v6816_v12  ;;  %4737 = vmatprep.subr.bf16.mxu0 %v5376_v48  ;;  %v5068_v24 = vunpack.i.l.bf16 %v5067_v19  ;;  %v5069_v31 = vunpack.i.h.bf16 %v5067_v19  ;;  %v5084_v56 = vunpack.i.h.bf16 %v5082_v35  ;;  %v5083_v63 = vunpack.i.l.bf16 %v5082_v35 }
 0x3b7   : > { %4721 = vmatpush1.bf16.msra.mxu1 %v4720_v43 }
 0x3b8   : > { %2699 = vmatmul.mubr.f32.gmra.mrb[8].mxu0 %v6824_v0  ;;  %4722 = vmatprep.subr.bf16.mxu1 %v5376_v48  ;;  %v2989_v8 = vsel %vm2494_vm9, %v5068_v24, %v5073_v21  ;;  %v4729_v34 = vpack.c.bf16 %v5078_v1, %v5069_v31  ;;  %v2991_v30 = vsel %vm2484_vm0, %v5084_v56, %v6676_v7 }
 0x3b9   : > { %v5087_v45 = vpop.permute.xlu0 %5086  ;;  %4361 = vmatprep.mubr.msk.f32.mxu0 %vm2620_vm11, %v6653_v37  ;;  %v5102_v58 = vpop.permute.xlu1 %5101 }
 0x3ba   : > { %v5088_v26 = vunpack.i.l.bf16 %v5087_v45  ;;  %v5089_v46 = vunpack.i.h.bf16 %v5087_v45  ;;  %v5103_v61 = vunpack.i.l.bf16 %v5102_v58  ;;  %v5104_v6 = vunpack.i.h.bf16 %v5102_v58 }
 0x3bb   : > { %4724 = vmatpush1.bf16.msra.mxu1 %v4723_v33 }
 0x3bc   : > { %v2990_v9 = vsel %vm2504_vm10, %v5074_v13, %v5088_v26  ;;  %4725 = vmatprep.subr.bf16.mxu1 %v5376_v48  ;;  %v4741_v44 = vpack.c.bf16 %v5064_v16, %v5089_v46 }
 0x3bd   : > { %v4738_v42 = vpack.c.bf16 %v2990_v9, %v2989_v8  ;;  %v5092_v59 = vpop.permute.xlu0 %5091  ;;  %v5107_v4 = vpop.permute.xlu1 %5106 }
 0x3be   : > { %v5094_v11 = vunpack.i.h.bf16 %v5092_v59  ;;  %v5093_v23 = vunpack.i.l.bf16 %v5092_v59  ;;  %v5109_v45 = vunpack.i.h.bf16 %v5107_v4 }
 0x3bf   : > { %4727 = vmatpush1.bf16.msra.mxu1 %v4726_v54  ;;  %4739 = vmatpush1.bf16.msra.mxu0 %v4738_v42 }
 0x3c0   : > { %4728 = vmatprep.subr.bf16.mxu1 %v5376_v48  ;;  %4740 = vmatprep.subr.bf16.mxu0 %v5376_v48  ;;  %v2818_v47 = vsel %vm2494_vm9, %v5094_v11, %v5083_v63  ;;  %v2817_v60 = vsel %vm2484_vm0, %v5079_v5, %v5093_v23 }
 0x3c1   : > { %v5097_v41 = vpop.permute.xlu0 %5096  ;;  %v4732_v3 = vpack.c.bf16 %v2818_v47, %v2817_v60 }
 0x3c2   : > { %v5099_v20 = vunpack.i.h.bf16 %v5097_v41  ;;  %v5098_v40 = vunpack.i.l.bf16 %v5097_v41 }
 0x3c3   : > { %4730 = vmatpush1.bf16.msra.mxu1 %v4729_v34  ;;  %4742 = vmatpush1.bf16.msra.mxu0 %v4741_v44 }
 0x3c4   : > { %v2992_v28 = vsel %vm2494_vm9, %v6682_v51, %v5098_v40  ;;  %4731 = vmatprep.subr.bf16.mxu1 %v5376_v48  ;;  %4743 = vmatprep.subr.bf16.mxu0 %v5376_v48  ;;  %v2993_v22 = vsel %vm2504_vm10, %v5099_v20, %v5103_v61  ;;  %v5108_v51 = vunpack.i.l.bf16 %v5107_v4 }
 0x3c5   : > { %v4744_v43 = vpack.c.bf16 %v2992_v28, %v2991_v30  ;;  %v2806_v19 = vpop.permute.xlu0 %2805  ;;  %v4747_v7 = vpack.c.bf16 %v5104_v6, %v2993_v22 }
 0x3c7   : > { %4733 = vmatpush1.bf16.msra.mxu1 %v4732_v3  ;;  %4745 = vmatpush1.bf16.msra.mxu0 %v4744_v43 }
 0x3c8   : > { %2857 = vmatprep.subr.mxu1 %v5377_v52  ;;  %4746 = vmatprep.subr.bf16.mxu0 %v5376_v48 }
 0x3c9   : > { %v5112_v24 = vpop.permute.xlu0 %5111 }
 0x3ca   : > { %v5113_v33 = vunpack.i.l.bf16 %v5112_v24  ;;  %v5114_v36 = vunpack.i.h.bf16 %v5112_v24 }
 0x3cb   : > { %4357 = vmatpush1.msk.msra.mxu1 %vm2504_vm10, %v2806_v19  ;;  %4748 = vmatpush1.bf16.msra.mxu0 %v4747_v7 }
 0x3cc   : > { %v2994_v13 = vsel %vm2484_vm0, %v5108_v51, %v5113_v33  ;;  %2886 = vmatmul.mubr.f32.vlgmr.msra.gmra.mrb[6].mxu1 %v6809_v2  ;;  %4749 = vmatprep.subr.bf16.mxu0 %v5376_v48  ;;  %v2995_v8 = vsel %vm2494_vm9, %v5114_v36, %v6734_v17 }
 0x3cd   : > { %v4750_v21 = vpack.c.bf16 %v2994_v13, %v5109_v45  ;;  %4359 = vmatprep.mubr.msk.f32.mxu1 %vm2620_vm11, %v6816_v12  ;;  %4761 = vmatprep.subr.bf16.mxu1 %v5376_v48 }
 0x3cf   : > { %4751 = vmatpush1.bf16.msra.mxu0 %v4750_v21 }
 0x3d0   : > { %2891 = vmatmul.mubr.f32.gmra.mrb[8].mxu1 %v6824_v0  ;;  %4752 = vmatprep.subr.bf16.mxu0 %v5376_v48 }
 0x3d1   : > { %4364 = vmatprep.mubr.msk.f32.mxu1 %vm2620_vm11, %v6653_v37 }
 0x3d3   : > { %v5122_v25 = vpop.permute.xlu0 %5121 }
 0x3d4   : > { %v5123_v11 = vunpack.i.l.bf16 %v5122_v25  ;;  %v5124_v23 = vunpack.i.h.bf16 %v5122_v25 }
 0x3d6   : > { %v5117_v26 = vpop.permute.xlu1 %5116 }
 0x3d7   : > { %v5118_v35 = vunpack.i.l.bf16 %v5117_v26  ;;  %v5119_v54 = vunpack.i.h.bf16 %v5117_v26 }
 0x3d8   : > { %v2984_v16 = vpop.permute.xlu0 %2983 }
 0x3d9   : > { %v2996_v9 = vsel %vm2504_vm10, %v6756_v15, %v5118_v35  ;;  %v4756_v37 = vpack.c.bf16 %v5123_v11, %v5119_v54 }
 0x3da   : > { %v4753_v31 = vpack.c.bf16 %v2996_v9, %v2995_v8  ;;  %v5127_v46 = vpop.permute.xlu1 %5126 }
 0x3db   : > { %v5129_v42 = vunpack.i.h.bf16 %v5127_v46  ;;  %v5128_v59 = vunpack.i.l.bf16 %v5127_v46 }
 0x3dc   : > { %4754 = vmatpush1.bf16.msra.mxu0 %v4753_v31 }
 0x3dd   : > { %4755 = vmatprep.subr.bf16.mxu0 %v5376_v48  ;;  %v2997_v1 = vsel %vm2484_vm0, %v5124_v23, %v5128_v59  ;;  %v2998_v5 = vsel %vm2494_vm9, %v5129_v42, %v2984_v16 }
 0x3de   : > { %v4759_v56 = vpack.c.bf16 %v2998_v5, %v2997_v1  ;;  %v2986_v63 = vpop.permute.xlu1 %2985 }
 0x3e0   : > { %4757 = vmatpush1.bf16.msra.mxu0 %v4756_v37 }
 0x3e1   : > { %4758 = vmatprep.subr.bf16.mxu0 %v5376_v48 }
 0x3e4   : > { %4760 = vmatpush1.bf16.msra.mxu0 %v4759_v56 }
 0x3e5   : > { %3037 = vmatprep.subr.mxu0 %v5377_v52 }
 0x3e8   : > { %4360 = vmatpush1.msk.msra.mxu0 %vm2504_vm10, %v2986_v63 }
 0x3e9   : > { %3066 = vmatmul.mubr.f32.vlgmr.msra.gmra.mrb[10].mxu0 %v6809_v2  ;;  %4788 = vmatprep.subr.bf16.mxu0 %v5376_v48  ;;  %v6898_v3 = vpop.permute.xlu0 %2612 }
 0x3ea   : > { %4362 = vmatprep.mubr.msk.f32.mxu0 %vm2620_vm11, %v6816_v12 }
 0x3ed   : > { %3071 = vmatmul.mubr.f32.gmra.mrb[12].mxu0 %v6824_v0  ;;  %v6903_v4 = vpop.permute.xlu0 %2710 }
 0x3ef   : > { %v6900_v43 = vpop.permute.xlu1 %2617 }
 0x3f3   : > { %v6907_v45 = vpop.permute.xlu1 %2715 }
 0x437   : > { %v6882_v58 = vpop.f32.mrb[4].mxu1 }
 0x438   : > { %v3140_v34 = vrot.slane %v6882_v58, 2  ;;  %v3155_v44 = vrot.slane %v6882_v58, 6  ;;  %v6886_v41 = vpop.f32.mrb[5].mxu1 }
 0x439   : > { %v5220_v47 = vpack.i.bf16 %v6882_v58, %v6886_v41  ;;  %v3139_v60 = vrot.slane %v6886_v41, 2  ;;  %v3154_v20 = vrot.slane %v6886_v41, 6 }
 0x43b   : > { %v3141_v40 = vsel %vm2504_vm10, %v3139_v60, %v3140_v34  ;;  %v3156_v30 = vsel %vm2484_vm0, %v3154_v20, %v3155_v44 }
 0x43c   : > { %v6894_v61 = vpack.i.bf16 %v3141_v40, %v3139_v60  ;;  %v6896_v28 = vpack.i.bf16 %v3156_v30, %v3154_v20  ;;  %v6966_v40 = vrot.slane %v6886_v41, 4  ;;  %v3135_v30 = vrot.slane %v6882_v58, 4  ;;  %v6998_v58 = vld [vmem:[%s7405_s9 + $0x10] sm:$0xff] }
 0x43e   : > { %v6990_v41 = vsel %vm2494_vm9, %v6966_v40, %v3135_v30 }
 0x487   : > { %v2695_v19 = vpop.f32.mrb[6].mxu0 }
 0x488   : > { %v2696_v22 = vadd.f32 %v2695_v19, %v6898_v3  ;;  %v2697_v6 = vpop.f32.mrb[7].mxu0  ;;  %v7015_v19 = vld [vmem:[%s7406_s10 + $0x8] sm:$0xff] }
 0x489   : > { %v7028_v6 = vld [vmem:[%s7406_s10 + $0x18] sm:$0xff] }
 0x48a   : > { %v2718_v24 = vmul.f32 %v6903_v4, %v2696_v22  ;;  %vm2704_vm12 = vcmp.gt.f32.partialorder %v2696_v22, 0.0 }
 0x48b   : > { %v2700_v7 = vpop.f32.mrb[8].mxu0 }
 0x48c   : > { %v2701_v51 = vadd.f32 %v2700_v7, %v6900_v43  ;;  %v2702_v33 = vpop.f32.mrb[9].mxu0  ;;  %v2720_v21 = vsel %vm2704_vm12, %v2696_v22, %v2718_v24  ;;  %v7022_v22 = vld [vmem:[%s7405_s9 + $0x18] sm:$0xff]  ;;  %vm3716_vm12 = vcmask 24576  }
 0x48e   : > { %vm2705_vm13 = vcmp.gt.f32.partialorder %v2701_v51, 0.0  ;;  %v2719_v13 = vmul.f32 %v6907_v45, %v2701_v51 }
 0x490   : > { %v2721_v36 = vsel %vm2705_vm13, %v2701_v51, %v2719_v13 }
 0x491   : > { %v5135_v26 = vpack.i.bf16 %v2721_v36, %v2720_v21  ;;  %v4789_v35 = vpack.c.bf16 %v2721_v36, %v2720_v21 }
 0x493   : > { %5136 = vrot.lane.b32.xlu1 %v5135_v26, %s5373_s1  ;;  %5131 = vrot.lane.b32.xlu0 %v5135_v26, %s5372_s19 }
 0x494   : > { %4790 = vmatpush1.bf16.msra.mxu0 %v4789_v35 }
 0x495   : > { %4791 = vmatprep.subr.bf16.mxu0 %v5376_v48 }
 0x497   : > { %5146 = vrot.lane.b32.xlu1 %v5135_v26, %s5375_s30  ;;  %5141 = vrot.lane.b32.xlu0 %v5135_v26, %s7417_s23 }
 0x49b   : > { %5151 = vrot.lane.b32.xlu1 %v6687_v50, %s5372_s19 }
 0x49f   : > { %v2887_v25 = vpop.f32.mrb[6].mxu1  ;;  %5156 = vrot.lane.b32.xlu1 %v6697_v53, %s5373_s1 }
 0x4a0   : > { %v2888_v8 = vadd.f32 %v2887_v25, %v6898_v3  ;;  %v2889_v9 = vpop.f32.mrb[7].mxu1 }
 0x4a2   : > { %vm2896_vm14 = vcmp.gt.f32.partialorder %v2888_v8, 0.0  ;;  %v2898_v54 = vmul.f32 %v2888_v8, %v6903_v4 }
 0x4a3   : > { %v2892_v31 = vpop.f32.mrb[8].mxu1 }
 0x4a4   : > { %v2900_v46 = vsel %vm2896_vm14, %v2888_v8, %v2898_v54  ;;  %v2893_v42 = vadd.f32 %v2892_v31, %v6900_v43  ;;  %v2894_v59 = vpop.f32.mrb[9].mxu1 }
 0x4a5   : > { %v5175_v11 = vpack.i.bf16 %v2900_v46, %v6631_v49  ;;  %v5170_v5 = vpack.i.bf16 %v2900_v46, %v6639_v14 }
 0x4a6   : > { %vm2897_vm15 = vcmp.gt.f32.partialorder %v2893_v42, 0.0  ;;  %v2899_v50 = vmul.f32 %v2893_v42, %v6907_v45 }
 0x4a8   : > { %v2901_v23 = vsel %vm2897_vm15, %v2893_v42, %v2899_v50 }
 0x4a9   : > { %v5185_v37 = vpack.i.bf16 %v6657_v10, %v2901_v23  ;;  %v5160_v53 = vpack.i.bf16 %v2901_v23, %v2900_v46  ;;  %v5190_v16 = vpack.i.bf16 %v6629_v39, %v2901_v23  ;;  %v6926_v1 = vpack.c.bf16 %v2901_v23, %v2900_v46 }
 0x4aa   : > { %v5180_v10 = vpack.i.bf16 %v6756_v15, %v6734_v17  ;;  %v6958_v15 = vld [vmem:[%s7404_s8 + $0x8] sm:$0xff] }
 0x4ab   : > { %5186 = vrot.lane.b32.xlu1 %v5185_v37, %s7417_s23  ;;  %5161 = vrot.lane.b32.xlu0 %v5160_v53, %s5372_s19 }
 0x4ac   : > { %4366 = vmatprep.mubr.msk.f32.mxu0 %vm3372_vm3, %v6958_v15 }
 0x4af   : > { %5191 = vrot.lane.b32.xlu1 %v5190_v16, %s5375_s30  ;;  %5166 = vrot.lane.b32.xlu0 %v5160_v53, %s5373_s1 }
 0x4b3   : > { %5196 = vrot.lane.b32.xlu1 %v6723_v32, %s5373_s1  ;;  %5171 = vrot.lane.b32.xlu0 %v5170_v5, %s7417_s23 }
 0x4b7   : > { %5201 = vrot.lane.b32.xlu1 %v5200_v55, %s7417_s23  ;;  %5176 = vrot.lane.b32.xlu0 %v5175_v11, %s5375_s30 }
 0x4bb   : > { %5181 = vrot.lane.b32.xlu0 %v5180_v10, %s5372_s19 }
 0x4bc   : > { %v3067_v56 = vpop.f32.mrb[10].mxu0 }
 0x4bd   : > { %v3068_v14 = vadd.f32 %v3067_v56, %v6898_v3  ;;  %v3069_v63 = vpop.f32.mrb[11].mxu0 }
 0x4bf   : > { %v3078_v32 = vmul.f32 %v3068_v14, %v6903_v4  ;;  %vm3076_vm1 = vcmp.gt.f32.partialorder %v3068_v14, 0.0 }
 0x4c0   : > { %v3072_v34 = vpop.f32.mrb[12].mxu0 }
 0x4c1   : > { %v3073_v44 = vadd.f32 %v3072_v34, %v6900_v43  ;;  %v3074_v60 = vpop.f32.mrb[13].mxu0  ;;  %v3080_v57 = vsel %vm3076_vm1, %v3068_v14, %v3078_v32 }
 0x4c3   : > { %vm3077_vm2 = vcmp.gt.f32.partialorder %v3073_v44, 0.0  ;;  %v3079_v18 = vmul.f32 %v3073_v44, %v6907_v45 }
 0x4c5   : > { %v3081_v55 = vsel %vm3077_vm2, %v3073_v44, %v3079_v18 }
 0x4c6   : > { %v5230_v20 = vpack.i.bf16 %v3081_v55, %v3080_v57  ;;  %v6948_v17 = vpack.c.bf16 %v3081_v55, %v3080_v57 }
 0x4c8   : > { %5231 = vrot.lane.b32.xlu1 %v5230_v20, %s5373_s1  ;;  %5206 = vrot.lane.b32.xlu0 %v5230_v20, %s5372_s19 }
 0x4cc   : > { %5236 = vrot.lane.b32.xlu1 %v5230_v20, %s7417_s23  ;;  %5211 = vrot.lane.b32.xlu0 %v6744_v29, %s5375_s30  ;;  %v6977_v29 = vld [vmem:[%s7405_s9] sm:$0xff] }
 0x4d0   : > { %5241 = vrot.lane.b32.xlu1 %v5230_v20, %s5375_s30  ;;  %5216 = vrot.lane.b32.xlu0 %v6894_v61, %s5372_s19  ;;  %v6986_v61 = vld [vmem:[%s7406_s10] sm:$0xff] }
 0x4d4   : > { %3163 = vrot.lane.b32.xlu1 %v6966_v40, %s5375_s30  ;;  %5221 = vrot.lane.b32.xlu0 %v5220_v47, %s5373_s1  ;;  %v7003_v47 = vld [vmem:[%s7405_s9 + $0x8] sm:$0xff] }
 0x4d8   : > { %3354 = vperm.xlu1 %4959, %v6977_v29   ;;  %5226 = vrot.lane.b32.xlu0 %v6896_v28, %s7417_s23  ;;  %v7010_v28 = vld [vmem:[%s7406_s10 + $0x10] sm:$0xff]  ;;  %s7431_s23 = smov 125  }
 0x4dc   : > { %3480 = vperm.xlu1 %4959, %v6986_v61   ;;  %3165 = vrot.lane.b32.xlu0 %v6990_v41, %s5375_s30 }
 0x4e0   : > { %3364 = vperm.xlu1 %4959, %v6998_v58   ;;  %3359 = vperm.xlu0 %4958, %v7003_v47  }
 0x4e4   : > { %3490 = vperm.xlu1 %4959, %v7010_v28   ;;  %3485 = vperm.xlu0 %4958, %v7015_v19  }
 0x4e8   : > { %3369 = vperm.xlu0 %4958, %v7022_v22  }
 0x4ec   : > { %3495 = vperm.xlu0 %4958, %v7028_v6  }
 0x505   : > { %v5137_v7 = vpop.permute.xlu1 %5136  ;;  %v5132_v24 = vpop.permute.xlu0 %5131 }
 0x506   : > { %v5134_v51 = vunpack.i.h.bf16 %v5132_v24  ;;  %v5133_v33 = vunpack.i.l.bf16 %v5132_v24  ;;  %v5139_v13 = vunpack.i.h.bf16 %v5137_v7  ;;  %v5138_v21 = vunpack.i.l.bf16 %v5137_v7 }
 0x508   : > { %v4792_v36 = vpack.c.bf16 %v5134_v51, %v5133_v33  ;;  %v4795_v25 = vpack.c.bf16 %v5139_v13, %v5138_v21 }
 0x509   : > { %v5147_v26 = vpop.permute.xlu1 %5146  ;;  %v5142_v35 = vpop.permute.xlu0 %5141 }
 0x50a   : > { %4793 = vmatpush1.bf16.msra.mxu0 %v4792_v36  ;;  %v5144_v8 = vunpack.i.h.bf16 %v5142_v35  ;;  %v5143_v9 = vunpack.i.l.bf16 %v5142_v35  ;;  %v5149_v46 = vunpack.i.h.bf16 %v5147_v26  ;;  %v5148_v42 = vunpack.i.l.bf16 %v5147_v26 }
 0x50b   : > { %4794 = vmatprep.subr.bf16.mxu0 %v5376_v48 }
 0x50c   : > { %v4798_v59 = vpack.c.bf16 %v5144_v8, %v5143_v9  ;;  %v4801_v23 = vpack.c.bf16 %v5149_v46, %v5148_v42 }
 0x50d   : > { %v5152_v54 = vpop.permute.xlu1 %5151 }
 0x50e   : > { %v5153_v31 = vunpack.i.l.bf16 %v5152_v54  ;;  %4796 = vmatpush1.bf16.msra.mxu0 %v4795_v25  ;;  %v5154_v32 = vunpack.i.h.bf16 %v5152_v54 }
 0x50f   : > { %4797 = vmatprep.subr.bf16.mxu0 %v5376_v48 }
 0x510   : > { %v3168_v11 = vsel %vm2484_vm0, %v6629_v39, %v5153_v31 }
 0x511   : > { %v4762_v50 = vpack.c.bf16 %v3168_v11, %v6631_v49  ;;  %v5157_v37 = vpop.permute.xlu1 %5156 }
 0x512   : > { %4799 = vmatpush1.bf16.msra.mxu0 %v4798_v59  ;;  %v5158_v63 = vunpack.i.l.bf16 %v5157_v37  ;;  %v5159_v60 = vunpack.i.h.bf16 %v5157_v37 }
 0x513   : > { %4763 = vmatpush1.bf16.msra.mxu1 %v4762_v50  ;;  %4800 = vmatprep.subr.bf16.mxu0 %v5376_v48 }
 0x514   : > { %4764 = vmatprep.subr.bf16.mxu1 %v5376_v48  ;;  %v3169_v30 = vsel %vm2494_vm9, %v5154_v32, %v5158_v63 }
 0x516   : > { %4802 = vmatpush1.bf16.msra.mxu0 %v4801_v23 }
 0x517   : > { %4803 = vmatprep.subr.bf16.mxu0 %v5376_v48 }
 0x51a   : > { %4805 = vmatpush1.bf16.msra.mxu0 %v6926_v1 }
 0x51b   : > { %4806 = vmatprep.subr.bf16.mxu0 %v5376_v48 }
 0x51d   : > { %v5162_v53 = vpop.permute.xlu0 %5161  ;;  %v5187_v49 = vpop.permute.xlu1 %5186 }
 0x51e   : > { %v5164_v16 = vunpack.i.h.bf16 %v5162_v53  ;;  %v5163_v39 = vunpack.i.l.bf16 %v5162_v53  ;;  %v5188_v18 = vunpack.i.l.bf16 %v5187_v49  ;;  %v5189_v13 = vunpack.i.h.bf16 %v5187_v49 }
 0x520   : > { %v7041_v5 = vpack.c.bf16 %v5164_v16, %v5163_v39 }
 0x521   : > { %v5167_v10 = vpop.permute.xlu0 %5166  ;;  %v5192_v20 = vpop.permute.xlu1 %5191 }
 0x522   : > { %v5169_v56 = vunpack.i.h.bf16 %v5167_v10  ;;  %v5168_v14 = vunpack.i.l.bf16 %v5167_v10  ;;  %4808 = vmatpush1.bf16.msra.mxu0 %v7041_v5  ;;  %v5193_v21 = vunpack.i.l.bf16 %v5192_v20  ;;  %v5194_v35 = vunpack.i.h.bf16 %v5192_v20 }
 0x523   : > { %4809 = vmatprep.subr.bf16.mxu0 %v5376_v48 }
 0x524   : > { %v7045_v34 = vpack.c.bf16 %v5169_v56, %v5168_v14  ;;  %v3171_v42 = vsel %vm2484_vm0, %v5194_v35, %v6714_v62 }
 0x525   : > { %v5172_v44 = vpop.permute.xlu0 %5171  ;;  %v5197_v9 = vpop.permute.xlu1 %5196 }
 0x526   : > { %v5174_v57 = vunpack.i.h.bf16 %v5172_v44  ;;  %v5173_v55 = vunpack.i.l.bf16 %v5172_v44  ;;  %4811 = vmatpush1.bf16.msra.mxu0 %v7045_v34  ;;  %v5198_v59 = vunpack.i.l.bf16 %v5197_v9  ;;  %v5199_v37 = vunpack.i.h.bf16 %v5197_v9 }
 0x527   : > { %4812 = vmatprep.subr.bf16.mxu0 %v5376_v48 }
 0x528   : > { %v7050_v7 = vpack.c.bf16 %v5188_v18, %v5174_v57  ;;  %v3170_v24 = vsel %vm2504_vm10, %v5159_v60, %v5173_v55 }
 0x529   : > { %v4765_v51 = vpack.c.bf16 %v3170_v24, %v3169_v30  ;;  %v5177_v33 = vpop.permute.xlu0 %5176  ;;  %v5202_v16 = vpop.permute.xlu1 %5201 }
 0x52a   : > { %v5179_v36 = vunpack.i.h.bf16 %v5177_v33  ;;  %v5178_v26 = vunpack.i.l.bf16 %v5177_v33  ;;  %4814 = vmatpush1.bf16.msra.mxu0 %v7050_v7  ;;  %v5203_v44 = vunpack.i.l.bf16 %v5202_v16  ;;  %v5204_v18 = vunpack.i.h.bf16 %v5202_v16  ;;  %v7100_v16 = vld [vmem:[%s7404_s8 + $0x18] sm:$0xff] }
 0x52b   : > { %4766 = vmatpush1.bf16.msra.mxu1 %v4765_v51  ;;  %4815 = vmatprep.subr.bf16.mxu0 %v5376_v48 }
 0x52c   : > { %v7055_v25 = vpack.c.bf16 %v5193_v21, %v5179_v36  ;;  %v4768_v8 = vpack.c.bf16 %v5178_v26, %v5189_v13  ;;  %4767 = vmatprep.subr.bf16.mxu1 %v5376_v48 }
 0x52d   : > { %v5182_v54 = vpop.permute.xlu0 %5181 }
 0x52e   : > { %v5184_v31 = vunpack.i.h.bf16 %v5182_v54  ;;  %v5183_v46 = vunpack.i.l.bf16 %v5182_v54  ;;  %4817 = vmatpush1.bf16.msra.mxu0 %v7055_v25 }
 0x52f   : > { %4769 = vmatpush1.bf16.msra.mxu1 %v4768_v8  ;;  %4818 = vmatprep.subr.bf16.mxu0 %v5376_v48 }
 0x530   : > { %v3172_v11 = vsel %vm2494_vm9, %v6727_v38, %v5183_v46  ;;  %4770 = vmatprep.subr.bf16.mxu1 %v5376_v48  ;;  %v3173_v23 = vsel %vm2504_vm10, %v5184_v31, %v5198_v59 }
 0x531   : > { %v4771_v50 = vpack.c.bf16 %v3172_v11, %v3171_v42  ;;  %v4774_v53 = vpack.c.bf16 %v5199_v37, %v3173_v23  ;;  %v7095_v37 = vld [vmem:[%s7404_s8] sm:$0xff] }
 0x532   : > { %4820 = vmatpush1.bf16.msra.mxu0 %v6948_v17 }
 0x533   : > { %4772 = vmatpush1.bf16.msra.mxu1 %v4771_v50  ;;  %4821 = vmatprep.subr.bf16.mxu0 %v5376_v48 }
 0x534   : > { %4773 = vmatprep.subr.bf16.mxu1 %v5376_v48 }
 0x537   : > { %4775 = vmatpush1.bf16.msra.mxu1 %v4774_v53 }
 0x538   : > { %4776 = vmatprep.subr.bf16.mxu1 %v5376_v48 }
 0x53a   : > { %v5232_v62 = vpop.permute.xlu1 %5231  ;;  %v5207_v38 = vpop.permute.xlu0 %5206 }
 0x53b   : > { %v5209_v39 = vunpack.i.h.bf16 %v5207_v38  ;;  %v5208_v49 = vunpack.i.l.bf16 %v5207_v38  ;;  %v5234_v10 = vunpack.i.h.bf16 %v5232_v62  ;;  %v5233_v56 = vunpack.i.l.bf16 %v5232_v62 }
 0x53d   : > { %v7070_v14 = vpack.c.bf16 %v5209_v39, %v5208_v49  ;;  %v7074_v20 = vpack.c.bf16 %v5234_v10, %v5233_v56  ;;  %v7112_v49 = vld [vmem:[%s7404_s8 + $0x10] sm:$0xff]  ;;  %v7117_v10 = vld [vmem:[%s7404_s8 + $0x28] sm:$0xff] }
 0x53e   : > { %v5237_v63 = vpop.permute.xlu1 %5236  ;;  %v5212_v32 = vpop.permute.xlu0 %5211 }
 0x53f   : > { %v5213_v60 = vunpack.i.l.bf16 %v5212_v32  ;;  %4823 = vmatpush1.bf16.msra.mxu0 %v7070_v14  ;;  %v5239_v57 = vunpack.i.h.bf16 %v5237_v63  ;;  %v5238_v55 = vunpack.i.l.bf16 %v5237_v63  ;;  %v5214_v30 = vunpack.i.h.bf16 %v5212_v32  ;;  %v7126_v63 = vld [vmem:[%s7404_s8 + $0x20] sm:$0xff]  ;;  %v7132_v32 = vld [vmem:[%s7404_s8 + $0x38] sm:$0xff] }
 0x540   : > { %4824 = vmatprep.subr.bf16.mxu0 %v5376_v48 }
 0x541   : > { %v3174_v24 = vsel %vm2484_vm0, %v5203_v44, %v5213_v60  ;;  %v7078_v36 = vpack.c.bf16 %v5239_v57, %v5238_v55  ;;  %v3175_v26 = vsel %vm2494_vm9, %v5214_v30, %v6966_v40  ;;  %v7144_v44 = vld [vmem:[%s7404_s8 + $0x30] sm:$0xff] }
 0x542   : > { %v4777_v51 = vpack.c.bf16 %v3174_v24, %v5204_v18  ;;  %v5242_v33 = vpop.permute.xlu1 %5241  ;;  %v5217_v13 = vpop.permute.xlu0 %5216 }
 0x543   : > { %v5218_v21 = vunpack.i.l.bf16 %v5217_v13  ;;  %4826 = vmatpush1.bf16.msra.mxu0 %v7074_v20  ;;  %v5244_v35 = vunpack.i.h.bf16 %v5242_v33  ;;  %v5243_v8 = vunpack.i.l.bf16 %v5242_v33  ;;  %v5219_v46 = vunpack.i.h.bf16 %v5217_v13 }
 0x544   : > { %4778 = vmatpush1.bf16.msra.mxu1 %v4777_v51  ;;  %4827 = vmatprep.subr.bf16.mxu0 %v5376_v48 }
 0x545   : > { %v3176_v9 = vsel %vm2504_vm10, %v6990_v41, %v5218_v21  ;;  %4779 = vmatprep.subr.bf16.mxu1 %v5376_v48  ;;  %v7088_v59 = vpack.c.bf16 %v5244_v35, %v5243_v8 }
 0x546   : > { %v4780_v54 = vpack.c.bf16 %v3176_v9, %v3175_v26  ;;  %v5222_v31 = vpop.permute.xlu0 %5221  ;;  %v3164_v53 = vpop.permute.xlu1 %3163 }
 0x547   : > { %v5223_v42 = vunpack.i.l.bf16 %v5222_v31  ;;  %4829 = vmatpush1.bf16.msra.mxu0 %v7078_v36  ;;  %v5224_v50 = vunpack.i.h.bf16 %v5222_v31 }
 0x548   : > { %4781 = vmatpush1.bf16.msra.mxu1 %v4780_v54  ;;  %4830 = vmatprep.subr.bf16.mxu0 %v5376_v48 }
 0x549   : > { %v4783_v11 = vpack.c.bf16 %v5223_v42, %v5219_v46  ;;  %4782 = vmatprep.subr.bf16.mxu1 %v5376_v48 }
 0x54a   : > { %v5227_v40 = vpop.permute.xlu0 %5226 }
 0x54b   : > { %v5229_v23 = vunpack.i.h.bf16 %v5227_v40  ;;  %v5228_v41 = vunpack.i.l.bf16 %v5227_v40  ;;  %4832 = vmatpush1.bf16.msra.mxu0 %v7088_v59 }
 0x54c   : > { %4784 = vmatpush1.bf16.msra.mxu1 %v4783_v11  ;;  %4890 = vmatprep.subr.bf16.mxu0 %v5376_v48 }
 0x54d   : > { %v3178_v62 = vsel %vm2494_vm9, %v5229_v23, %v3164_v53  ;;  %v3177_v38 = vsel %vm2484_vm0, %v5224_v50, %v5228_v41  ;;  %4785 = vmatprep.subr.bf16.mxu1 %v5376_v48 }
 0x54e   : > { %v4786_v39 = vpack.c.bf16 %v3178_v62, %v3177_v38  ;;  %3450 = vmatmul.mubr.f32.vlgmr.msra.gmra.mrb[14].mxu0 %v7095_v37  ;;  %v3166_v56 = vpop.permute.xlu0 %3165 }
 0x54f   : > { %4367 = vmatprep.mubr.msk.f32.mxu0 %vm3372_vm3, %v7100_v16 }
 0x550   : > { %4787 = vmatpush1.bf16.msra.mxu1 %v4786_v39 }
 0x551   : > { %3217 = vmatprep.subr.mxu1 %v5377_v52 }
 0x552   : > { %3455 = vmatmul.mubr.f32.gmra.mrb[16].mxu0 %v7112_v49 }
 0x553   : > { %4368 = vmatprep.mubr.msk.f32.mxu0 %vm3372_vm3, %v7117_v10 }
 0x554   : > { %4363 = vmatpush1.msk.msra.mxu1 %vm2504_vm10, %v3166_v56  ;;  %vm3513_vm10 = vcmask 261120  }
 0x555   : > { %3246 = vmatmul.mubr.f32.vlgmr.msra.gmra.mrb[10].mxu1 %v6809_v2  ;;  %4833 = vmatprep.subr.bf16.mxu1 %v5376_v48 }
 0x556   : > { %3460 = vmatmul.mubr.f32.gmra.mrb[18].mxu0 %v7126_v63  ;;  %4365 = vmatprep.mubr.msk.f32.mxu1 %vm2620_vm11, %v6816_v12  ;;  %vm3667_vm11 = vcmask 25600  }
 0x557   : > { %4369 = vmatprep.mubr.msk.f32.mxu0 %vm3372_vm3, %v7132_v32  ;;  %v3355_v2 = vpop.permute.xlu1 %3354 }
 0x559   : > { %3251 = vmatmul.mubr.f32.gmra.mrb[12].mxu1 %v6824_v0 }
 0x55a   : > { %3465 = vmatmul.mubr.f32.gmra.mrb[20].mxu0 %v7144_v44  ;;  %4572 = vmatprep.mubr.msk.f32.mxu1 %vm5378_vm4, %v5377_v52 }
 0x55b   : > { %4594 = vmatprep.mubr.msk.f32.mxu0 %vm5378_vm4, %v5377_v52  ;;  %v3481_v60 = vpop.permute.xlu1 %3480 }
 0x55f   : > { %v3360_v12 = vpop.permute.xlu0 %3359  ;;  %v3365_v51 = vpop.permute.xlu1 %3364 }
 0x563   : > { %v3486_v57 = vpop.permute.xlu0 %3485  ;;  %v3491_v50 = vpop.permute.xlu1 %3490 }
 0x567   : > { %v3370_v21 = vpop.permute.xlu0 %3369 }
 0x621   : > { %v3451_v18 = vpop.f32.mrb[14].mxu0 }
 0x622   : > { %v3452_v55 = vadd.f32 %v3451_v18, %v3355_v2  ;;  %v3453_v30 = vpop.f32.mrb[15].mxu0  ;;  %v3496_v2 = vpop.permute.xlu0 %3495 }
 0x624   : > { %v3498_v33 = vmul.f32 %v3481_v60, %v3452_v55  ;;  %vm3470_vm5 = vcmp.gt.f32.partialorder %v3452_v55, 0.0 }
 0x625   : > { %v3456_v24 = vpop.f32.mrb[16].mxu0 }
 0x626   : > { %v3457_v0 = vadd.f32 %v3456_v24, %v3360_v12  ;;  %v3458_v13 = vpop.f32.mrb[17].mxu0  ;;  %v3502_v31 = vsel %vm3470_vm5, %v3452_v55, %v3498_v33 }
 0x628   : > { %vm3471_vm6 = vcmp.gt.f32.partialorder %v3457_v0, 0.0  ;;  %v3499_v26 = vmul.f32 %v3486_v57, %v3457_v0  ;;  %v3247_v35 = vpop.f32.mrb[10].mxu1 }
 0x629   : > { %v3248_v8 = vadd.f32 %v3247_v35, %v6898_v3  ;;  %v3249_v9 = vpop.f32.mrb[11].mxu1  ;;  %v3461_v54 = vpop.f32.mrb[18].mxu0 }
 0x62a   : > { %v3503_v46 = vsel %vm3471_vm6, %v3457_v0, %v3499_v26  ;;  %v3462_v42 = vadd.f32 %v3461_v54, %v3365_v51  ;;  %v3463_v11 = vpop.f32.mrb[19].mxu0  ;;  %v3506_v51 = vld [vmem:[%s7407_s11] sm:$0x3] }
 0x62b   : > { %v4834_v40 = vpack.c.bf16 %v3503_v46, %v3502_v31  ;;  %v3258_v41 = vmul.f32 %v3248_v8, %v6903_v4  ;;  %vm3256_vm7 = vcmp.gt.f32.partialorder %v3248_v8, 0.0 }
 0x62c   : > { %v3252_v23 = vpop.f32.mrb[12].mxu1  ;;  %v3500_v53 = vmul.f32 %v3491_v50, %v3462_v42  ;;  %vm3472_vm8 = vcmp.gt.f32.partialorder %v3462_v42, 0.0 }
 0x62d   : > { %v3253_v62 = vadd.f32 %v3252_v23, %v6900_v43  ;;  %v3254_v38 = vpop.f32.mrb[13].mxu1  ;;  %v3466_v39 = vpop.f32.mrb[20].mxu0  ;;  %4835 = vmatpush3.bf16.msra.mxu1 %v4834_v40  ;;  %v3260_v18 = vsel %vm3256_vm7, %v3248_v8, %v3258_v41 }
 0x62e   : > { %v3467_v3 = vadd.f32 %v3466_v39, %v3370_v21  ;;  %4836 = vmatprep.subr.bf16.mxu1 %v5376_v48  ;;  %v3468_v56 = vpop.f32.mrb[21].mxu0  ;;  %v3504_v4 = vsel %vm3472_vm8, %v3462_v42, %v3500_v53 }
 0x62f   : > { %vm3257_vm0 = vcmp.gt.f32.partialorder %v3253_v62, 0.0  ;;  %v3259_v12 = vmul.f32 %v3253_v62, %v6907_v45  ;;  %v3587_v45 = vld [vmem:[%s7409_s13] sm:$0xf] }
 0x630   : > { %vm3473_vm9 = vcmp.gt.f32.partialorder %v3467_v3, 0.0  ;;  %v3501_v60 = vmul.f32 %v3496_v2, %v3467_v3 }
 0x631   : > { %v3261_v57 = vsel %vm3257_vm0, %v3253_v62, %v3259_v12 }
 0x632   : > { %v3505_v55 = vsel %vm3473_vm9, %v3467_v3, %v3501_v60  ;;  %v5250_v43 = vpack.i.bf16 %v3261_v57, %v3260_v18  ;;  %v4876_v24 = vpack.c.bf16 %v3261_v57, %v3260_v18 }
 0x633   : > { %v4837_v30 = vpack.c.bf16 %v3505_v55, %v3504_v4 }
 0x634   : > { %5251 = vrot.lane.b32.xlu0 %v5250_v43, %s5373_s1  ;;  %5246 = vrot.lane.b32.xlu1 %v5250_v43, %s5372_s19 }
 0x635   : > { %4838 = vmatpush3.bf16.msra.mxu1 %v4837_v30 }
 0x636   : > { %4839 = vmatprep.subr.bf16.mxu1 %v5376_v48 }
 0x638   : > { %5261 = vrot.lane.b32.xlu0 %v5250_v43, %s5375_s30  ;;  %5256 = vrot.lane.b32.xlu1 %v5250_v43, %s7431_s23  ;;  %s7241_s23 = sand.u32 1, %s5361_s22  }
 0x639   : > { %4573 = vmatmul.mubr.msk.f32.vlgmr.msra.gmra.mrb[14].mxu1 %vm3513_vm10, %v3506_v51  ;;  %s4311_s19 = sshll.u32 %s7241_s23, 3  ;;  %s4312_s30 = sshll.u32 %s7241_s23, 2 }
 0x63a   : > { %4841 = vmatpush3.bf16.msra.mxu1 %v4834_v40  ;;  %4583 = vmatprep.mubr.msk.f32.mxu1 %vm5378_vm4, %v5377_v52  ;;  %s7249_s1 = scalar_lea.vmem [#allocation2], %s4311_s19  ;;  %s7264_s28 = scalar_lea.vmem [#allocation4], %s4312_s30 }
 0x63b   : > { %4842 = vmatprep.subr.bf16.mxu1 %v5376_v48  ;;  %s4197_s17 = sshll.u32 %s7249_s1, 4  ;;  %s5281_s19 = scalar_lea.vmem %s5280_s27, 256  ;;  %s7300_s17 = int_to_ptr.vmem [resolvable:$true] %s4197_s17 }
 0x63c   : > { %3793 = vperm.xlu0 %4958, %v7003_v47   ;;  %3788 = vperm.xlu1 %4959, %v6977_v29   ;;  %v4020_v29 = vld [vmem:[%s7410_s14] sm:$0xf]  ;;  %s5275_s20 = scalar_lea.vmem %s7300_s17, 128  ;;  %p5282_p0 = scmp.lt.s32.totalorder %s7300_s17, %s5280_s27 }
 0x63d   : > { %p5276_p11 = scmp.ne.s32.totalorder %s7300_s17, %s5275_s20  ;;  %p5283_p1 = scmp.lt.s32.totalorder %s5281_s19, %s5275_s20 }
 0x63e   : > { %4844 = vmatpush3.bf16.msra.mxu1 %v4837_v30 }
 0x63f   : > { %4845 = vmatprep.subr.bf16.mxu1 %v5376_v48  ;;  %p5277_p12 = pnand %p5276_p11, %p5507_p5  ;;  %p5284_p2 = por %p5283_p1, %p5282_p0 }
 0x640   : > { %3918 = vperm.xlu0 %4958, %v7015_v19   ;;  %3913 = vperm.xlu1 %4959, %v6986_v61   ;;  %v3588_v61 = vld [vmem:[%s7410_s14] sm:$0xf] }
 0x641   : > { %4584 = vmatmul.mubr.msk.f32.vlgmr.msra.gmra.mrb[16].mxu1 %vm3513_vm10, %v3587_v45  ;;  %p5278_p13 = pneg %p5277_p12 }
 0x642   : > { %4847 = vmatpush1.bf16.msra.mxu1 %v6926_v1  ;;  %4372 = vmatprep.mubr.msk.f32.mxu1 %vm3372_vm3, %v6958_v15  ;;  %v3940_v1 = vld [vmem:[%s7408_s12] sm:$0x3] }
 0x643   : > { %4848 = vmatprep.subr.bf16.mxu1 %v5376_v48  ;;  %v3507_v15 = vld [vmem:[%s7408_s12] sm:$0x3]  ;;  %p5285_p3 = pnand %p5284_p2, %p5278_p13 }
 0x644   : > { %3803 = vperm.xlu0 %4958, %v7022_v22   ;;  %3798 = vperm.xlu1 %4959, %v6998_v58  }
 0x646   : > { %4850 = vmatpush1.bf16.msra.mxu1 %v7041_v5 }
 0x647   : > { %4851 = vmatprep.subr.bf16.mxu1 %v5376_v48 }
 0x648   : > { %3928 = vperm.xlu0 %4958, %v7028_v6   ;;  %3923 = vperm.xlu1 %4959, %v7010_v28  }
 0x64a   : > { %4853 = vmatpush1.bf16.msra.mxu1 %v7045_v34 }
 0x64b   : > { %4854 = vmatprep.subr.bf16.mxu1 %v5376_v48 }
 0x64c   : > { %3943 = vperm.xlu0 %4958, %v3940_v1   ;;  %3510 = vperm.xlu1 %4959, %v3507_v15  }
 0x64e   : > { %4856 = vmatpush1.bf16.msra.mxu1 %v7050_v7 }
 0x64f   : > { %4857 = vmatprep.subr.bf16.mxu1 %v5376_v48 }
 0x650   : > { %4023 = vperm.xlu0 %4958, %v4020_v29   ;;  %3591 = vperm.xlu1 %4959, %v3588_v61  }
 0x652   : > { %4859 = vmatpush1.bf16.msra.mxu1 %v7055_v25 }
 0x653   : > { %4860 = vmatprep.subr.bf16.mxu1 %v5376_v48 }
 0x656   : > { %4862 = vmatpush1.bf16.msra.mxu1 %v6948_v17 }
 0x657   : > { %4863 = vmatprep.subr.bf16.mxu1 %v5376_v48 }
 0x65a   : > { %4865 = vmatpush1.bf16.msra.mxu1 %v7070_v14 }
 0x65b   : > { %4866 = vmatprep.subr.bf16.mxu1 %v5376_v48 }
 0x65e   : > { %4868 = vmatpush1.bf16.msra.mxu1 %v7074_v20 }
 0x65f   : > { %4869 = vmatprep.subr.bf16.mxu1 %v5376_v48 }
 0x662   : > { %4871 = vmatpush1.bf16.msra.mxu1 %v7078_v36 }
 0x663   : > { %4872 = vmatprep.subr.bf16.mxu1 %v5376_v48 }
 0x666   : > { %4874 = vmatpush1.bf16.msra.mxu1 %v7088_v59 }
 0x667   : > { %4875 = vmatprep.subr.bf16.mxu1 %v5376_v48 }
 0x66a   : > { %4877 = vmatpush1.bf16.msra.mxu1 %v4876_v24 }
 0x66b   : > { %4878 = vmatprep.subr.bf16.mxu1 %v5376_v48 }
 0x6a6   : > { %v5252_v17 = vpop.permute.xlu0 %5251  ;;  %v5247_v58 = vpop.permute.xlu1 %5246 }
 0x6a7   : > { %v5249_v47 = vunpack.i.h.bf16 %v5247_v58  ;;  %v5248_v28 = vunpack.i.l.bf16 %v5247_v58  ;;  %v5254_v19 = vunpack.i.h.bf16 %v5252_v17  ;;  %v5253_v22 = vunpack.i.l.bf16 %v5252_v17 }
 0x6a9   : > { %v4879_v6 = vpack.c.bf16 %v5249_v47, %v5248_v28  ;;  %v4882_v34 = vpack.c.bf16 %v5254_v19, %v5253_v22 }
 0x6aa   : > { %v5257_v5 = vpop.permute.xlu1 %5256  ;;  %v5262_v14 = vpop.permute.xlu0 %5261 }
 0x6ab   : > { %4880 = vmatpush1.bf16.msra.mxu1 %v4879_v6  ;;  %v5259_v7 = vunpack.i.h.bf16 %v5257_v5  ;;  %v5258_v25 = vunpack.i.l.bf16 %v5257_v5  ;;  %v5264_v20 = vunpack.i.h.bf16 %v5262_v14  ;;  %v5263_v36 = vunpack.i.l.bf16 %v5262_v14 }
 0x6ac   : > { %4881 = vmatprep.subr.bf16.mxu1 %v5376_v48 }
 0x6ad   : > { %v4885_v59 = vpack.c.bf16 %v5259_v7, %v5258_v25  ;;  %v4888_v33 = vpack.c.bf16 %v5264_v20, %v5263_v36 }
 0x6af   : > { %4883 = vmatpush1.bf16.msra.mxu1 %v4882_v34 }
 0x6b0   : > { %4884 = vmatprep.subr.bf16.mxu1 %v5376_v48 }
 0x6b3   : > { %4886 = vmatpush1.bf16.msra.mxu1 %v4885_v59 }
 0x6b4   : > { %4887 = vmatprep.subr.bf16.mxu1 %v5376_v48 }
 0x6b7   : > { %4889 = vmatpush1.bf16.msra.mxu1 %v4888_v33 }
 0x6ba   : > { %3883 = vmatmul.mubr.f32.vlgmr.msra.gmra.mrb[18].mxu1 %v7095_v37 }
 0x6bb   : > { %4373 = vmatprep.mubr.msk.f32.mxu1 %vm3372_vm3, %v7100_v16  ;;  %v7230_v0 = vpop.permute.xlu1 %3788  ;;  %v3794_v17 = vpop.permute.xlu0 %3793 }
 0x6be   : > { %3888 = vmatmul.mubr.f32.gmra.mrb[20].mxu1 %v7112_v49  ;;  %v5379_v49 = vmov 1966171168  }
 0x6bf   : > { %4374 = vmatprep.mubr.msk.f32.mxu1 %vm3372_vm3, %v7117_v10  ;;  %v7232_v13 = vpop.permute.xlu1 %3913  ;;  %v3689_v21 = vunpack.c.l.s4 %v5379_v49  ;;  %v3919_v19 = vpop.permute.xlu0 %3918 }
 0x6c1   : > { %v3690_v8 = vunpack.c.0.s8 %v3689_v21 }
 0x6c2   : > { %3893 = vmatmul.mubr.f32.gmra.mrb[22].mxu1 %v7126_v63 }
 0x6c3   : > { %4375 = vmatprep.mubr.msk.f32.mxu1 %vm3372_vm3, %v7132_v32  ;;  %v7234_v37 = vpop.permute.xlu1 %3798  ;;  %v3804_v25 = vpop.permute.xlu0 %3803 }
 0x6c6   : > { %3898 = vmatmul.mubr.f32.gmra.mrb[24].mxu1 %v7144_v44  ;;  %v3692_v44 = vshrl.u32 %v1749_v27, 7 }
 0x6c7   : > { %v7236_v16 = vpop.permute.xlu1 %3923 }
 0x6c8   : > { %v7243_v31 = vsub.s32 %v3690_v8, %v3692_v44 }
 0x6cb   : > { %v3511_v26 = vpop.permute.xlu1 %3510 }
 0x6cf   : > { %v3592_v46 = vpop.permute.xlu1 %3591 }
 0x70c   : > { %v3583_v10 = vpop.f32.mrb[14].mxu1 }
 0x70d   : > { %v3584_v63 = vadd.f32 %v3583_v10, %v3511_v26  ;;  %v4574_v35 = vpop.f32.mrb[15].mxu1 }
 0x70f   : > { %v3668_v32 = vsel %vm3667_vm11, %v3584_v63, -inf }
 0x710   : > { %v3669_v9 = vrot.slane %v3668_v32, 4 }
 0x712   : > { %v3670_v54 = vmax.f32 %v3668_v32, %v3669_v9 }
 0x714   : > { %v3671_v42 = vrot.slane %v3670_v54, 2  ;;  %v3663_v11 = vpop.f32.mrb[16].mxu1 }
 0x715   : > { %v3664_v40 = vadd.f32 %v3663_v11, %v3592_v46  ;;  %v4585_v50 = vpop.f32.mrb[17].mxu1 }
 0x716   : > { %v3672_v23 = vmax.f32 %v3670_v54, %v3671_v42 }
 0x717   : > { %v3694_v41 = vrot.slane %v3664_v40, %v7243_v31 }
 0x718   : > { %v3673_v53 = vrot.slane %v3672_v23, 1 }
 0x719   : > { %v3695_v62 = vcombine.high %v3694_v41, %v3694_v41  ;;  %v3702_v27 = vrot.slane %v3694_v41, %v7243_v31 }
 0x71a   : > { %v3674_v38 = vmax.f32 %v3672_v23, %v3673_v53 }
 0x71b   : > { %v3709_v39 = vrot.slane %v3695_v62, %v7243_v31  ;;  %v3710_v3 = vcombine.high %v3702_v27, %v3702_v27  ;;  %3717 = vst.msk [vmem:[%s7249_s1] sm:$0x1] %vm3716_vm12, %v3702_v27 }
 0x71c   : > { %v3675_v56 = vsub.f32 %v3584_v63, %v3674_v38 }
 0x71d   : > { %v3711_v2 = vcombine.high %v3709_v39, %v3709_v39  ;;  %3718 = vst.msk [vmem:[%s7249_s1 + $0x2] sm:$0x1] %vm3716_vm12, %v3709_v39  ;;  %3719 = vst.msk [vmem:[%s7249_s1 + $0x4] sm:$0x1] %vm3716_vm12, %v3710_v3 }
 0x71e   : > { %v3676_v12 = vmul.f32 1.442695, %v3675_v56 }
 0x71f   : > { %3720 = vst.msk [vmem:[%s7249_s1 + $0x6] sm:$0x1] %vm3716_vm12, %v3711_v2 }
 0x720   : > { %5265 = vpow2.f32 %v3676_v12 }
 0x72a   : > { %v5266_v60 = vpop.eup %5265 }
 0x72b   : > { %v3678_v18 = vsel %vm3667_vm11, %v5266_v60, 0.0 }
 0x72c   : > { %v3679_v4 = vrot.slane %v3678_v18, 4 }
 0x72e   : > { %v3680_v57 = vadd.f32 %v3679_v4, %v3678_v18 }
 0x730   : > { %v3681_v55 = vrot.slane %v3680_v57, 2 }
 0x732   : > { %v3682_v43 = vadd.f32 %v3681_v55, %v3680_v57 }
 0x734   : > { %v3683_v30 = vrot.slane %v3682_v43, 1 }
 0x736   : > { %v3684_v24 = vadd.f32 %v3683_v30, %v3682_v43 }
 0x738   : > { %5267 = vrcp.f32 %v3684_v24 }
 0x742   : > { %v5268_v51 = vpop.eup %5267 }
 0x743   : > { %v3686_v45 = vmul.f32 %v5268_v51, %v5266_v60 }
 0x745   : > { %v3728_v1 = vrot.slane %v3686_v45, %v7243_v31 }
 0x747   : > { %v3729_v15 = vcombine.high %v3728_v1, %v3728_v1  ;;  %v3736_v29 = vrot.slane %v3728_v1, %v7243_v31 }
 0x749   : > { %v3743_v61 = vrot.slane %v3729_v15, %v7243_v31  ;;  %3746 = vst.msk [vmem:[%s7264_s28] sm:$0x1] %vm3716_vm12, %v3736_v29 }
 0x74b   : > { %3747 = vst.msk [vmem:[%s7264_s28 + $0x2] sm:$0x1] %vm3716_vm12, %v3743_v61 }
 0x78d   : > { %v3884_v58 = vpop.f32.mrb[18].mxu1 }
 0x78e   : > { %v3885_v47 = vadd.f32 %v3884_v58, %v7230_v0  ;;  %v3886_v28 = vpop.f32.mrb[19].mxu1 }
 0x790   : > { %v3931_v6 = vmul.f32 %v7232_v13, %v3885_v47  ;;  %vm3903_vm13 = vcmp.gt.f32.partialorder %v3885_v47, 0.0  ;;  %v3929_v13 = vpop.permute.xlu0 %3928 }
 0x791   : > { %v3889_v22 = vpop.f32.mrb[20].mxu1 }
 0x792   : > { %v3890_v5 = vadd.f32 %v3889_v22, %v3794_v17  ;;  %v3891_v34 = vpop.f32.mrb[21].mxu1  ;;  %v3935_v20 = vsel %vm3903_vm13, %v3885_v47, %v3931_v6 }
 0x794   : > { %vm3904_vm14 = vcmp.gt.f32.partialorder %v3890_v5, 0.0  ;;  %v3932_v7 = vmul.f32 %v3919_v19, %v3890_v5  ;;  %v3944_v44 = vpop.permute.xlu0 %3943 }
 0x795   : > { %v3894_v14 = vpop.f32.mrb[22].mxu1 }
 0x796   : > { %v3936_v36 = vsel %vm3904_vm14, %v3890_v5, %v3932_v7  ;;  %v3895_v59 = vadd.f32 %v3894_v14, %v7234_v37  ;;  %v3896_v33 = vpop.f32.mrb[23].mxu1  ;;  %v3939_v37 = vld [vmem:[%s7407_s11] sm:$0x3] }
 0x797   : > { %v4891_v49 = vpack.c.bf16 %v3936_v36, %v3935_v20 }
 0x798   : > { %v3933_v0 = vmul.f32 %v7236_v16, %v3895_v59  ;;  %vm3905_vm15 = vcmp.gt.f32.partialorder %v3895_v59, 0.0  ;;  %v4019_v16 = vld [vmem:[%s7409_s13] sm:$0xf] }
 0x799   : > { %v3899_v21 = vpop.f32.mrb[24].mxu1  ;;  %4892 = vmatpush3.bf16.msra.mxu0 %v4891_v49 }
 0x79a   : > { %v3900_v26 = vadd.f32 %v3899_v21, %v3804_v25  ;;  %v3901_v10 = vpop.f32.mrb[25].mxu1  ;;  %4893 = vmatprep.subr.bf16.mxu0 %v5376_v48  ;;  %v3937_v35 = vsel %vm3905_vm15, %v3895_v59, %v3933_v0 }
 0x79c   : > { %vm3906_vm1 = vcmp.gt.f32.partialorder %v3900_v26, 0.0  ;;  %v3934_v63 = vmul.f32 %v3929_v13, %v3900_v26 }
 0x79e   : > { %v3938_v32 = vsel %vm3906_vm1, %v3900_v26, %v3934_v63 }
 0x79f   : > { %v4894_v8 = vpack.c.bf16 %v3938_v32, %v3937_v35 }
 0x7a1   : > { %4895 = vmatpush3.bf16.msra.mxu0 %v4894_v8 }
 0x7a2   : > { %4896 = vmatprep.subr.bf16.mxu0 %v5376_v48 }
 0x7a4   : > { %4595 = vmatmul.mubr.msk.f32.vlgmr.msra.gmra.mrb[22].mxu0 %vm3513_vm10, %v3939_v37 }
 0x7a5   : > { %4898 = vmatpush3.bf16.msra.mxu0 %v4891_v49  ;;  %4605 = vmatprep.mubr.msk.f32.mxu0 %vm5378_vm4, %v5377_v52  ;;  %v4024_v52 = vpop.permute.xlu0 %4023 }
 0x7a6   : > { %4899 = vmatprep.subr.bf16.mxu0 %v5376_v48 }
 0x7a9   : > { %4901 = vmatpush3.bf16.msra.mxu0 %v4894_v8 }
 0x7ac   : > { %4606 = vmatmul.mubr.msk.f32.vlgmr.msra.gmra.mrb[24].mxu0 %vm3513_vm10, %v4019_v16 }
 0x877   : > { %v4015_v9 = vpop.f32.mrb[22].mxu0 }
 0x878   : > { %v4016_v54 = vadd.f32 %v4015_v9, %v3944_v44  ;;  %v4596_v46 = vpop.f32.mrb[23].mxu0 }
 0x87a   : > { %v4099_v42 = vsel %vm3667_vm11, %v4016_v54, -inf }
 0x87b   : > { %v4100_v11 = vrot.slane %v4099_v42, 4 }
 0x87d   : > { %v4101_v40 = vmax.f32 %v4099_v42, %v4100_v11 }
 0x87f   : > { %v4102_v48 = vrot.slane %v4101_v40, 2  ;;  %v4095_v50 = vpop.f32.mrb[24].mxu0 }
 0x880   : > { %v4096_v23 = vadd.f32 %v4095_v50, %v4024_v52  ;;  %v4607_v41 = vpop.f32.mrb[25].mxu0 }
 0x881   : > { %v4103_v53 = vmax.f32 %v4101_v40, %v4102_v48 }
 0x882   : > { %v4125_v62 = vrot.slane %v4096_v23, %v7243_v31 }
 0x883   : > { %v4104_v27 = vrot.slane %v4103_v53, 1 }
 0x884   : > { %v4126_v38 = vcombine.high %v4125_v62, %v4125_v62  ;;  %v4133_v39 = vrot.slane %v4125_v62, %v7243_v31 }
 0x885   : > { %v4105_v3 = vmax.f32 %v4103_v53, %v4104_v27 }
 0x886   : > { %v4140_v56 = vrot.slane %v4126_v38, %v7243_v31  ;;  %v4141_v2 = vcombine.high %v4133_v39, %v4133_v39  ;;  %4147 = vst.msk [vmem:[%s7249_s1 + $0x1] sm:$0x1] %vm3716_vm12, %v4133_v39 }
 0x887   : > { %v4106_v12 = vsub.f32 %v4016_v54, %v4105_v3 }
 0x888   : > { %v4142_v60 = vcombine.high %v4140_v56, %v4140_v56  ;;  %4148 = vst.msk [vmem:[%s7249_s1 + $0x3] sm:$0x1] %vm3716_vm12, %v4140_v56  ;;  %4149 = vst.msk [vmem:[%s7249_s1 + $0x5] sm:$0x1] %vm3716_vm12, %v4141_v2 }
 0x889   : > { %v4107_v18 = vmul.f32 1.442695, %v4106_v12 }
 0x88a   : > { %4150 = vst.msk [vmem:[%s7249_s1 + $0x7] sm:$0x1] %vm3716_vm12, %v4142_v60 }
 0x88b   : > { %5269 = vpow2.f32 %v4107_v18 }
 0x88c   : > { %5288 = shalt.err (!%p5285_p3)
}
 0x88d   : > { %s5289_s1 = scalar_lea.hbm %s7298_s29, 128  ;;  %s5293_s26 = scalar_lea.hbm %s7411_s15, 256 }
 0x88e   : > { %p5290_p4 = scmp.ne.s32.totalorder %s7298_s29, %s5289_s1  ;;  %p5294_p9 = scmp.lt.u32.totalorder %s7298_s29, %s7411_s15 }
 0x88f   : > { %p5295_p10 = scmp.lt.u32.totalorder %s5293_s26, %s5289_s1  ;;  %p5297_p12 = scmp.lt.u32.totalorder %s5289_s1, %s7298_s29 }
 0x890   : > { %p5291_p7 = pnand %p5290_p4, %p5507_p5 }
 0x891   : > { %p5296_p11 = por %p5295_p10, %p5294_p9 }
 0x892   : > { %p5292_p8 = pneg %p5291_p7 }
 0x893   : > { %p5298_p13 = por %p5297_p12, %p5296_p11 }
 0x895   : > { %p5299_p0 = pnand %p5298_p13, %p5292_p8 }
 0x897   : > { %5302 = shalt.err (!%p5299_p0)
}
 0x898   : > { %s7418_s20 = smov 32   ;;  %s5382_s19 = smov 2   ;;  %v5270_v4 = vpop.eup %5269 }
 0x899   : > { %s7432_s2 = scalar_lea.sflag [#allocation3], %s7241_s23  ;;  %v4109_v57 = vsel %vm3667_vm11, %v5270_v4, 0.0  ;;  %s4387_s18 = sshll.u32 %s5490_s25, 6 }
 0x89a   : > { %4903 = dma.vmem_to_hbm [thread:$0]  (%p5507_p5), %s7300_s17, 128, %s7298_s29, %s7432_s2, %s7418_s20, %s7418_s20, %s5382_s19   ;;  %v4110_v55 = vrot.slane %v4109_v57, 4 }
 0x89b   : > { %s4213_s17 = sshll.u32 %s7264_s28, 4  ;;  %s7346_s30 = scalar_lea.hbm %s7412_s16, %s4387_s18  ;;  %s7348_s17 = int_to_ptr.vmem [resolvable:$true] %s4213_s17 }
 0x89c   : > { %v4111_v43 = vadd.f32 %v4110_v55, %v4109_v57  ;;  %s4184_s25 = scalar_lea.sflag [#allocation5], %s7241_s23  ;;  %s5303_s26 = scalar_lea.vmem %s7348_s17, 64 }
 0x89d   : > { %p5304_p1 = scmp.ne.s32.totalorder %s7348_s17, %s5303_s26  ;;  %s5383_s27 = smov [#allocation4]  }
 0x89e   : > { %v4112_v30 = vrot.slane %v4111_v43, 2  ;;  %s5307_s2 = sshll.u32 %s5383_s27, 4  ;;  %s5308_s2 = int_to_ptr.vmem [resolvable:$false] %s5307_s2 }
 0x89f   : > { %p5305_p2 = pnand %p5304_p1, %p5507_p5  ;;  %s5309_s20 = scalar_lea.vmem %s5308_s2, 128 }
 0x8a0   : > { %v4113_v24 = vadd.f32 %v4112_v30, %v4111_v43  ;;  %p5310_p4 = scmp.lt.s32.totalorder %s7348_s17, %s5308_s2  ;;  %p5311_p7 = scmp.lt.s32.totalorder %s5309_s20, %s5303_s26 }
 0x8a1   : > { %p5306_p3 = pneg %p5305_p2 }
 0x8a2   : > { %v4114_v51 = vrot.slane %v4113_v24, 1  ;;  %p5312_p8 = por %p5311_p7, %p5310_p4 }
 0x8a4   : > { %v4115_v45 = vadd.f32 %v4114_v51, %v4113_v24  ;;  %p5313_p9 = pnand %p5312_p8, %p5306_p3 }
 0x8a6   : > { %5271 = vrcp.f32 %v4115_v45 }
 0x8b0   : > { %v5272_v1 = vpop.eup %5271 }
 0x8b1   : > { %v4117_v15 = vmul.f32 %v5272_v1, %v5270_v4 }
 0x8b3   : > { %v4158_v29 = vrot.slane %v4117_v15, %v7243_v31 }
 0x8b5   : > { %v4159_v61 = vcombine.high %v4158_v29, %v4158_v29  ;;  %v4166_v17 = vrot.slane %v4158_v29, %v7243_v31 }
 0x8b7   : > { %v4173_v58 = vrot.slane %v4159_v61, %v7243_v31  ;;  %4176 = vst.msk [vmem:[%s7264_s28 + $0x1] sm:$0x1] %vm3716_vm12, %v4166_v17 }
 0x8b9   : > { %4177 = vst.msk [vmem:[%s7264_s28 + $0x3] sm:$0x1] %vm3716_vm12, %v4173_v58 }
 0x8ba   : > { %5316 = shalt.err (!%p5313_p9)
}
 0x8bb   : > { %s5317_s28 = scalar_lea.hbm %s7346_s30, 64  ;;  %s5321_s1 = scalar_lea.hbm %s7412_s16, 128 }
 0x8bc   : > { %p5318_p10 = scmp.ne.s32.totalorder %s7346_s30, %s5317_s28  ;;  %p5322_p13 = scmp.lt.u32.totalorder %s7346_s30, %s7412_s16 }
 0x8bd   : > { %p5323_p0 = scmp.lt.u32.totalorder %s5321_s1, %s5317_s28  ;;  %p5325_p2 = scmp.lt.u32.totalorder %s5317_s28, %s7346_s30 }
 0x8be   : > { %p5319_p11 = pnand %p5318_p10, %p5507_p5 }
 0x8bf   : > { %p5324_p1 = por %p5323_p0, %p5322_p13 }
 0x8c0   : > { %p5320_p12 = pneg %p5319_p11 }
 0x8c1   : > { %p5326_p3 = por %p5325_p2, %p5324_p1 }
 0x8c3   : > { %p5327_p4 = pnand %p5326_p3, %p5320_p12 }
 0x8c5   : > { %5330 = shalt.err (!%p5327_p4)
}
 0x8c6   : > { %s7433_s20 = smov 32  }
 0x8c7   : > { %4904 = dma.vmem_to_hbm [thread:$0]  (%p5507_p5), %s7348_s17, 64, %s7346_s30, %s4184_s25, %s7433_s20, %s7433_s20, %s5382_s19  }
 0x8c8 PF: > { %p4914_p7 = scmp.ge.s32.totalorder %s5369_s24, 2  ;;  %s4228_s18 = sand.u32 1, %s5357_s21  }
 0x8c9   : > { %s4229_s28 = scalar_lea.sflag [#allocation3], %s4228_s18 }
 0x8ca   : > { %p4908_p8 = pnand %p4914_p7, %p5511_p6 }
 0x8cc   : > { %5348 = dma.done.wait (!%p4908_p8), %s4229_s28, 128  }
 0x8cd   : > { %5350 = vsyncadd (!%p4908_p8), %s4229_s28, 4294967168  ;;  %s4238_s0 = scalar_lea.sflag [#allocation5], %s4228_s18 }
 0x8ce   : > { %5352 = dma.done.wait (!%p4908_p8), %s4238_s0, 64  }
 0x8cf   : > { %5354 = vsyncadd (!%p4908_p8), %s4238_s0, 4294967232  ;;  %s7435_s24 = sld [smem:[#allocation9_spill]]  ;;  %s7436_s23 = sld [smem:[#allocation8_spill]] }
 0x8d0   : > { %s7437_s29 = sld [smem:[#allocation10_spill]]  ;;  %s7438_s21 = smov %s5361_s22 }
 0x8d5   : > { %p30_p5 = scmp.ge.s32.totalorder %s7435_s24, 4   ;;  %s7439_s22 = smov %s7436_s23 }
 0x8d6   : > { %s7440_s23 = smov %s7437_s29 }
 0x8d7   :  { %32 = sbr.rel (!%p30_p5) target bundleno = 9 (0x9), region = 140 }
 0x8de   :  { %4243 = vsyncpa [#allocation3], 1 }
 0x8df   :  { %4245 = vsyncpa [#allocation3 + $0x1], 1 }
 0x8e0   :  { %4246 = vsyncpa [#allocation5], 1 }
 0x8e1   :  { %4248 = vsyncpa [#allocation5 + $0x1], 1 }

</bundles_post_ra>
